<compile_context>
chip_gen: v7x
topology: tpu7x:2x2x1
jax: 0.10.0
libtpu: 0.0.40
codegen_flags: <defaults>
</compile_context>

<pallas_src>
import functools

import jax
import jax.numpy as jnp
from jax.experimental import pallas as pl
from jax.experimental.pallas import tpu as pltpu


# ----------------------------- the fused kernel -----------------------------

def _mcdcnn_kernel(x_ref, conv_ref, bias_ref, fc1w_hbm, fc2w_hbm, fc3w_ref,
                   out_ref, lhs_ref, fc1w_vmem, fc2w_vmem, sem):
    # --- kick off the fc-weight streams so they overlap the entire conv phase ---------------
    cp1 = pltpu.make_async_copy(fc1w_hbm, fc1w_vmem, sem.at[0])
    cp2 = pltpu.make_async_copy(fc2w_hbm, fc2w_vmem, sem.at[1])
    cp1.start()
    cp2.start()

    T = x_ref.shape[0]                       # sequence length
    BV = x_ref.shape[2]                      # batch * n_vars, on the lane axis
    C = conv_ref.shape[1]                    # conv channels (8), on sublanes
    K = (conv_ref.shape[0] - 2) // (C + 1)   # conv taps (5)
    P0 = (K - 1) // 2                        # 'same' padding (2)
    Tp = T // 2                              # length after MaxPool1d(2)
    B, nb = out_ref.shape
    V = BV // B                              # n_vars
    N1 = fc1w_vmem.shape[1]                  # 256
    N2 = fc2w_vmem.shape[1]                  # 128
    f32 = jnp.float32

    # ---- conv1: per-var Conv1d(1,8,5,'same') + folded BN + ReLU (f32 VPU) -------------------
    halo1 = jnp.zeros((P0, 1, BV), f32)
    xb = jnp.concatenate([halo1, x_ref[...], halo1], axis=0)        # (T+4, 1, BV), in-kernel pad
    xbb = jnp.broadcast_to(xb, (T + 2 * P0, C, BV))                 # single hoisted 1->C bcast
    acc1 = xbb[0:T] * conv_ref[0]
    for k in range(1, K):
        acc1 = acc1 + xbb[k:k + T] * conv_ref[k]
    y1 = jnp.maximum(acc1 + conv_ref[K], 0.0)                       # (T, C, BV)

    # ---- MaxPool1d(2): vectorized pairwise max over the (outer) time axis -------------------
    y1p = jnp.max(y1.reshape(Tp, 2, C, BV), axis=1)                 # (Tp, C, BV)

    # ---- conv2: per-var Conv1d(8,8,5,'same') + folded BN + ReLU (f32 VPU) --------------------
    halo2 = jnp.zeros((P0, C, BV), f32)
    p2 = jnp.concatenate([halo2, y1p, halo2], axis=0)               # (Tp+4, C, BV)
    acc2 = None
    for cin in range(C):
        src = jnp.broadcast_to(p2[:, cin:cin + 1, :], (Tp + 2 * P0, C, BV))  # one bcast per cin
        for k in range(K):
            term = src[k:k + Tp] * conv_ref[K + 1 + k * C + cin]
            acc2 = term if acc2 is None else acc2 + term
    y2 = jnp.maximum(acc2 + conv_ref[K + 1 + K * C], 0.0)           # (Tp, C, BV)

    # ---- AdaptiveAvgPool1d(2) ----------------------------------------------------------------
    h = Tp // 2
    feat = jnp.mean(y2.reshape(2, h, C, BV), axis=1)                # (2, C, BV)

    # ---- re-layout lane-packed (p, c, b*V+v) -> fc1 lhs (B, 2*C*V) in a tiny VMEM scratch ----
    for p in range(2):
        for c in range(C):
            col = (p * C + c) * V
            row = feat[p, c:c + 1, :]                               # (1, BV)
            for b in range(B):
                lhs_ref[b:b + 1, col:col + V] = row[:, b * V:(b + 1) * V]

    # ---- fc1: ONE K = 2*C*V (=1024) matmul, bf16 operands, f32 accumulate --------------------
    lhs = lhs_ref[...].astype(jnp.bfloat16)                         # (B, 2*C*V)
    cp1.wait()                                                      # fc1_w DMA hidden so far
    h1 = jnp.dot(lhs, fc1w_vmem[...], preferred_element_type=f32)
    h1 = jnp.maximum(h1 + bias_ref[:, 0:N1], 0.0)                   # (B, 256)

    # ---- fc2 + ReLU ---------------------------------------------------------------------------
    cp2.wait()
    h2 = jnp.dot(h1.astype(jnp.bfloat16), fc2w_vmem[...], preferred_element_type=f32)
    h2 = jnp.maximum(h2 + bias_ref[:, N1:N1 + N2], 0.0)             # (B, 128)

    # ---- fc3 ----------------------------------------------------------------------------------
    out = jnp.dot(h2.astype(jnp.bfloat16), fc3w_ref[...], preferred_element_type=f32)
    out_ref[...] = (out + bias_ref[:, N1 + N2:N1 + N2 + nb]).astype(out_ref.dtype)


# ----------------------------- parameters (synthetic, BN folded) -----------------------------

def init_params(key, n_vars, nb_classes):
    """Logical (layout-agnostic) parameters; eval-mode BatchNorm folded into the convs."""
    V = n_vars
    ks = jax.random.split(key, 18)
    eps = 1e-5

    # conv1: Conv1d(1, 8, 5) + BatchNorm1d(8), one per var.
    w1 = jax.random.normal(ks[0], (V, 8, 5), jnp.float32) / jnp.sqrt(5.0)
    b1 = 0.01 * jax.random.normal(ks[1], (V, 8), jnp.float32)
    g1 = 1.0 + 0.1 * jax.random.normal(ks[2], (V, 8), jnp.float32)
    be1 = 0.1 * jax.random.normal(ks[3], (V, 8), jnp.float32)
    m1 = 0.05 * jax.random.normal(ks[4], (V, 8), jnp.float32)
    v1 = 1.0 + 0.1 * jax.random.uniform(ks[5], (V, 8), jnp.float32)
    s1 = g1 / jnp.sqrt(v1 + eps)
    w1f = w1 * s1[:, :, None]                                       # (V, Cout, K)
    b1f = (b1 - m1) * s1 + be1                                      # (V, Cout)

    # conv2: Conv1d(8, 8, 5) + BatchNorm1d(8), one per var.
    w2 = jax.random.normal(ks[6], (V, 8, 8, 5), jnp.float32) / jnp.sqrt(40.0)
    b2 = 0.01 * jax.random.normal(ks[7], (V, 8), jnp.float32)
    g2 = 1.0 + 0.1 * jax.random.normal(ks[8], (V, 8), jnp.float32)
    be2 = 0.1 * jax.random.normal(ks[9], (V, 8), jnp.float32)
    m2 = 0.05 * jax.random.normal(ks[10], (V, 8), jnp.float32)
    v2 = 1.0 + 0.1 * jax.random.uniform(ks[11], (V, 8), jnp.float32)
    s2 = g2 / jnp.sqrt(v2 + eps)
    w2f = w2 * s2[:, :, None, None]                                 # (V, Cout, Cin, K)
    b2f = (b2 - m2) * s2 + be2                                      # (V, Cout)

    # FC stack. fc1 rows are in the PyTorch flatten order: feature idx = v*16 + c*2 + p.
    # Weights are pre-rounded to bf16 values (the kernel streams them as bf16).
    rnd = lambda a: a.astype(jnp.bfloat16).astype(jnp.float32)
    n_feat = 16 * V
    fc1 = rnd(jax.random.normal(ks[12], (n_feat, 256), jnp.float32) / jnp.sqrt(float(n_feat)))
    fc2 = rnd(jax.random.normal(ks[13], (256, 128), jnp.float32) / jnp.sqrt(256.0))
    fc3 = rnd(jax.random.normal(ks[14], (128, nb_classes), jnp.float32) / jnp.sqrt(128.0))

    return {
        "w1": w1f, "b1": b1f, "w2": w2f, "b2": b2f,
        "fc1": fc1, "fc1_b": 0.01 * jax.random.normal(ks[15], (1, 256), jnp.float32),
        "fc2": fc2, "fc2_b": 0.01 * jax.random.normal(ks[16], (1, 128), jnp.float32),
        "fc3": fc3, "fc3_b": jnp.zeros((1, nb_classes), jnp.float32),
    }


def pack_params(params, batch):
    """Pack logical params into the kernel layout for a fixed batch size (lane = b*V + v)."""
    V, C, K = params["w1"].shape
    B = batch

    def lane_tile(a):                                    # (..., V) -> (..., B*V)
        return jnp.tile(a, (1,) * (a.ndim - 1) + (B,))

    w1 = lane_tile(jnp.transpose(params["w1"], (2, 1, 0)))                         # (K, C, BV)
    b1 = lane_tile(params["b1"].T)[None]                                           # (1, C, BV)
    w2 = lane_tile(jnp.transpose(params["w2"], (3, 2, 1, 0)).reshape(K * C, C, V)) # (K*C, C, BV)
    b2 = lane_tile(params["b2"].T)[None]                                           # (1, C, BV)
    conv = jnp.concatenate([w1, b1, w2, b2], axis=0)                               # (K+1+K*C+1, C, BV)

    # fc1 rows: torch flatten order (v*16 + c*2 + p) -> kernel order ((p*C + c)*V + v)
    fc1 = params["fc1"].reshape(V, C, 2, -1).transpose(2, 1, 0, 3).reshape(2 * C * V, -1)
    bias = jnp.concatenate([params["fc1_b"], params["fc2_b"], params["fc3_b"]], axis=1)

    return {
        "conv": conv.astype(jnp.float32),
        "bias": bias.astype(jnp.float32),
        "fc1_w": fc1.astype(jnp.bfloat16),               # (2*C*V, 256) = (1024, 256)
        "fc2_w": params["fc2"].astype(jnp.bfloat16),      # (256, 128)
        "fc3_w": params["fc3"].astype(jnp.bfloat16),      # (128, nb_classes)
    }


# ----------------------------- forward pass -----------------------------

@functools.partial(jax.jit, static_argnames=("normalize_features",))
def mcdcnn_forward(x, packed, normalize_features=False):
    """x: (B, n_vars, n_t) -- same layout as the PyTorch module's input."""
    B, V, T = x.shape
    assert T % 4 == 0, "MaxPool1d(2) + AdaptiveAvgPool1d(2) need n_t % 4 == 0 here"
    if normalize_features:
        mu = jnp.mean(x, axis=2, keepdims=True)
        sd = jnp.std(x, axis=2, keepdims=True, ddof=1)    # torch.std default: unbiased
        x = (x - mu) / sd

    # Only wrapper glue: time-major, batch folded into lanes (lane index = b*V + v).
    xt = jnp.transpose(x, (2, 0, 1)).reshape(T, 1, B * V)

    nb = packed["fc3_w"].shape[1]
    vmem = pltpu.MemorySpace.VMEM
    out = pl.pallas_call(
        _mcdcnn_kernel,
        out_shape=jax.ShapeDtypeStruct((B, nb), jnp.float32),
        in_specs=[
            pl.BlockSpec(memory_space=vmem),              # xt
            pl.BlockSpec(memory_space=vmem),              # conv blob (w1,b1,w2,b2)
            pl.BlockSpec(memory_space=vmem),              # fc bias blob
            pl.BlockSpec(memory_space=pl.ANY),            # fc1_w stays in HBM (manual DMA)
            pl.BlockSpec(memory_space=pl.ANY),            # fc2_w stays in HBM (manual DMA)
            pl.BlockSpec(memory_space=vmem),              # fc3_w (tiny)
        ],
        out_specs=pl.BlockSpec(memory_space=vmem),
        scratch_shapes=[
            pltpu.VMEM((B, 16 * V), jnp.float32),                       # fc1 lhs staging
            pltpu.VMEM(packed["fc1_w"].shape, jnp.bfloat16),            # fc1_w landing buffer
            pltpu.VMEM(packed["fc2_w"].shape, jnp.bfloat16),            # fc2_w landing buffer
            pltpu.SemaphoreType.DMA((2,)),
        ],
        compiler_params=pltpu.CompilerParams(vmem_limit_bytes=16 * 1024 * 1024),
    )(xt, packed["conv"], packed["bias"], packed["fc1_w"], packed["fc2_w"], packed["fc3_w"])
    # nn.Dropout(0.25) layers are identity in eval mode.
    return jnp.squeeze(out)                               # matches `output.squeeze()`


# ----------------------------- pure-JAX reference (for verification) -----------------------------

def mcdcnn_reference(x, params, normalize_features=False):
    B, V, T = x.shape
    Tp = T // 2
    if normalize_features:
        mu = jnp.mean(x, axis=2, keepdims=True)
        sd = jnp.std(x, axis=2, keepdims=True, ddof=1)
        x = (x - mu) / sd
    w1, b1 = params["w1"], params["b1"]                   # (V, 8, 5), (V, 8)
    w2, b2 = params["w2"], params["b2"]                   # (V, 8, 8, 5), (V, 8)
    xp = jnp.pad(x, ((0, 0), (0, 0), (2, 2)))             # (B, V, T+4)
    y1 = sum(xp[:, :, None, k:k + T] * w1[None, :, :, k, None] for k in range(5))
    y1 = jax.nn.relu(y1 + b1[None, :, :, None])           # (B, V, 8, T)
    y1p = jnp.max(y1.reshape(B, V, 8, Tp, 2), axis=-1)    # MaxPool1d(2)
    y1pp = jnp.pad(y1p, ((0, 0), (0, 0), (0, 0), (2, 2)))
    y2 = sum(jnp.einsum("bvit,voi->bvot", y1pp[:, :, :, k:k + Tp], w2[:, :, :, k])
             for k in range(5))
    y2 = jax.nn.relu(y2 + b2[None, :, :, None])           # (B, V, 8, Tp)
    feat = y2.reshape(B, V, 8, 2, Tp // 2).mean(axis=-1)  # AdaptiveAvgPool1d(2) -> (B, V, 8, 2)
    flat = feat.reshape(B, 16 * V)                        # torch flatten order v*16 + c*2 + p
    h1 = jax.nn.relu(flat @ params["fc1"] + params["fc1_b"])
    h2 = jax.nn.relu(h1 @ params["fc2"] + params["fc2_b"])
    out = h2 @ params["fc3"] + params["fc3_b"]
    return jnp.squeeze(out)


# ----------------------------- main -----------------------------

if __name__ == "__main__":
    key = jax.random.PRNGKey(0)
    pkey, xkey = jax.random.split(key)
    # fc1 = Linear(1024, 256) in the reference module => 16 * n_vars == 1024 => n_vars = 64.
    n_vars, n_t, nb_classes, batch = 64, 16, 5, 2
    params = init_params(pkey, n_vars, nb_classes)
    packed = pack_params(params, batch)
    x = jax.random.normal(xkey, (batch, n_vars, n_t), jnp.float32)

    out = mcdcnn_forward(x, packed, normalize_features=False)
    out = jax.block_until_ready(out)
    assert out.shape == (batch, nb_classes), out.shape
    assert bool(jnp.all(jnp.isfinite(out)))

    ref = mcdcnn_reference(x, params)
    err = float(jnp.max(jnp.abs(out - ref)))
    assert err < 5e-2, f"max |pallas - reference| = {err}"

    print("KERNEL_OK")
</pallas_src>

<mosaic_0001>
module attributes {stable_mosaic.version = 11 : i64} {
  func.func @_mcdcnn_kernel(%arg0: memref<16x1x128xf32, #tpu.memory_space<vmem>>, %arg1: memref<47x8x128xf32, #tpu.memory_space<vmem>>, %arg2: memref<1x389xf32, #tpu.memory_space<vmem>>, %arg3: memref<1024x256xbf16, #tpu.memory_space<any>>, %arg4: memref<256x128xbf16, #tpu.memory_space<any>>, %arg5: memref<128x5xbf16, #tpu.memory_space<vmem>>, %arg6: memref<2x5xf32, #tpu.memory_space<vmem>>, %arg7: memref<2x1024xf32, #tpu.memory_space<vmem>>, %arg8: memref<1024x256xbf16, #tpu.memory_space<vmem>>, %arg9: memref<256x128xbf16, #tpu.memory_space<vmem>>, %arg10: memref<2x!tpu.dma_semaphore, #tpu.memory_space<semaphore_mem>>) attributes {dimension_semantics = [], scalar_prefetch = 0 : i64, scratch_operands = 4 : i64, tpu.core_type = #tpu.core_type<tc>} {
    %c0_i32 = arith.constant 0 : i32
    %0 = tpu.memref_slice %arg10[%c0_i32] : memref<2x!tpu.dma_semaphore, #tpu.memory_space<semaphore_mem>> -> memref<1x!tpu.dma_semaphore, #tpu.memory_space<semaphore_mem>>
    %1 = tpu.memref_squeeze %0 : memref<1x!tpu.dma_semaphore, #tpu.memory_space<semaphore_mem>> -> memref<!tpu.dma_semaphore, #tpu.memory_space<semaphore_mem>>
    tpu.enqueue_dma source(%arg3 : memref<1024x256xbf16, #tpu.memory_space<any>>) target(%arg8 : memref<1024x256xbf16, #tpu.memory_space<vmem>>) target_semaphore(%1 : memref<!tpu.dma_semaphore, #tpu.memory_space<semaphore_mem>>)
    %c1_i32 = arith.constant 1 : i32
    %2 = tpu.memref_slice %arg10[%c1_i32] : memref<2x!tpu.dma_semaphore, #tpu.memory_space<semaphore_mem>> -> memref<1x!tpu.dma_semaphore, #tpu.memory_space<semaphore_mem>>
    %3 = tpu.memref_squeeze %2 : memref<1x!tpu.dma_semaphore, #tpu.memory_space<semaphore_mem>> -> memref<!tpu.dma_semaphore, #tpu.memory_space<semaphore_mem>>
    tpu.enqueue_dma source(%arg4 : memref<256x128xbf16, #tpu.memory_space<any>>) target(%arg9 : memref<256x128xbf16, #tpu.memory_space<vmem>>) target_semaphore(%3 : memref<!tpu.dma_semaphore, #tpu.memory_space<semaphore_mem>>)
    %cst = arith.constant 0.000000e+00 : f32
    %4 = vector.broadcast %cst : f32 to vector<2x1x128xf32>
    %c0 = arith.constant 0 : index
    %c0_0 = arith.constant 0 : index
    %c0_1 = arith.constant 0 : index
    %5 = vector.load %arg0[%c0, %c0_0, %c0_1] : memref<16x1x128xf32, #tpu.memory_space<vmem>>, vector<16x1x128xf32>
    %6 = tpu.concatenate %4, %5, %4 in 0 : vector<2x1x128xf32>, vector<16x1x128xf32>, vector<2x1x128xf32> -> vector<20x1x128xf32>
    %7 = vector.shape_cast %6 : vector<20x1x128xf32> to vector<20x1x128xf32>
    %8 = vector.broadcast %7 : vector<20x1x128xf32> to vector<20x8x128xf32>
    %9 = vector.extract_strided_slice %8 {offsets = [0, 0, 0], sizes = [16, 8, 128], strides = [1, 1, 1]} : vector<20x8x128xf32> to vector<16x8x128xf32>
    %c0_2 = arith.constant 0 : index
    %c0_3 = arith.constant 0 : index
    %c0_4 = arith.constant 0 : index
    %10 = vector.load %arg1[%c0_2, %c0_3, %c0_4] : memref<47x8x128xf32, #tpu.memory_space<vmem>>, vector<1x8x128xf32>
    %11 = vector.shape_cast %10 : vector<1x8x128xf32> to vector<8x128xf32>
    %12 = vector.shape_cast %11 : vector<8x128xf32> to vector<1x8x128xf32>
    %13 = vector.broadcast %12 : vector<1x8x128xf32> to vector<16x8x128xf32>
    %14 = arith.mulf %9, %13 : vector<16x8x128xf32>
    %15 = vector.extract_strided_slice %8 {offsets = [1, 0, 0], sizes = [16, 8, 128], strides = [1, 1, 1]} : vector<20x8x128xf32> to vector<16x8x128xf32>
    %c1 = arith.constant 1 : index
    %c0_5 = arith.constant 0 : index
    %c0_6 = arith.constant 0 : index
    %16 = vector.load %arg1[%c1, %c0_5, %c0_6] : memref<47x8x128xf32, #tpu.memory_space<vmem>>, vector<1x8x128xf32>
    %17 = vector.shape_cast %16 : vector<1x8x128xf32> to vector<8x128xf32>
    %18 = vector.shape_cast %17 : vector<8x128xf32> to vector<1x8x128xf32>
    %19 = vector.broadcast %18 : vector<1x8x128xf32> to vector<16x8x128xf32>
    %20 = arith.mulf %15, %19 : vector<16x8x128xf32>
    %21 = arith.addf %14, %20 : vector<16x8x128xf32>
    %22 = vector.extract_strided_slice %8 {offsets = [2, 0, 0], sizes = [16, 8, 128], strides = [1, 1, 1]} : vector<20x8x128xf32> to vector<16x8x128xf32>
    %c2 = arith.constant 2 : index
    %c0_7 = arith.constant 0 : index
    %c0_8 = arith.constant 0 : index
    %23 = vector.load %arg1[%c2, %c0_7, %c0_8] : memref<47x8x128xf32, #tpu.memory_space<vmem>>, vector<1x8x128xf32>
    %24 = vector.shape_cast %23 : vector<1x8x128xf32> to vector<8x128xf32>
    %25 = vector.shape_cast %24 : vector<8x128xf32> to vector<1x8x128xf32>
    %26 = vector.broadcast %25 : vector<1x8x128xf32> to vector<16x8x128xf32>
    %27 = arith.mulf %22, %26 : vector<16x8x128xf32>
    %28 = arith.addf %21, %27 : vector<16x8x128xf32>
    %29 = vector.extract_strided_slice %8 {offsets = [3, 0, 0], sizes = [16, 8, 128], strides = [1, 1, 1]} : vector<20x8x128xf32> to vector<16x8x128xf32>
    %c3 = arith.constant 3 : index
    %c0_9 = arith.constant 0 : index
    %c0_10 = arith.constant 0 : index
    %30 = vector.load %arg1[%c3, %c0_9, %c0_10] : memref<47x8x128xf32, #tpu.memory_space<vmem>>, vector<1x8x128xf32>
    %31 = vector.shape_cast %30 : vector<1x8x128xf32> to vector<8x128xf32>
    %32 = vector.shape_cast %31 : vector<8x128xf32> to vector<1x8x128xf32>
    %33 = vector.broadcast %32 : vector<1x8x128xf32> to vector<16x8x128xf32>
    %34 = arith.mulf %29, %33 : vector<16x8x128xf32>
    %35 = arith.addf %28, %34 : vector<16x8x128xf32>
    %36 = vector.extract_strided_slice %8 {offsets = [4, 0, 0], sizes = [16, 8, 128], strides = [1, 1, 1]} : vector<20x8x128xf32> to vector<16x8x128xf32>
    %c4 = arith.constant 4 : index
    %c0_11 = arith.constant 0 : index
    %c0_12 = arith.constant 0 : index
    %37 = vector.load %arg1[%c4, %c0_11, %c0_12] : memref<47x8x128xf32, #tpu.memory_space<vmem>>, vector<1x8x128xf32>
    %38 = vector.shape_cast %37 : vector<1x8x128xf32> to vector<8x128xf32>
    %39 = vector.shape_cast %38 : vector<8x128xf32> to vector<1x8x128xf32>
    %40 = vector.broadcast %39 : vector<1x8x128xf32> to vector<16x8x128xf32>
    %41 = arith.mulf %36, %40 : vector<16x8x128xf32>
    %42 = arith.addf %35, %41 : vector<16x8x128xf32>
    %c5 = arith.constant 5 : index
    %c0_13 = arith.constant 0 : index
    %c0_14 = arith.constant 0 : index
    %43 = vector.load %arg1[%c5, %c0_13, %c0_14] : memref<47x8x128xf32, #tpu.memory_space<vmem>>, vector<1x8x128xf32>
    %44 = vector.shape_cast %43 : vector<1x8x128xf32> to vector<8x128xf32>
    %45 = vector.shape_cast %44 : vector<8x128xf32> to vector<1x8x128xf32>
    %46 = vector.broadcast %45 : vector<1x8x128xf32> to vector<16x8x128xf32>
    %47 = arith.addf %42, %46 : vector<16x8x128xf32>
    %cst_15 = arith.constant 0.000000e+00 : f32
    %48 = vector.broadcast %cst_15 : f32 to vector<16x8x128xf32>
    %49 = arith.maximumf %47, %48 : vector<16x8x128xf32>
    %50 = vector.shape_cast %49 : vector<16x8x128xf32> to vector<8x2x8x128xf32>
    %cst_16 = arith.constant dense<0xFF800000> : vector<8x8x128xf32>
    %51 = vector.multi_reduction <maximumf>, %50, %cst_16 [1] : vector<8x2x8x128xf32> to vector<8x8x128xf32>
    %cst_17 = arith.constant 0.000000e+00 : f32
    %52 = vector.broadcast %cst_17 : f32 to vector<2x8x128xf32>
    %53 = tpu.concatenate %52, %51, %52 in 0 : vector<2x8x128xf32>, vector<8x8x128xf32>, vector<2x8x128xf32> -> vector<12x8x128xf32>
    %54 = vector.extract_strided_slice %53 {offsets = [0, 0, 0], sizes = [12, 1, 128], strides = [1, 1, 1]} : vector<12x8x128xf32> to vector<12x1x128xf32>
    %55 = vector.shape_cast %54 : vector<12x1x128xf32> to vector<12x1x128xf32>
    %56 = vector.broadcast %55 : vector<12x1x128xf32> to vector<12x8x128xf32>
    %57 = vector.extract_strided_slice %56 {offsets = [0, 0, 0], sizes = [8, 8, 128], strides = [1, 1, 1]} : vector<12x8x128xf32> to vector<8x8x128xf32>
    %c6 = arith.constant 6 : index
    %c0_18 = arith.constant 0 : index
    %c0_19 = arith.constant 0 : index
    %58 = vector.load %arg1[%c6, %c0_18, %c0_19] : memref<47x8x128xf32, #tpu.memory_space<vmem>>, vector<1x8x128xf32>
    %59 = vector.shape_cast %58 : vector<1x8x128xf32> to vector<8x128xf32>
    %60 = vector.shape_cast %59 : vector<8x128xf32> to vector<1x8x128xf32>
    %61 = vector.broadcast %60 : vector<1x8x128xf32> to vector<8x8x128xf32>
    %62 = arith.mulf %57, %61 : vector<8x8x128xf32>
    %63 = vector.extract_strided_slice %56 {offsets = [1, 0, 0], sizes = [8, 8, 128], strides = [1, 1, 1]} : vector<12x8x128xf32> to vector<8x8x128xf32>
    %c14 = arith.constant 14 : index
    %c0_20 = arith.constant 0 : index
    %c0_21 = arith.constant 0 : index
    %64 = vector.load %arg1[%c14, %c0_20, %c0_21] : memref<47x8x128xf32, #tpu.memory_space<vmem>>, vector<1x8x128xf32>
    %65 = vector.shape_cast %64 : vector<1x8x128xf32> to vector<8x128xf32>
    %66 = vector.shape_cast %65 : vector<8x128xf32> to vector<1x8x128xf32>
    %67 = vector.broadcast %66 : vector<1x8x128xf32> to vector<8x8x128xf32>
    %68 = arith.mulf %63, %67 : vector<8x8x128xf32>
    %69 = arith.addf %62, %68 : vector<8x8x128xf32>
    %70 = vector.extract_strided_slice %56 {offsets = [2, 0, 0], sizes = [8, 8, 128], strides = [1, 1, 1]} : vector<12x8x128xf32> to vector<8x8x128xf32>
    %c22 = arith.constant 22 : index
    %c0_22 = arith.constant 0 : index
    %c0_23 = arith.constant 0 : index
    %71 = vector.load %arg1[%c22, %c0_22, %c0_23] : memref<47x8x128xf32, #tpu.memory_space<vmem>>, vector<1x8x128xf32>
    %72 = vector.shape_cast %71 : vector<1x8x128xf32> to vector<8x128xf32>
    %73 = vector.shape_cast %72 : vector<8x128xf32> to vector<1x8x128xf32>
    %74 = vector.broadcast %73 : vector<1x8x128xf32> to vector<8x8x128xf32>
    %75 = arith.mulf %70, %74 : vector<8x8x128xf32>
    %76 = arith.addf %69, %75 : vector<8x8x128xf32>
    %77 = vector.extract_strided_slice %56 {offsets = [3, 0, 0], sizes = [8, 8, 128], strides = [1, 1, 1]} : vector<12x8x128xf32> to vector<8x8x128xf32>
    %c30 = arith.constant 30 : index
    %c0_24 = arith.constant 0 : index
    %c0_25 = arith.constant 0 : index
    %78 = vector.load %arg1[%c30, %c0_24, %c0_25] : memref<47x8x128xf32, #tpu.memory_space<vmem>>, vector<1x8x128xf32>
    %79 = vector.shape_cast %78 : vector<1x8x128xf32> to vector<8x128xf32>
    %80 = vector.shape_cast %79 : vector<8x128xf32> to vector<1x8x128xf32>
    %81 = vector.broadcast %80 : vector<1x8x128xf32> to vector<8x8x128xf32>
    %82 = arith.mulf %77, %81 : vector<8x8x128xf32>
    %83 = arith.addf %76, %82 : vector<8x8x128xf32>
    %84 = vector.extract_strided_slice %56 {offsets = [4, 0, 0], sizes = [8, 8, 128], strides = [1, 1, 1]} : vector<12x8x128xf32> to vector<8x8x128xf32>
    %c38 = arith.constant 38 : index
    %c0_26 = arith.constant 0 : index
    %c0_27 = arith.constant 0 : index
    %85 = vector.load %arg1[%c38, %c0_26, %c0_27] : memref<47x8x128xf32, #tpu.memory_space<vmem>>, vector<1x8x128xf32>
    %86 = vector.shape_cast %85 : vector<1x8x128xf32> to vector<8x128xf32>
    %87 = vector.shape_cast %86 : vector<8x128xf32> to vector<1x8x128xf32>
    %88 = vector.broadcast %87 : vector<1x8x128xf32> to vector<8x8x128xf32>
    %89 = arith.mulf %84, %88 : vector<8x8x128xf32>
    %90 = arith.addf %83, %89 : vector<8x8x128xf32>
    %91 = vector.extract_strided_slice %53 {offsets = [0, 1, 0], sizes = [12, 1, 128], strides = [1, 1, 1]} : vector<12x8x128xf32> to vector<12x1x128xf32>
    %92 = vector.shape_cast %91 : vector<12x1x128xf32> to vector<12x1x128xf32>
    %93 = vector.broadcast %92 : vector<12x1x128xf32> to vector<12x8x128xf32>
    %94 = vector.extract_strided_slice %93 {offsets = [0, 0, 0], sizes = [8, 8, 128], strides = [1, 1, 1]} : vector<12x8x128xf32> to vector<8x8x128xf32>
    %c7 = arith.constant 7 : index
    %c0_28 = arith.constant 0 : index
    %c0_29 = arith.constant 0 : index
    %95 = vector.load %arg1[%c7, %c0_28, %c0_29] : memref<47x8x128xf32, #tpu.memory_space<vmem>>, vector<1x8x128xf32>
    %96 = vector.shape_cast %95 : vector<1x8x128xf32> to vector<8x128xf32>
    %97 = vector.shape_cast %96 : vector<8x128xf32> to vector<1x8x128xf32>
    %98 = vector.broadcast %97 : vector<1x8x128xf32> to vector<8x8x128xf32>
    %99 = arith.mulf %94, %98 : vector<8x8x128xf32>
    %100 = arith.addf %90, %99 : vector<8x8x128xf32>
    %101 = vector.extract_strided_slice %93 {offsets = [1, 0, 0], sizes = [8, 8, 128], strides = [1, 1, 1]} : vector<12x8x128xf32> to vector<8x8x128xf32>
    %c15 = arith.constant 15 : index
    %c0_30 = arith.constant 0 : index
    %c0_31 = arith.constant 0 : index
    %102 = vector.load %arg1[%c15, %c0_30, %c0_31] : memref<47x8x128xf32, #tpu.memory_space<vmem>>, vector<1x8x128xf32>
    %103 = vector.shape_cast %102 : vector<1x8x128xf32> to vector<8x128xf32>
    %104 = vector.shape_cast %103 : vector<8x128xf32> to vector<1x8x128xf32>
    %105 = vector.broadcast %104 : vector<1x8x128xf32> to vector<8x8x128xf32>
    %106 = arith.mulf %101, %105 : vector<8x8x128xf32>
    %107 = arith.addf %100, %106 : vector<8x8x128xf32>
    %108 = vector.extract_strided_slice %93 {offsets = [2, 0, 0], sizes = [8, 8, 128], strides = [1, 1, 1]} : vector<12x8x128xf32> to vector<8x8x128xf32>
    %c23 = arith.constant 23 : index
    %c0_32 = arith.constant 0 : index
    %c0_33 = arith.constant 0 : index
    %109 = vector.load %arg1[%c23, %c0_32, %c0_33] : memref<47x8x128xf32, #tpu.memory_space<vmem>>, vector<1x8x128xf32>
    %110 = vector.shape_cast %109 : vector<1x8x128xf32> to vector<8x128xf32>
    %111 = vector.shape_cast %110 : vector<8x128xf32> to vector<1x8x128xf32>
    %112 = vector.broadcast %111 : vector<1x8x128xf32> to vector<8x8x128xf32>
    %113 = arith.mulf %108, %112 : vector<8x8x128xf32>
    %114 = arith.addf %107, %113 : vector<8x8x128xf32>
    %115 = vector.extract_strided_slice %93 {offsets = [3, 0, 0], sizes = [8, 8, 128], strides = [1, 1, 1]} : vector<12x8x128xf32> to vector<8x8x128xf32>
    %c31 = arith.constant 31 : index
    %c0_34 = arith.constant 0 : index
    %c0_35 = arith.constant 0 : index
    %116 = vector.load %arg1[%c31, %c0_34, %c0_35] : memref<47x8x128xf32, #tpu.memory_space<vmem>>, vector<1x8x128xf32>
    %117 = vector.shape_cast %116 : vector<1x8x128xf32> to vector<8x128xf32>
    %118 = vector.shape_cast %117 : vector<8x128xf32> to vector<1x8x128xf32>
    %119 = vector.broadcast %118 : vector<1x8x128xf32> to vector<8x8x128xf32>
    %120 = arith.mulf %115, %119 : vector<8x8x128xf32>
    %121 = arith.addf %114, %120 : vector<8x8x128xf32>
    %122 = vector.extract_strided_slice %93 {offsets = [4, 0, 0], sizes = [8, 8, 128], strides = [1, 1, 1]} : vector<12x8x128xf32> to vector<8x8x128xf32>
    %c39 = arith.constant 39 : index
    %c0_36 = arith.constant 0 : index
    %c0_37 = arith.constant 0 : index
    %123 = vector.load %arg1[%c39, %c0_36, %c0_37] : memref<47x8x128xf32, #tpu.memory_space<vmem>>, vector<1x8x128xf32>
    %124 = vector.shape_cast %123 : vector<1x8x128xf32> to vector<8x128xf32>
    %125 = vector.shape_cast %124 : vector<8x128xf32> to vector<1x8x128xf32>
    %126 = vector.broadcast %125 : vector<1x8x128xf32> to vector<8x8x128xf32>
    %127 = arith.mulf %122, %126 : vector<8x8x128xf32>
    %128 = arith.addf %121, %127 : vector<8x8x128xf32>
    %129 = vector.extract_strided_slice %53 {offsets = [0, 2, 0], sizes = [12, 1, 128], strides = [1, 1, 1]} : vector<12x8x128xf32> to vector<12x1x128xf32>
    %130 = vector.shape_cast %129 : vector<12x1x128xf32> to vector<12x1x128xf32>
    %131 = vector.broadcast %130 : vector<12x1x128xf32> to vector<12x8x128xf32>
    %132 = vector.extract_strided_slice %131 {offsets = [0, 0, 0], sizes = [8, 8, 128], strides = [1, 1, 1]} : vector<12x8x128xf32> to vector<8x8x128xf32>
    %c8 = arith.constant 8 : index
    %c0_38 = arith.constant 0 : index
    %c0_39 = arith.constant 0 : index
    %133 = vector.load %arg1[%c8, %c0_38, %c0_39] : memref<47x8x128xf32, #tpu.memory_space<vmem>>, vector<1x8x128xf32>
    %134 = vector.shape_cast %133 : vector<1x8x128xf32> to vector<8x128xf32>
    %135 = vector.shape_cast %134 : vector<8x128xf32> to vector<1x8x128xf32>
    %136 = vector.broadcast %135 : vector<1x8x128xf32> to vector<8x8x128xf32>
    %137 = arith.mulf %132, %136 : vector<8x8x128xf32>
    %138 = arith.addf %128, %137 : vector<8x8x128xf32>
    %139 = vector.extract_strided_slice %131 {offsets = [1, 0, 0], sizes = [8, 8, 128], strides = [1, 1, 1]} : vector<12x8x128xf32> to vector<8x8x128xf32>
    %c16 = arith.constant 16 : index
    %c0_40 = arith.constant 0 : index
    %c0_41 = arith.constant 0 : index
    %140 = vector.load %arg1[%c16, %c0_40, %c0_41] : memref<47x8x128xf32, #tpu.memory_space<vmem>>, vector<1x8x128xf32>
    %141 = vector.shape_cast %140 : vector<1x8x128xf32> to vector<8x128xf32>
    %142 = vector.shape_cast %141 : vector<8x128xf32> to vector<1x8x128xf32>
    %143 = vector.broadcast %142 : vector<1x8x128xf32> to vector<8x8x128xf32>
    %144 = arith.mulf %139, %143 : vector<8x8x128xf32>
    %145 = arith.addf %138, %144 : vector<8x8x128xf32>
    %146 = vector.extract_strided_slice %131 {offsets = [2, 0, 0], sizes = [8, 8, 128], strides = [1, 1, 1]} : vector<12x8x128xf32> to vector<8x8x128xf32>
    %c24 = arith.constant 24 : index
    %c0_42 = arith.constant 0 : index
    %c0_43 = arith.constant 0 : index
    %147 = vector.load %arg1[%c24, %c0_42, %c0_43] : memref<47x8x128xf32, #tpu.memory_space<vmem>>, vector<1x8x128xf32>
    %148 = vector.shape_cast %147 : vector<1x8x128xf32> to vector<8x128xf32>
    %149 = vector.shape_cast %148 : vector<8x128xf32> to vector<1x8x128xf32>
    %150 = vector.broadcast %149 : vector<1x8x128xf32> to vector<8x8x128xf32>
    %151 = arith.mulf %146, %150 : vector<8x8x128xf32>
    %152 = arith.addf %145, %151 : vector<8x8x128xf32>
    %153 = vector.extract_strided_slice %131 {offsets = [3, 0, 0], sizes = [8, 8, 128], strides = [1, 1, 1]} : vector<12x8x128xf32> to vector<8x8x128xf32>
    %c32 = arith.constant 32 : index
    %c0_44 = arith.constant 0 : index
    %c0_45 = arith.constant 0 : index
    %154 = vector.load %arg1[%c32, %c0_44, %c0_45] : memref<47x8x128xf32, #tpu.memory_space<vmem>>, vector<1x8x128xf32>
    %155 = vector.shape_cast %154 : vector<1x8x128xf32> to vector<8x128xf32>
    %156 = vector.shape_cast %155 : vector<8x128xf32> to vector<1x8x128xf32>
    %157 = vector.broadcast %156 : vector<1x8x128xf32> to vector<8x8x128xf32>
    %158 = arith.mulf %153, %157 : vector<8x8x128xf32>
    %159 = arith.addf %152, %158 : vector<8x8x128xf32>
    %160 = vector.extract_strided_slice %131 {offsets = [4, 0, 0], sizes = [8, 8, 128], strides = [1, 1, 1]} : vector<12x8x128xf32> to vector<8x8x128xf32>
    %c40 = arith.constant 40 : index
    %c0_46 = arith.constant 0 : index
    %c0_47 = arith.constant 0 : index
    %161 = vector.load %arg1[%c40, %c0_46, %c0_47] : memref<47x8x128xf32, #tpu.memory_space<vmem>>, vector<1x8x128xf32>
    %162 = vector.shape_cast %161 : vector<1x8x128xf32> to vector<8x128xf32>
    %163 = vector.shape_cast %162 : vector<8x128xf32> to vector<1x8x128xf32>
    %164 = vector.broadcast %163 : vector<1x8x128xf32> to vector<8x8x128xf32>
    %165 = arith.mulf %160, %164 : vector<8x8x128xf32>
    %166 = arith.addf %159, %165 : vector<8x8x128xf32>
    %167 = vector.extract_strided_slice %53 {offsets = [0, 3, 0], sizes = [12, 1, 128], strides = [1, 1, 1]} : vector<12x8x128xf32> to vector<12x1x128xf32>
    %168 = vector.shape_cast %167 : vector<12x1x128xf32> to vector<12x1x128xf32>
    %169 = vector.broadcast %168 : vector<12x1x128xf32> to vector<12x8x128xf32>
    %170 = vector.extract_strided_slice %169 {offsets = [0, 0, 0], sizes = [8, 8, 128], strides = [1, 1, 1]} : vector<12x8x128xf32> to vector<8x8x128xf32>
    %c9 = arith.constant 9 : index
    %c0_48 = arith.constant 0 : index
    %c0_49 = arith.constant 0 : index
    %171 = vector.load %arg1[%c9, %c0_48, %c0_49] : memref<47x8x128xf32, #tpu.memory_space<vmem>>, vector<1x8x128xf32>
    %172 = vector.shape_cast %171 : vector<1x8x128xf32> to vector<8x128xf32>
    %173 = vector.shape_cast %172 : vector<8x128xf32> to vector<1x8x128xf32>
    %174 = vector.broadcast %173 : vector<1x8x128xf32> to vector<8x8x128xf32>
    %175 = arith.mulf %170, %174 : vector<8x8x128xf32>
    %176 = arith.addf %166, %175 : vector<8x8x128xf32>
    %177 = vector.extract_strided_slice %169 {offsets = [1, 0, 0], sizes = [8, 8, 128], strides = [1, 1, 1]} : vector<12x8x128xf32> to vector<8x8x128xf32>
    %c17 = arith.constant 17 : index
    %c0_50 = arith.constant 0 : index
    %c0_51 = arith.constant 0 : index
    %178 = vector.load %arg1[%c17, %c0_50, %c0_51] : memref<47x8x128xf32, #tpu.memory_space<vmem>>, vector<1x8x128xf32>
    %179 = vector.shape_cast %178 : vector<1x8x128xf32> to vector<8x128xf32>
    %180 = vector.shape_cast %179 : vector<8x128xf32> to vector<1x8x128xf32>
    %181 = vector.broadcast %180 : vector<1x8x128xf32> to vector<8x8x128xf32>
    %182 = arith.mulf %177, %181 : vector<8x8x128xf32>
    %183 = arith.addf %176, %182 : vector<8x8x128xf32>
    %184 = vector.extract_strided_slice %169 {offsets = [2, 0, 0], sizes = [8, 8, 128], strides = [1, 1, 1]} : vector<12x8x128xf32> to vector<8x8x128xf32>
    %c25 = arith.constant 25 : index
    %c0_52 = arith.constant 0 : index
    %c0_53 = arith.constant 0 : index
    %185 = vector.load %arg1[%c25, %c0_52, %c0_53] : memref<47x8x128xf32, #tpu.memory_space<vmem>>, vector<1x8x128xf32>
    %186 = vector.shape_cast %185 : vector<1x8x128xf32> to vector<8x128xf32>
    %187 = vector.shape_cast %186 : vector<8x128xf32> to vector<1x8x128xf32>
    %188 = vector.broadcast %187 : vector<1x8x128xf32> to vector<8x8x128xf32>
    %189 = arith.mulf %184, %188 : vector<8x8x128xf32>
    %190 = arith.addf %183, %189 : vector<8x8x128xf32>
    %191 = vector.extract_strided_slice %169 {offsets = [3, 0, 0], sizes = [8, 8, 128], strides = [1, 1, 1]} : vector<12x8x128xf32> to vector<8x8x128xf32>
    %c33 = arith.constant 33 : index
    %c0_54 = arith.constant 0 : index
    %c0_55 = arith.constant 0 : index
    %192 = vector.load %arg1[%c33, %c0_54, %c0_55] : memref<47x8x128xf32, #tpu.memory_space<vmem>>, vector<1x8x128xf32>
    %193 = vector.shape_cast %192 : vector<1x8x128xf32> to vector<8x128xf32>
    %194 = vector.shape_cast %193 : vector<8x128xf32> to vector<1x8x128xf32>
    %195 = vector.broadcast %194 : vector<1x8x128xf32> to vector<8x8x128xf32>
    %196 = arith.mulf %191, %195 : vector<8x8x128xf32>
    %197 = arith.addf %190, %196 : vector<8x8x128xf32>
    %198 = vector.extract_strided_slice %169 {offsets = [4, 0, 0], sizes = [8, 8, 128], strides = [1, 1, 1]} : vector<12x8x128xf32> to vector<8x8x128xf32>
    %c41 = arith.constant 41 : index
    %c0_56 = arith.constant 0 : index
    %c0_57 = arith.constant 0 : index
    %199 = vector.load %arg1[%c41, %c0_56, %c0_57] : memref<47x8x128xf32, #tpu.memory_space<vmem>>, vector<1x8x128xf32>
    %200 = vector.shape_cast %199 : vector<1x8x128xf32> to vector<8x128xf32>
    %201 = vector.shape_cast %200 : vector<8x128xf32> to vector<1x8x128xf32>
    %202 = vector.broadcast %201 : vector<1x8x128xf32> to vector<8x8x128xf32>
    %203 = arith.mulf %198, %202 : vector<8x8x128xf32>
    %204 = arith.addf %197, %203 : vector<8x8x128xf32>
    %205 = vector.extract_strided_slice %53 {offsets = [0, 4, 0], sizes = [12, 1, 128], strides = [1, 1, 1]} : vector<12x8x128xf32> to vector<12x1x128xf32>
    %206 = vector.shape_cast %205 : vector<12x1x128xf32> to vector<12x1x128xf32>
    %207 = vector.broadcast %206 : vector<12x1x128xf32> to vector<12x8x128xf32>
    %208 = vector.extract_strided_slice %207 {offsets = [0, 0, 0], sizes = [8, 8, 128], strides = [1, 1, 1]} : vector<12x8x128xf32> to vector<8x8x128xf32>
    %c10 = arith.constant 10 : index
    %c0_58 = arith.constant 0 : index
    %c0_59 = arith.constant 0 : index
    %209 = vector.load %arg1[%c10, %c0_58, %c0_59] : memref<47x8x128xf32, #tpu.memory_space<vmem>>, vector<1x8x128xf32>
    %210 = vector.shape_cast %209 : vector<1x8x128xf32> to vector<8x128xf32>
    %211 = vector.shape_cast %210 : vector<8x128xf32> to vector<1x8x128xf32>
    %212 = vector.broadcast %211 : vector<1x8x128xf32> to vector<8x8x128xf32>
    %213 = arith.mulf %208, %212 : vector<8x8x128xf32>
    %214 = arith.addf %204, %213 : vector<8x8x128xf32>
    %215 = vector.extract_strided_slice %207 {offsets = [1, 0, 0], sizes = [8, 8, 128], strides = [1, 1, 1]} : vector<12x8x128xf32> to vector<8x8x128xf32>
    %c18 = arith.constant 18 : index
    %c0_60 = arith.constant 0 : index
    %c0_61 = arith.constant 0 : index
    %216 = vector.load %arg1[%c18, %c0_60, %c0_61] : memref<47x8x128xf32, #tpu.memory_space<vmem>>, vector<1x8x128xf32>
    %217 = vector.shape_cast %216 : vector<1x8x128xf32> to vector<8x128xf32>
    %218 = vector.shape_cast %217 : vector<8x128xf32> to vector<1x8x128xf32>
    %219 = vector.broadcast %218 : vector<1x8x128xf32> to vector<8x8x128xf32>
    %220 = arith.mulf %215, %219 : vector<8x8x128xf32>
    %221 = arith.addf %214, %220 : vector<8x8x128xf32>
    %222 = vector.extract_strided_slice %207 {offsets = [2, 0, 0], sizes = [8, 8, 128], strides = [1, 1, 1]} : vector<12x8x128xf32> to vector<8x8x128xf32>
    %c26 = arith.constant 26 : index
    %c0_62 = arith.constant 0 : index
    %c0_63 = arith.constant 0 : index
    %223 = vector.load %arg1[%c26, %c0_62, %c0_63] : memref<47x8x128xf32, #tpu.memory_space<vmem>>, vector<1x8x128xf32>
    %224 = vector.shape_cast %223 : vector<1x8x128xf32> to vector<8x128xf32>
    %225 = vector.shape_cast %224 : vector<8x128xf32> to vector<1x8x128xf32>
    %226 = vector.broadcast %225 : vector<1x8x128xf32> to vector<8x8x128xf32>
    %227 = arith.mulf %222, %226 : vector<8x8x128xf32>
    %228 = arith.addf %221, %227 : vector<8x8x128xf32>
    %229 = vector.extract_strided_slice %207 {offsets = [3, 0, 0], sizes = [8, 8, 128], strides = [1, 1, 1]} : vector<12x8x128xf32> to vector<8x8x128xf32>
    %c34 = arith.constant 34 : index
    %c0_64 = arith.constant 0 : index
    %c0_65 = arith.constant 0 : index
    %230 = vector.load %arg1[%c34, %c0_64, %c0_65] : memref<47x8x128xf32, #tpu.memory_space<vmem>>, vector<1x8x128xf32>
    %231 = vector.shape_cast %230 : vector<1x8x128xf32> to vector<8x128xf32>
    %232 = vector.shape_cast %231 : vector<8x128xf32> to vector<1x8x128xf32>
    %233 = vector.broadcast %232 : vector<1x8x128xf32> to vector<8x8x128xf32>
    %234 = arith.mulf %229, %233 : vector<8x8x128xf32>
    %235 = arith.addf %228, %234 : vector<8x8x128xf32>
    %236 = vector.extract_strided_slice %207 {offsets = [4, 0, 0], sizes = [8, 8, 128], strides = [1, 1, 1]} : vector<12x8x128xf32> to vector<8x8x128xf32>
    %c42 = arith.constant 42 : index
    %c0_66 = arith.constant 0 : index
    %c0_67 = arith.constant 0 : index
    %237 = vector.load %arg1[%c42, %c0_66, %c0_67] : memref<47x8x128xf32, #tpu.memory_space<vmem>>, vector<1x8x128xf32>
    %238 = vector.shape_cast %237 : vector<1x8x128xf32> to vector<8x128xf32>
    %239 = vector.shape_cast %238 : vector<8x128xf32> to vector<1x8x128xf32>
    %240 = vector.broadcast %239 : vector<1x8x128xf32> to vector<8x8x128xf32>
    %241 = arith.mulf %236, %240 : vector<8x8x128xf32>
    %242 = arith.addf %235, %241 : vector<8x8x128xf32>
    %243 = vector.extract_strided_slice %53 {offsets = [0, 5, 0], sizes = [12, 1, 128], strides = [1, 1, 1]} : vector<12x8x128xf32> to vector<12x1x128xf32>
    %244 = vector.shape_cast %243 : vector<12x1x128xf32> to vector<12x1x128xf32>
    %245 = vector.broadcast %244 : vector<12x1x128xf32> to vector<12x8x128xf32>
    %246 = vector.extract_strided_slice %245 {offsets = [0, 0, 0], sizes = [8, 8, 128], strides = [1, 1, 1]} : vector<12x8x128xf32> to vector<8x8x128xf32>
    %c11 = arith.constant 11 : index
    %c0_68 = arith.constant 0 : index
    %c0_69 = arith.constant 0 : index
    %247 = vector.load %arg1[%c11, %c0_68, %c0_69] : memref<47x8x128xf32, #tpu.memory_space<vmem>>, vector<1x8x128xf32>
    %248 = vector.shape_cast %247 : vector<1x8x128xf32> to vector<8x128xf32>
    %249 = vector.shape_cast %248 : vector<8x128xf32> to vector<1x8x128xf32>
    %250 = vector.broadcast %249 : vector<1x8x128xf32> to vector<8x8x128xf32>
    %251 = arith.mulf %246, %250 : vector<8x8x128xf32>
    %252 = arith.addf %242, %251 : vector<8x8x128xf32>
    %253 = vector.extract_strided_slice %245 {offsets = [1, 0, 0], sizes = [8, 8, 128], strides = [1, 1, 1]} : vector<12x8x128xf32> to vector<8x8x128xf32>
    %c19 = arith.constant 19 : index
    %c0_70 = arith.constant 0 : index
    %c0_71 = arith.constant 0 : index
    %254 = vector.load %arg1[%c19, %c0_70, %c0_71] : memref<47x8x128xf32, #tpu.memory_space<vmem>>, vector<1x8x128xf32>
    %255 = vector.shape_cast %254 : vector<1x8x128xf32> to vector<8x128xf32>
    %256 = vector.shape_cast %255 : vector<8x128xf32> to vector<1x8x128xf32>
    %257 = vector.broadcast %256 : vector<1x8x128xf32> to vector<8x8x128xf32>
    %258 = arith.mulf %253, %257 : vector<8x8x128xf32>
    %259 = arith.addf %252, %258 : vector<8x8x128xf32>
    %260 = vector.extract_strided_slice %245 {offsets = [2, 0, 0], sizes = [8, 8, 128], strides = [1, 1, 1]} : vector<12x8x128xf32> to vector<8x8x128xf32>
    %c27 = arith.constant 27 : index
    %c0_72 = arith.constant 0 : index
    %c0_73 = arith.constant 0 : index
    %261 = vector.load %arg1[%c27, %c0_72, %c0_73] : memref<47x8x128xf32, #tpu.memory_space<vmem>>, vector<1x8x128xf32>
    %262 = vector.shape_cast %261 : vector<1x8x128xf32> to vector<8x128xf32>
    %263 = vector.shape_cast %262 : vector<8x128xf32> to vector<1x8x128xf32>
    %264 = vector.broadcast %263 : vector<1x8x128xf32> to vector<8x8x128xf32>
    %265 = arith.mulf %260, %264 : vector<8x8x128xf32>
    %266 = arith.addf %259, %265 : vector<8x8x128xf32>
    %267 = vector.extract_strided_slice %245 {offsets = [3, 0, 0], sizes = [8, 8, 128], strides = [1, 1, 1]} : vector<12x8x128xf32> to vector<8x8x128xf32>
    %c35 = arith.constant 35 : index
    %c0_74 = arith.constant 0 : index
    %c0_75 = arith.constant 0 : index
    %268 = vector.load %arg1[%c35, %c0_74, %c0_75] : memref<47x8x128xf32, #tpu.memory_space<vmem>>, vector<1x8x128xf32>
    %269 = vector.shape_cast %268 : vector<1x8x128xf32> to vector<8x128xf32>
    %270 = vector.shape_cast %269 : vector<8x128xf32> to vector<1x8x128xf32>
    %271 = vector.broadcast %270 : vector<1x8x128xf32> to vector<8x8x128xf32>
    %272 = arith.mulf %267, %271 : vector<8x8x128xf32>
    %273 = arith.addf %266, %272 : vector<8x8x128xf32>
    %274 = vector.extract_strided_slice %245 {offsets = [4, 0, 0], sizes = [8, 8, 128], strides = [1, 1, 1]} : vector<12x8x128xf32> to vector<8x8x128xf32>
    %c43 = arith.constant 43 : index
    %c0_76 = arith.constant 0 : index
    %c0_77 = arith.constant 0 : index
    %275 = vector.load %arg1[%c43, %c0_76, %c0_77] : memref<47x8x128xf32, #tpu.memory_space<vmem>>, vector<1x8x128xf32>
    %276 = vector.shape_cast %275 : vector<1x8x128xf32> to vector<8x128xf32>
    %277 = vector.shape_cast %276 : vector<8x128xf32> to vector<1x8x128xf32>
    %278 = vector.broadcast %277 : vector<1x8x128xf32> to vector<8x8x128xf32>
    %279 = arith.mulf %274, %278 : vector<8x8x128xf32>
    %280 = arith.addf %273, %279 : vector<8x8x128xf32>
    %281 = vector.extract_strided_slice %53 {offsets = [0, 6, 0], sizes = [12, 1, 128], strides = [1, 1, 1]} : vector<12x8x128xf32> to vector<12x1x128xf32>
    %282 = vector.shape_cast %281 : vector<12x1x128xf32> to vector<12x1x128xf32>
    %283 = vector.broadcast %282 : vector<12x1x128xf32> to vector<12x8x128xf32>
    %284 = vector.extract_strided_slice %283 {offsets = [0, 0, 0], sizes = [8, 8, 128], strides = [1, 1, 1]} : vector<12x8x128xf32> to vector<8x8x128xf32>
    %c12 = arith.constant 12 : index
    %c0_78 = arith.constant 0 : index
    %c0_79 = arith.constant 0 : index
    %285 = vector.load %arg1[%c12, %c0_78, %c0_79] : memref<47x8x128xf32, #tpu.memory_space<vmem>>, vector<1x8x128xf32>
    %286 = vector.shape_cast %285 : vector<1x8x128xf32> to vector<8x128xf32>
    %287 = vector.shape_cast %286 : vector<8x128xf32> to vector<1x8x128xf32>
    %288 = vector.broadcast %287 : vector<1x8x128xf32> to vector<8x8x128xf32>
    %289 = arith.mulf %284, %288 : vector<8x8x128xf32>
    %290 = arith.addf %280, %289 : vector<8x8x128xf32>
    %291 = vector.extract_strided_slice %283 {offsets = [1, 0, 0], sizes = [8, 8, 128], strides = [1, 1, 1]} : vector<12x8x128xf32> to vector<8x8x128xf32>
    %c20 = arith.constant 20 : index
    %c0_80 = arith.constant 0 : index
    %c0_81 = arith.constant 0 : index
    %292 = vector.load %arg1[%c20, %c0_80, %c0_81] : memref<47x8x128xf32, #tpu.memory_space<vmem>>, vector<1x8x128xf32>
    %293 = vector.shape_cast %292 : vector<1x8x128xf32> to vector<8x128xf32>
    %294 = vector.shape_cast %293 : vector<8x128xf32> to vector<1x8x128xf32>
    %295 = vector.broadcast %294 : vector<1x8x128xf32> to vector<8x8x128xf32>
    %296 = arith.mulf %291, %295 : vector<8x8x128xf32>
    %297 = arith.addf %290, %296 : vector<8x8x128xf32>
    %298 = vector.extract_strided_slice %283 {offsets = [2, 0, 0], sizes = [8, 8, 128], strides = [1, 1, 1]} : vector<12x8x128xf32> to vector<8x8x128xf32>
    %c28 = arith.constant 28 : index
    %c0_82 = arith.constant 0 : index
    %c0_83 = arith.constant 0 : index
    %299 = vector.load %arg1[%c28, %c0_82, %c0_83] : memref<47x8x128xf32, #tpu.memory_space<vmem>>, vector<1x8x128xf32>
    %300 = vector.shape_cast %299 : vector<1x8x128xf32> to vector<8x128xf32>
    %301 = vector.shape_cast %300 : vector<8x128xf32> to vector<1x8x128xf32>
    %302 = vector.broadcast %301 : vector<1x8x128xf32> to vector<8x8x128xf32>
    %303 = arith.mulf %298, %302 : vector<8x8x128xf32>
    %304 = arith.addf %297, %303 : vector<8x8x128xf32>
    %305 = vector.extract_strided_slice %283 {offsets = [3, 0, 0], sizes = [8, 8, 128], strides = [1, 1, 1]} : vector<12x8x128xf32> to vector<8x8x128xf32>
    %c36 = arith.constant 36 : index
    %c0_84 = arith.constant 0 : index
    %c0_85 = arith.constant 0 : index
    %306 = vector.load %arg1[%c36, %c0_84, %c0_85] : memref<47x8x128xf32, #tpu.memory_space<vmem>>, vector<1x8x128xf32>
    %307 = vector.shape_cast %306 : vector<1x8x128xf32> to vector<8x128xf32>
    %308 = vector.shape_cast %307 : vector<8x128xf32> to vector<1x8x128xf32>
    %309 = vector.broadcast %308 : vector<1x8x128xf32> to vector<8x8x128xf32>
    %310 = arith.mulf %305, %309 : vector<8x8x128xf32>
    %311 = arith.addf %304, %310 : vector<8x8x128xf32>
    %312 = vector.extract_strided_slice %283 {offsets = [4, 0, 0], sizes = [8, 8, 128], strides = [1, 1, 1]} : vector<12x8x128xf32> to vector<8x8x128xf32>
    %c44 = arith.constant 44 : index
    %c0_86 = arith.constant 0 : index
    %c0_87 = arith.constant 0 : index
    %313 = vector.load %arg1[%c44, %c0_86, %c0_87] : memref<47x8x128xf32, #tpu.memory_space<vmem>>, vector<1x8x128xf32>
    %314 = vector.shape_cast %313 : vector<1x8x128xf32> to vector<8x128xf32>
    %315 = vector.shape_cast %314 : vector<8x128xf32> to vector<1x8x128xf32>
    %316 = vector.broadcast %315 : vector<1x8x128xf32> to vector<8x8x128xf32>
    %317 = arith.mulf %312, %316 : vector<8x8x128xf32>
    %318 = arith.addf %311, %317 : vector<8x8x128xf32>
    %319 = vector.extract_strided_slice %53 {offsets = [0, 7, 0], sizes = [12, 1, 128], strides = [1, 1, 1]} : vector<12x8x128xf32> to vector<12x1x128xf32>
    %320 = vector.shape_cast %319 : vector<12x1x128xf32> to vector<12x1x128xf32>
    %321 = vector.broadcast %320 : vector<12x1x128xf32> to vector<12x8x128xf32>
    %322 = vector.extract_strided_slice %321 {offsets = [0, 0, 0], sizes = [8, 8, 128], strides = [1, 1, 1]} : vector<12x8x128xf32> to vector<8x8x128xf32>
    %c13 = arith.constant 13 : index
    %c0_88 = arith.constant 0 : index
    %c0_89 = arith.constant 0 : index
    %323 = vector.load %arg1[%c13, %c0_88, %c0_89] : memref<47x8x128xf32, #tpu.memory_space<vmem>>, vector<1x8x128xf32>
    %324 = vector.shape_cast %323 : vector<1x8x128xf32> to vector<8x128xf32>
    %325 = vector.shape_cast %324 : vector<8x128xf32> to vector<1x8x128xf32>
    %326 = vector.broadcast %325 : vector<1x8x128xf32> to vector<8x8x128xf32>
    %327 = arith.mulf %322, %326 : vector<8x8x128xf32>
    %328 = arith.addf %318, %327 : vector<8x8x128xf32>
    %329 = vector.extract_strided_slice %321 {offsets = [1, 0, 0], sizes = [8, 8, 128], strides = [1, 1, 1]} : vector<12x8x128xf32> to vector<8x8x128xf32>
    %c21 = arith.constant 21 : index
    %c0_90 = arith.constant 0 : index
    %c0_91 = arith.constant 0 : index
    %330 = vector.load %arg1[%c21, %c0_90, %c0_91] : memref<47x8x128xf32, #tpu.memory_space<vmem>>, vector<1x8x128xf32>
    %331 = vector.shape_cast %330 : vector<1x8x128xf32> to vector<8x128xf32>
    %332 = vector.shape_cast %331 : vector<8x128xf32> to vector<1x8x128xf32>
    %333 = vector.broadcast %332 : vector<1x8x128xf32> to vector<8x8x128xf32>
    %334 = arith.mulf %329, %333 : vector<8x8x128xf32>
    %335 = arith.addf %328, %334 : vector<8x8x128xf32>
    %336 = vector.extract_strided_slice %321 {offsets = [2, 0, 0], sizes = [8, 8, 128], strides = [1, 1, 1]} : vector<12x8x128xf32> to vector<8x8x128xf32>
    %c29 = arith.constant 29 : index
    %c0_92 = arith.constant 0 : index
    %c0_93 = arith.constant 0 : index
    %337 = vector.load %arg1[%c29, %c0_92, %c0_93] : memref<47x8x128xf32, #tpu.memory_space<vmem>>, vector<1x8x128xf32>
    %338 = vector.shape_cast %337 : vector<1x8x128xf32> to vector<8x128xf32>
    %339 = vector.shape_cast %338 : vector<8x128xf32> to vector<1x8x128xf32>
    %340 = vector.broadcast %339 : vector<1x8x128xf32> to vector<8x8x128xf32>
    %341 = arith.mulf %336, %340 : vector<8x8x128xf32>
    %342 = arith.addf %335, %341 : vector<8x8x128xf32>
    %343 = vector.extract_strided_slice %321 {offsets = [3, 0, 0], sizes = [8, 8, 128], strides = [1, 1, 1]} : vector<12x8x128xf32> to vector<8x8x128xf32>
    %c37 = arith.constant 37 : index
    %c0_94 = arith.constant 0 : index
    %c0_95 = arith.constant 0 : index
    %344 = vector.load %arg1[%c37, %c0_94, %c0_95] : memref<47x8x128xf32, #tpu.memory_space<vmem>>, vector<1x8x128xf32>
    %345 = vector.shape_cast %344 : vector<1x8x128xf32> to vector<8x128xf32>
    %346 = vector.shape_cast %345 : vector<8x128xf32> to vector<1x8x128xf32>
    %347 = vector.broadcast %346 : vector<1x8x128xf32> to vector<8x8x128xf32>
    %348 = arith.mulf %343, %347 : vector<8x8x128xf32>
    %349 = arith.addf %342, %348 : vector<8x8x128xf32>
    %350 = vector.extract_strided_slice %321 {offsets = [4, 0, 0], sizes = [8, 8, 128], strides = [1, 1, 1]} : vector<12x8x128xf32> to vector<8x8x128xf32>
    %c45 = arith.constant 45 : index
    %c0_96 = arith.constant 0 : index
    %c0_97 = arith.constant 0 : index
    %351 = vector.load %arg1[%c45, %c0_96, %c0_97] : memref<47x8x128xf32, #tpu.memory_space<vmem>>, vector<1x8x128xf32>
    %352 = vector.shape_cast %351 : vector<1x8x128xf32> to vector<8x128xf32>
    %353 = vector.shape_cast %352 : vector<8x128xf32> to vector<1x8x128xf32>
    %354 = vector.broadcast %353 : vector<1x8x128xf32> to vector<8x8x128xf32>
    %355 = arith.mulf %350, %354 : vector<8x8x128xf32>
    %356 = arith.addf %349, %355 : vector<8x8x128xf32>
    %c46 = arith.constant 46 : index
    %c0_98 = arith.constant 0 : index
    %c0_99 = arith.constant 0 : index
    %357 = vector.load %arg1[%c46, %c0_98, %c0_99] : memref<47x8x128xf32, #tpu.memory_space<vmem>>, vector<1x8x128xf32>
    %358 = vector.shape_cast %357 : vector<1x8x128xf32> to vector<8x128xf32>
    %359 = vector.shape_cast %358 : vector<8x128xf32> to vector<1x8x128xf32>
    %360 = vector.broadcast %359 : vector<1x8x128xf32> to vector<8x8x128xf32>
    %361 = arith.addf %356, %360 : vector<8x8x128xf32>
    %cst_100 = arith.constant 0.000000e+00 : f32
    %362 = vector.broadcast %cst_100 : f32 to vector<8x8x128xf32>
    %363 = arith.maximumf %361, %362 : vector<8x8x128xf32>
    %364 = vector.shape_cast %363 : vector<8x8x128xf32> to vector<2x4x8x128xf32>
    %cst_101 = arith.constant dense<0.000000e+00> : vector<2x8x128xf32>
    %365 = vector.multi_reduction <add>, %364, %cst_101 [1] : vector<2x4x8x128xf32> to vector<2x8x128xf32>
    %cst_102 = arith.constant 4.000000e+00 : f32
    %366 = vector.broadcast %cst_102 : f32 to vector<2x8x128xf32>
    %367 = arith.divf %365, %366 : vector<2x8x128xf32>
    %368 = vector.extract_strided_slice %367 {offsets = [0, 0, 0], sizes = [1, 1, 128], strides = [1, 1, 1]} : vector<2x8x128xf32> to vector<1x1x128xf32>
    %369 = vector.shape_cast %368 : vector<1x1x128xf32> to vector<1x128xf32>
    %370 = vector.extract_strided_slice %369 {offsets = [0, 0], sizes = [1, 64], strides = [1, 1]} : vector<1x128xf32> to vector<1x64xf32>
    %c0_103 = arith.constant 0 : index
    %c0_104 = arith.constant 0 : index
    %371 = vector.load %arg7[%c0_103, %c0_104] : memref<2x1024xf32, #tpu.memory_space<vmem>>, vector<1x64xf32>
    tpu.vector_store %arg7[%c0_103, %c0_104], %370 {strides = array<i32>} : memref<2x1024xf32, #tpu.memory_space<vmem>>, vector<1x64xf32>,
    %372 = vector.extract_strided_slice %369 {offsets = [0, 64], sizes = [1, 64], strides = [1, 1]} : vector<1x128xf32> to vector<1x64xf32>
    %c1_105 = arith.constant 1 : index
    %c0_106 = arith.constant 0 : index
    %373 = vector.load %arg7[%c1_105, %c0_106] : memref<2x1024xf32, #tpu.memory_space<vmem>>, vector<1x64xf32>
    tpu.vector_store %arg7[%c1_105, %c0_106], %372 {strides = array<i32>} : memref<2x1024xf32, #tpu.memory_space<vmem>>, vector<1x64xf32>,
    %374 = vector.extract_strided_slice %367 {offsets = [0, 1, 0], sizes = [1, 1, 128], strides = [1, 1, 1]} : vector<2x8x128xf32> to vector<1x1x128xf32>
    %375 = vector.shape_cast %374 : vector<1x1x128xf32> to vector<1x128xf32>
    %376 = vector.extract_strided_slice %375 {offsets = [0, 0], sizes = [1, 64], strides = [1, 1]} : vector<1x128xf32> to vector<1x64xf32>
    %c0_107 = arith.constant 0 : index
    %c64 = arith.constant 64 : index
    %377 = vector.load %arg7[%c0_107, %c64] : memref<2x1024xf32, #tpu.memory_space<vmem>>, vector<1x64xf32>
    tpu.vector_store %arg7[%c0_107, %c64], %376 {strides = array<i32>} : memref<2x1024xf32, #tpu.memory_space<vmem>>, vector<1x64xf32>,
    %378 = vector.extract_strided_slice %375 {offsets = [0, 64], sizes = [1, 64], strides = [1, 1]} : vector<1x128xf32> to vector<1x64xf32>
    %c1_108 = arith.constant 1 : index
    %c64_109 = arith.constant 64 : index
    %379 = vector.load %arg7[%c1_108, %c64_109] : memref<2x1024xf32, #tpu.memory_space<vmem>>, vector<1x64xf32>
    tpu.vector_store %arg7[%c1_108, %c64_109], %378 {strides = array<i32>} : memref<2x1024xf32, #tpu.memory_space<vmem>>, vector<1x64xf32>,
    %380 = vector.extract_strided_slice %367 {offsets = [0, 2, 0], sizes = [1, 1, 128], strides = [1, 1, 1]} : vector<2x8x128xf32> to vector<1x1x128xf32>
    %381 = vector.shape_cast %380 : vector<1x1x128xf32> to vector<1x128xf32>
    %382 = vector.extract_strided_slice %381 {offsets = [0, 0], sizes = [1, 64], strides = [1, 1]} : vector<1x128xf32> to vector<1x64xf32>
    %c0_110 = arith.constant 0 : index
    %c128 = arith.constant 128 : index
    %383 = vector.load %arg7[%c0_110, %c128] : memref<2x1024xf32, #tpu.memory_space<vmem>>, vector<1x64xf32>
    tpu.vector_store %arg7[%c0_110, %c128], %382 {strides = array<i32>} : memref<2x1024xf32, #tpu.memory_space<vmem>>, vector<1x64xf32>,
    %384 = vector.extract_strided_slice %381 {offsets = [0, 64], sizes = [1, 64], strides = [1, 1]} : vector<1x128xf32> to vector<1x64xf32>
    %c1_111 = arith.constant 1 : index
    %c128_112 = arith.constant 128 : index
    %385 = vector.load %arg7[%c1_111, %c128_112] : memref<2x1024xf32, #tpu.memory_space<vmem>>, vector<1x64xf32>
    tpu.vector_store %arg7[%c1_111, %c128_112], %384 {strides = array<i32>} : memref<2x1024xf32, #tpu.memory_space<vmem>>, vector<1x64xf32>,
    %386 = vector.extract_strided_slice %367 {offsets = [0, 3, 0], sizes = [1, 1, 128], strides = [1, 1, 1]} : vector<2x8x128xf32> to vector<1x1x128xf32>
    %387 = vector.shape_cast %386 : vector<1x1x128xf32> to vector<1x128xf32>
    %388 = vector.extract_strided_slice %387 {offsets = [0, 0], sizes = [1, 64], strides = [1, 1]} : vector<1x128xf32> to vector<1x64xf32>
    %c0_113 = arith.constant 0 : index
    %c192 = arith.constant 192 : index
    %389 = vector.load %arg7[%c0_113, %c192] : memref<2x1024xf32, #tpu.memory_space<vmem>>, vector<1x64xf32>
    tpu.vector_store %arg7[%c0_113, %c192], %388 {strides = array<i32>} : memref<2x1024xf32, #tpu.memory_space<vmem>>, vector<1x64xf32>,
    %390 = vector.extract_strided_slice %387 {offsets = [0, 64], sizes = [1, 64], strides = [1, 1]} : vector<1x128xf32> to vector<1x64xf32>
    %c1_114 = arith.constant 1 : index
    %c192_115 = arith.constant 192 : index
    %391 = vector.load %arg7[%c1_114, %c192_115] : memref<2x1024xf32, #tpu.memory_space<vmem>>, vector<1x64xf32>
    tpu.vector_store %arg7[%c1_114, %c192_115], %390 {strides = array<i32>} : memref<2x1024xf32, #tpu.memory_space<vmem>>, vector<1x64xf32>,
    %392 = vector.extract_strided_slice %367 {offsets = [0, 4, 0], sizes = [1, 1, 128], strides = [1, 1, 1]} : vector<2x8x128xf32> to vector<1x1x128xf32>
    %393 = vector.shape_cast %392 : vector<1x1x128xf32> to vector<1x128xf32>
    %394 = vector.extract_strided_slice %393 {offsets = [0, 0], sizes = [1, 64], strides = [1, 1]} : vector<1x128xf32> to vector<1x64xf32>
    %c0_116 = arith.constant 0 : index
    %c256 = arith.constant 256 : index
    %395 = vector.load %arg7[%c0_116, %c256] : memref<2x1024xf32, #tpu.memory_space<vmem>>, vector<1x64xf32>
    tpu.vector_store %arg7[%c0_116, %c256], %394 {strides = array<i32>} : memref<2x1024xf32, #tpu.memory_space<vmem>>, vector<1x64xf32>,
    %396 = vector.extract_strided_slice %393 {offsets = [0, 64], sizes = [1, 64], strides = [1, 1]} : vector<1x128xf32> to vector<1x64xf32>
    %c1_117 = arith.constant 1 : index
    %c256_118 = arith.constant 256 : index
    %397 = vector.load %arg7[%c1_117, %c256_118] : memref<2x1024xf32, #tpu.memory_space<vmem>>, vector<1x64xf32>
    tpu.vector_store %arg7[%c1_117, %c256_118], %396 {strides = array<i32>} : memref<2x1024xf32, #tpu.memory_space<vmem>>, vector<1x64xf32>,
    %398 = vector.extract_strided_slice %367 {offsets = [0, 5, 0], sizes = [1, 1, 128], strides = [1, 1, 1]} : vector<2x8x128xf32> to vector<1x1x128xf32>
    %399 = vector.shape_cast %398 : vector<1x1x128xf32> to vector<1x128xf32>
    %400 = vector.extract_strided_slice %399 {offsets = [0, 0], sizes = [1, 64], strides = [1, 1]} : vector<1x128xf32> to vector<1x64xf32>
    %c0_119 = arith.constant 0 : index
    %c320 = arith.constant 320 : index
    %401 = vector.load %arg7[%c0_119, %c320] : memref<2x1024xf32, #tpu.memory_space<vmem>>, vector<1x64xf32>
    tpu.vector_store %arg7[%c0_119, %c320], %400 {strides = array<i32>} : memref<2x1024xf32, #tpu.memory_space<vmem>>, vector<1x64xf32>,
    %402 = vector.extract_strided_slice %399 {offsets = [0, 64], sizes = [1, 64], strides = [1, 1]} : vector<1x128xf32> to vector<1x64xf32>
    %c1_120 = arith.constant 1 : index
    %c320_121 = arith.constant 320 : index
    %403 = vector.load %arg7[%c1_120, %c320_121] : memref<2x1024xf32, #tpu.memory_space<vmem>>, vector<1x64xf32>
    tpu.vector_store %arg7[%c1_120, %c320_121], %402 {strides = array<i32>} : memref<2x1024xf32, #tpu.memory_space<vmem>>, vector<1x64xf32>,
    %404 = vector.extract_strided_slice %367 {offsets = [0, 6, 0], sizes = [1, 1, 128], strides = [1, 1, 1]} : vector<2x8x128xf32> to vector<1x1x128xf32>
    %405 = vector.shape_cast %404 : vector<1x1x128xf32> to vector<1x128xf32>
    %406 = vector.extract_strided_slice %405 {offsets = [0, 0], sizes = [1, 64], strides = [1, 1]} : vector<1x128xf32> to vector<1x64xf32>
    %c0_122 = arith.constant 0 : index
    %c384 = arith.constant 384 : index
    %407 = vector.load %arg7[%c0_122, %c384] : memref<2x1024xf32, #tpu.memory_space<vmem>>, vector<1x64xf32>
    tpu.vector_store %arg7[%c0_122, %c384], %406 {strides = array<i32>} : memref<2x1024xf32, #tpu.memory_space<vmem>>, vector<1x64xf32>,
    %408 = vector.extract_strided_slice %405 {offsets = [0, 64], sizes = [1, 64], strides = [1, 1]} : vector<1x128xf32> to vector<1x64xf32>
    %c1_123 = arith.constant 1 : index
    %c384_124 = arith.constant 384 : index
    %409 = vector.load %arg7[%c1_123, %c384_124] : memref<2x1024xf32, #tpu.memory_space<vmem>>, vector<1x64xf32>
    tpu.vector_store %arg7[%c1_123, %c384_124], %408 {strides = array<i32>} : memref<2x1024xf32, #tpu.memory_space<vmem>>, vector<1x64xf32>,
    %410 = vector.extract_strided_slice %367 {offsets = [0, 7, 0], sizes = [1, 1, 128], strides = [1, 1, 1]} : vector<2x8x128xf32> to vector<1x1x128xf32>
    %411 = vector.shape_cast %410 : vector<1x1x128xf32> to vector<1x128xf32>
    %412 = vector.extract_strided_slice %411 {offsets = [0, 0], sizes = [1, 64], strides = [1, 1]} : vector<1x128xf32> to vector<1x64xf32>
    %c0_125 = arith.constant 0 : index
    %c448 = arith.constant 448 : index
    %413 = vector.load %arg7[%c0_125, %c448] : memref<2x1024xf32, #tpu.memory_space<vmem>>, vector<1x64xf32>
    tpu.vector_store %arg7[%c0_125, %c448], %412 {strides = array<i32>} : memref<2x1024xf32, #tpu.memory_space<vmem>>, vector<1x64xf32>,
    %414 = vector.extract_strided_slice %411 {offsets = [0, 64], sizes = [1, 64], strides = [1, 1]} : vector<1x128xf32> to vector<1x64xf32>
    %c1_126 = arith.constant 1 : index
    %c448_127 = arith.constant 448 : index
    %415 = vector.load %arg7[%c1_126, %c448_127] : memref<2x1024xf32, #tpu.memory_space<vmem>>, vector<1x64xf32>
    tpu.vector_store %arg7[%c1_126, %c448_127], %414 {strides = array<i32>} : memref<2x1024xf32, #tpu.memory_space<vmem>>, vector<1x64xf32>,
    %416 = vector.extract_strided_slice %367 {offsets = [1, 0, 0], sizes = [1, 1, 128], strides = [1, 1, 1]} : vector<2x8x128xf32> to vector<1x1x128xf32>
    %417 = vector.shape_cast %416 : vector<1x1x128xf32> to vector<1x128xf32>
    %418 = vector.extract_strided_slice %417 {offsets = [0, 0], sizes = [1, 64], strides = [1, 1]} : vector<1x128xf32> to vector<1x64xf32>
    %c0_128 = arith.constant 0 : index
    %c512 = arith.constant 512 : index
    %419 = vector.load %arg7[%c0_128, %c512] : memref<2x1024xf32, #tpu.memory_space<vmem>>, vector<1x64xf32>
    tpu.vector_store %arg7[%c0_128, %c512], %418 {strides = array<i32>} : memref<2x1024xf32, #tpu.memory_space<vmem>>, vector<1x64xf32>,
    %420 = vector.extract_strided_slice %417 {offsets = [0, 64], sizes = [1, 64], strides = [1, 1]} : vector<1x128xf32> to vector<1x64xf32>
    %c1_129 = arith.constant 1 : index
    %c512_130 = arith.constant 512 : index
    %421 = vector.load %arg7[%c1_129, %c512_130] : memref<2x1024xf32, #tpu.memory_space<vmem>>, vector<1x64xf32>
    tpu.vector_store %arg7[%c1_129, %c512_130], %420 {strides = array<i32>} : memref<2x1024xf32, #tpu.memory_space<vmem>>, vector<1x64xf32>,
    %422 = vector.extract_strided_slice %367 {offsets = [1, 1, 0], sizes = [1, 1, 128], strides = [1, 1, 1]} : vector<2x8x128xf32> to vector<1x1x128xf32>
    %423 = vector.shape_cast %422 : vector<1x1x128xf32> to vector<1x128xf32>
    %424 = vector.extract_strided_slice %423 {offsets = [0, 0], sizes = [1, 64], strides = [1, 1]} : vector<1x128xf32> to vector<1x64xf32>
    %c0_131 = arith.constant 0 : index
    %c576 = arith.constant 576 : index
    %425 = vector.load %arg7[%c0_131, %c576] : memref<2x1024xf32, #tpu.memory_space<vmem>>, vector<1x64xf32>
    tpu.vector_store %arg7[%c0_131, %c576], %424 {strides = array<i32>} : memref<2x1024xf32, #tpu.memory_space<vmem>>, vector<1x64xf32>,
    %426 = vector.extract_strided_slice %423 {offsets = [0, 64], sizes = [1, 64], strides = [1, 1]} : vector<1x128xf32> to vector<1x64xf32>
    %c1_132 = arith.constant 1 : index
    %c576_133 = arith.constant 576 : index
    %427 = vector.load %arg7[%c1_132, %c576_133] : memref<2x1024xf32, #tpu.memory_space<vmem>>, vector<1x64xf32>
    tpu.vector_store %arg7[%c1_132, %c576_133], %426 {strides = array<i32>} : memref<2x1024xf32, #tpu.memory_space<vmem>>, vector<1x64xf32>,
    %428 = vector.extract_strided_slice %367 {offsets = [1, 2, 0], sizes = [1, 1, 128], strides = [1, 1, 1]} : vector<2x8x128xf32> to vector<1x1x128xf32>
    %429 = vector.shape_cast %428 : vector<1x1x128xf32> to vector<1x128xf32>
    %430 = vector.extract_strided_slice %429 {offsets = [0, 0], sizes = [1, 64], strides = [1, 1]} : vector<1x128xf32> to vector<1x64xf32>
    %c0_134 = arith.constant 0 : index
    %c640 = arith.constant 640 : index
    %431 = vector.load %arg7[%c0_134, %c640] : memref<2x1024xf32, #tpu.memory_space<vmem>>, vector<1x64xf32>
    tpu.vector_store %arg7[%c0_134, %c640], %430 {strides = array<i32>} : memref<2x1024xf32, #tpu.memory_space<vmem>>, vector<1x64xf32>,
    %432 = vector.extract_strided_slice %429 {offsets = [0, 64], sizes = [1, 64], strides = [1, 1]} : vector<1x128xf32> to vector<1x64xf32>
    %c1_135 = arith.constant 1 : index
    %c640_136 = arith.constant 640 : index
    %433 = vector.load %arg7[%c1_135, %c640_136] : memref<2x1024xf32, #tpu.memory_space<vmem>>, vector<1x64xf32>
    tpu.vector_store %arg7[%c1_135, %c640_136], %432 {strides = array<i32>} : memref<2x1024xf32, #tpu.memory_space<vmem>>, vector<1x64xf32>,
    %434 = vector.extract_strided_slice %367 {offsets = [1, 3, 0], sizes = [1, 1, 128], strides = [1, 1, 1]} : vector<2x8x128xf32> to vector<1x1x128xf32>
    %435 = vector.shape_cast %434 : vector<1x1x128xf32> to vector<1x128xf32>
    %436 = vector.extract_strided_slice %435 {offsets = [0, 0], sizes = [1, 64], strides = [1, 1]} : vector<1x128xf32> to vector<1x64xf32>
    %c0_137 = arith.constant 0 : index
    %c704 = arith.constant 704 : index
    %437 = vector.load %arg7[%c0_137, %c704] : memref<2x1024xf32, #tpu.memory_space<vmem>>, vector<1x64xf32>
    tpu.vector_store %arg7[%c0_137, %c704], %436 {strides = array<i32>} : memref<2x1024xf32, #tpu.memory_space<vmem>>, vector<1x64xf32>,
    %438 = vector.extract_strided_slice %435 {offsets = [0, 64], sizes = [1, 64], strides = [1, 1]} : vector<1x128xf32> to vector<1x64xf32>
    %c1_138 = arith.constant 1 : index
    %c704_139 = arith.constant 704 : index
    %439 = vector.load %arg7[%c1_138, %c704_139] : memref<2x1024xf32, #tpu.memory_space<vmem>>, vector<1x64xf32>
    tpu.vector_store %arg7[%c1_138, %c704_139], %438 {strides = array<i32>} : memref<2x1024xf32, #tpu.memory_space<vmem>>, vector<1x64xf32>,
    %440 = vector.extract_strided_slice %367 {offsets = [1, 4, 0], sizes = [1, 1, 128], strides = [1, 1, 1]} : vector<2x8x128xf32> to vector<1x1x128xf32>
    %441 = vector.shape_cast %440 : vector<1x1x128xf32> to vector<1x128xf32>
    %442 = vector.extract_strided_slice %441 {offsets = [0, 0], sizes = [1, 64], strides = [1, 1]} : vector<1x128xf32> to vector<1x64xf32>
    %c0_140 = arith.constant 0 : index
    %c768 = arith.constant 768 : index
    %443 = vector.load %arg7[%c0_140, %c768] : memref<2x1024xf32, #tpu.memory_space<vmem>>, vector<1x64xf32>
    tpu.vector_store %arg7[%c0_140, %c768], %442 {strides = array<i32>} : memref<2x1024xf32, #tpu.memory_space<vmem>>, vector<1x64xf32>,
    %444 = vector.extract_strided_slice %441 {offsets = [0, 64], sizes = [1, 64], strides = [1, 1]} : vector<1x128xf32> to vector<1x64xf32>
    %c1_141 = arith.constant 1 : index
    %c768_142 = arith.constant 768 : index
    %445 = vector.load %arg7[%c1_141, %c768_142] : memref<2x1024xf32, #tpu.memory_space<vmem>>, vector<1x64xf32>
    tpu.vector_store %arg7[%c1_141, %c768_142], %444 {strides = array<i32>} : memref<2x1024xf32, #tpu.memory_space<vmem>>, vector<1x64xf32>,
    %446 = vector.extract_strided_slice %367 {offsets = [1, 5, 0], sizes = [1, 1, 128], strides = [1, 1, 1]} : vector<2x8x128xf32> to vector<1x1x128xf32>
    %447 = vector.shape_cast %446 : vector<1x1x128xf32> to vector<1x128xf32>
    %448 = vector.extract_strided_slice %447 {offsets = [0, 0], sizes = [1, 64], strides = [1, 1]} : vector<1x128xf32> to vector<1x64xf32>
    %c0_143 = arith.constant 0 : index
    %c832 = arith.constant 832 : index
    %449 = vector.load %arg7[%c0_143, %c832] : memref<2x1024xf32, #tpu.memory_space<vmem>>, vector<1x64xf32>
    tpu.vector_store %arg7[%c0_143, %c832], %448 {strides = array<i32>} : memref<2x1024xf32, #tpu.memory_space<vmem>>, vector<1x64xf32>,
    %450 = vector.extract_strided_slice %447 {offsets = [0, 64], sizes = [1, 64], strides = [1, 1]} : vector<1x128xf32> to vector<1x64xf32>
    %c1_144 = arith.constant 1 : index
    %c832_145 = arith.constant 832 : index
    %451 = vector.load %arg7[%c1_144, %c832_145] : memref<2x1024xf32, #tpu.memory_space<vmem>>, vector<1x64xf32>
    tpu.vector_store %arg7[%c1_144, %c832_145], %450 {strides = array<i32>} : memref<2x1024xf32, #tpu.memory_space<vmem>>, vector<1x64xf32>,
    %452 = vector.extract_strided_slice %367 {offsets = [1, 6, 0], sizes = [1, 1, 128], strides = [1, 1, 1]} : vector<2x8x128xf32> to vector<1x1x128xf32>
    %453 = vector.shape_cast %452 : vector<1x1x128xf32> to vector<1x128xf32>
    %454 = vector.extract_strided_slice %453 {offsets = [0, 0], sizes = [1, 64], strides = [1, 1]} : vector<1x128xf32> to vector<1x64xf32>
    %c0_146 = arith.constant 0 : index
    %c896 = arith.constant 896 : index
    %455 = vector.load %arg7[%c0_146, %c896] : memref<2x1024xf32, #tpu.memory_space<vmem>>, vector<1x64xf32>
    tpu.vector_store %arg7[%c0_146, %c896], %454 {strides = array<i32>} : memref<2x1024xf32, #tpu.memory_space<vmem>>, vector<1x64xf32>,
    %456 = vector.extract_strided_slice %453 {offsets = [0, 64], sizes = [1, 64], strides = [1, 1]} : vector<1x128xf32> to vector<1x64xf32>
    %c1_147 = arith.constant 1 : index
    %c896_148 = arith.constant 896 : index
    %457 = vector.load %arg7[%c1_147, %c896_148] : memref<2x1024xf32, #tpu.memory_space<vmem>>, vector<1x64xf32>
    tpu.vector_store %arg7[%c1_147, %c896_148], %456 {strides = array<i32>} : memref<2x1024xf32, #tpu.memory_space<vmem>>, vector<1x64xf32>,
    %458 = vector.extract_strided_slice %367 {offsets = [1, 7, 0], sizes = [1, 1, 128], strides = [1, 1, 1]} : vector<2x8x128xf32> to vector<1x1x128xf32>
    %459 = vector.shape_cast %458 : vector<1x1x128xf32> to vector<1x128xf32>
    %460 = vector.extract_strided_slice %459 {offsets = [0, 0], sizes = [1, 64], strides = [1, 1]} : vector<1x128xf32> to vector<1x64xf32>
    %c0_149 = arith.constant 0 : index
    %c960 = arith.constant 960 : index
    %461 = vector.load %arg7[%c0_149, %c960] : memref<2x1024xf32, #tpu.memory_space<vmem>>, vector<1x64xf32>
    tpu.vector_store %arg7[%c0_149, %c960], %460 {strides = array<i32>} : memref<2x1024xf32, #tpu.memory_space<vmem>>, vector<1x64xf32>,
    %462 = vector.extract_strided_slice %459 {offsets = [0, 64], sizes = [1, 64], strides = [1, 1]} : vector<1x128xf32> to vector<1x64xf32>
    %c1_150 = arith.constant 1 : index
    %c960_151 = arith.constant 960 : index
    %463 = vector.load %arg7[%c1_150, %c960_151] : memref<2x1024xf32, #tpu.memory_space<vmem>>, vector<1x64xf32>
    tpu.vector_store %arg7[%c1_150, %c960_151], %462 {strides = array<i32>} : memref<2x1024xf32, #tpu.memory_space<vmem>>, vector<1x64xf32>,
    %c0_152 = arith.constant 0 : index
    %c0_153 = arith.constant 0 : index
    %464 = vector.load %arg7[%c0_152, %c0_153] : memref<2x1024xf32, #tpu.memory_space<vmem>>, vector<2x1024xf32>
    %465 = arith.truncf %464 : vector<2x1024xf32> to vector<2x1024xbf16>
    %c0_i32_154 = arith.constant 0 : i32
    %466 = tpu.memref_slice %arg10[%c0_i32_154] : memref<2x!tpu.dma_semaphore, #tpu.memory_space<semaphore_mem>> -> memref<1x!tpu.dma_semaphore, #tpu.memory_space<semaphore_mem>>
    %467 = tpu.memref_squeeze %466 : memref<1x!tpu.dma_semaphore, #tpu.memory_space<semaphore_mem>> -> memref<!tpu.dma_semaphore, #tpu.memory_space<semaphore_mem>>
    tpu.wait_dma2 semaphore(%467 : memref<!tpu.dma_semaphore, #tpu.memory_space<semaphore_mem>>) src(%arg3 : memref<1024x256xbf16, #tpu.memory_space<any>>) dst(%arg8 : memref<1024x256xbf16, #tpu.memory_space<vmem>>)
    %c0_155 = arith.constant 0 : index
    %c0_156 = arith.constant 0 : index
    %468 = vector.load %arg8[%c0_155, %c0_156] : memref<1024x256xbf16, #tpu.memory_space<vmem>>, vector<1024x256xbf16>
    %cst_157 = arith.constant dense<0.000000e+00> : vector<2x256xf32>
    %469 = tpu.matmul %465, %468, %cst_157 {dimension_numbers = #tpu.dot_dimension_numbers<[1], [0], [0], [1], [0, 0, 1, 1], [], []>} : vector<2x1024xbf16>, vector<1024x256xbf16>, vector<2x256xf32> -> vector<2x256xf32>
    %c0_158 = arith.constant 0 : index
    %c0_159 = arith.constant 0 : index
    %470 = vector.load %arg2[%c0_158, %c0_159] : memref<1x389xf32, #tpu.memory_space<vmem>>, vector<1x256xf32>
    %471 = vector.broadcast %470 : vector<1x256xf32> to vector<2x256xf32>
    %472 = arith.addf %469, %471 : vector<2x256xf32>
    %cst_160 = arith.constant 0.000000e+00 : f32
    %473 = vector.broadcast %cst_160 : f32 to vector<2x256xf32>
    %474 = arith.maximumf %472, %473 : vector<2x256xf32>
    %c1_i32_161 = arith.constant 1 : i32
    %475 = tpu.memref_slice %arg10[%c1_i32_161] : memref<2x!tpu.dma_semaphore, #tpu.memory_space<semaphore_mem>> -> memref<1x!tpu.dma_semaphore, #tpu.memory_space<semaphore_mem>>
    %476 = tpu.memref_squeeze %475 : memref<1x!tpu.dma_semaphore, #tpu.memory_space<semaphore_mem>> -> memref<!tpu.dma_semaphore, #tpu.memory_space<semaphore_mem>>
    tpu.wait_dma2 semaphore(%476 : memref<!tpu.dma_semaphore, #tpu.memory_space<semaphore_mem>>) src(%arg4 : memref<256x128xbf16, #tpu.memory_space<any>>) dst(%arg9 : memref<256x128xbf16, #tpu.memory_space<vmem>>)
    %477 = arith.truncf %474 : vector<2x256xf32> to vector<2x256xbf16>
    %c0_162 = arith.constant 0 : index
    %c0_163 = arith.constant 0 : index
    %478 = vector.load %arg9[%c0_162, %c0_163] : memref<256x128xbf16, #tpu.memory_space<vmem>>, vector<256x128xbf16>
    %cst_164 = arith.constant dense<0.000000e+00> : vector<2x128xf32>
    %479 = tpu.matmul %477, %478, %cst_164 {dimension_numbers = #tpu.dot_dimension_numbers<[1], [0], [0], [1], [0, 0, 1, 1], [], []>} : vector<2x256xbf16>, vector<256x128xbf16>, vector<2x128xf32> -> vector<2x128xf32>
    %c0_165 = arith.constant 0 : index
    %c256_166 = arith.constant 256 : index
    %480 = vector.load %arg2[%c0_165, %c256_166] : memref<1x389xf32, #tpu.memory_space<vmem>>, vector<1x128xf32>
    %481 = vector.broadcast %480 : vector<1x128xf32> to vector<2x128xf32>
    %482 = arith.addf %479, %481 : vector<2x128xf32>
    %cst_167 = arith.constant 0.000000e+00 : f32
    %483 = vector.broadcast %cst_167 : f32 to vector<2x128xf32>
    %484 = arith.maximumf %482, %483 : vector<2x128xf32>
    %485 = arith.truncf %484 : vector<2x128xf32> to vector<2x128xbf16>
    %c0_168 = arith.constant 0 : index
    %c0_169 = arith.constant 0 : index
    %486 = vector.load %arg5[%c0_168, %c0_169] : memref<128x5xbf16, #tpu.memory_space<vmem>>, vector<128x5xbf16>
    %cst_170 = arith.constant dense<0.000000e+00> : vector<2x5xf32>
    %487 = tpu.matmul %485, %486, %cst_170 {dimension_numbers = #tpu.dot_dimension_numbers<[1], [0], [0], [1], [0, 0, 1, 1], [], []>} : vector<2x128xbf16>, vector<128x5xbf16>, vector<2x5xf32> -> vector<2x5xf32>
    %c0_171 = arith.constant 0 : index
    %c384_172 = arith.constant 384 : index
    %488 = vector.load %arg2[%c0_171, %c384_172] : memref<1x389xf32, #tpu.memory_space<vmem>>, vector<1x5xf32>
    %489 = vector.broadcast %488 : vector<1x5xf32> to vector<2x5xf32>
    %490 = arith.addf %487, %489 : vector<2x5xf32>
    %c0_173 = arith.constant 0 : index
    %c0_174 = arith.constant 0 : index
    %491 = vector.load %arg6[%c0_173, %c0_174] : memref<2x5xf32, #tpu.memory_space<vmem>>, vector<2x5xf32>
    tpu.vector_store %arg6[%c0_173, %c0_174], %490 {strides = array<i32>} : memref<2x5xf32, #tpu.memory_space<vmem>>, vector<2x5xf32>,
    return
  }
}

</mosaic_0001>

<bundles_post_ra>
// kernel: mcdcnn_forward.1
= control target key start
LH: loop header
LB: loop body
LE: loop exit
PB: predicated region body
PF: predicated region fallthrough
CT: control target
= control target key end

     0   :  { %11 = vsyncpa [#allocation7], 0  ;;  %s3611_s0 = inlined_call_operand.vmem [shape: f32[16,1,128], index: 0, kind: input, shape index: {}]   ;;  %s3612_s1 = inlined_call_operand.hbm [shape: f32[47,8,128], index: 1, kind: input, shape index: {}]   ;;  %s3613_s2 = inlined_call_operand.vmem [shape: f32[1,389], index: 2, kind: input, shape index: {}]   ;;  %s3614_s3 = inlined_call_operand.hbm [shape: bf16[1024,256], index: 3, kind: input, shape index: {}]   ;;  %s3615_s4 = inlined_call_operand.vmem [shape: bf16[256,128], index: 4, kind: input, shape index: {}]   ;;  %s3616_s5 = inlined_call_operand.vmem [shape: bf16[128,5], index: 5, kind: input, shape index: {}]   ;;  %s3617_s6 = inlined_call_operand.hbm [shape: f32[2,5], index: 6, kind: output, shape index: {}]  }
   0x1   :  { %12 = vsyncpa [#allocation8], 0  ;;  %s2327_s21 = smov [#allocation6]   ;;  %s2275_s25 = scalar_lea.hbm %s3612_s1, 6016 }
   0x2   :  { %s20_s22 = sshll.u32 %s2327_s21, 4  ;;  %p2276_p0 = scmp.ne.s32.totalorder %s3612_s1, %s2275_s25  ;;  %s21_s22 = int_to_ptr.vmem [resolvable:$true] %s20_s22 }
   0x3   :  { %p2279_p1 = scmp.lt.u32.totalorder %s2275_s25, %s3612_s1 }
   0x5   :  { %p2281_p2 = pnand %p2279_p1, %p2276_p0 }
   0x7   :  { %2284 = shalt.err (!%p2281_p2)
}
   0x8   :  { %s2285_s30 = scalar_lea.vmem %s21_s22, 6016  ;;  %p2290_p4 = scmp.lt.s32.totalorder %s21_s22, %s21_s22 }
   0x9   :  { %p2286_p3 = scmp.ne.s32.totalorder %s21_s22, %s2285_s30  ;;  %p2291_p5 = scmp.lt.s32.totalorder %s2285_s30, %s2285_s30 }
   0xb   :  { %p2292_p6 = por %p2291_p5, %p2290_p4 }
   0xd   :  { %p2293_p7 = pnand %p2292_p6, %p2286_p3 }
   0xf   :  { %2296 = shalt.err (!%p2293_p7)
}
  0x10   :  { %s2328_s7 = smov 128   ;;  %s2329_s8 = smov 8  }
  0x11   :  { %26 = dma.hbm_to_vmem [thread:$0]  %s3612_s1, 6016, %s21_s22, [#allocation7], %s2328_s7, %s2328_s7, %s2329_s8  }
  0x12   :  { %2319 = dma.done.wait [#allocation7], 6016  }
  0x13   :  { %2320 = vsyncadd [#allocation7], 4294961280  ;;  %s39_s11 = sld [smem:[#allocation0]]   ;;  %s2330_s12 = smov 256   ;;  %v419_v16 = vlaneseq }
  0x14   :  { %51 = sst [smem:[#allocation11]] %s2330_s12  ;;  %s2331_s13 = smov 2  }
  0x15   :  { %53 = sst [smem:[#allocation11 + $0x1]] %s2330_s12  ;;  %s2332_s14 = smov 64   ;;  %v2516_v27 = vshrl.u32 %v419_v16, 7 }
  0x16   :  { %55 = sst [smem:[#allocation11 + $0x2]] %s2331_s13  ;;  %s2333_s15 = smov [#allocation3]  }
  0x17   :  { %57 = sst [smem:[#allocation11 + $0x3]] %s2332_s14  ;;  %s47_s16 = sshll.u32 %s2333_s15, 4  ;;  %s48_s16 = int_to_ptr.vmem [resolvable:$true] %s47_s16 }
  0x18   :  { %59 = sst [smem:[#allocation11 + $0x4]] %s2328_s7  ;;  %s2334_s1 = smov 4  }
  0x19   :  { %61 = sst [smem:[#allocation11 + $0x5]] %s2331_s13  ;;  %s2151_s17 = sshll.u32 %s39_s11, 26 }
  0x1a   :  { %63 = sst [smem:[#allocation11 + $0x6]] %s2328_s7  ;;  %s2152_s18 = sadd.s32 134217728, %s2151_s17 }
  0x1b   :  { %65 = sst [smem:[#allocation11 + $0x7]] %s2332_s14  ;;  %s2335_s19 = smov [#allocation5]  }
  0x1c   :  { %67 = sst [smem:[#allocation11 + $0x8]] %s2334_s1  ;;  %s2336_s20 = smov [#allocation10]  }
  0x1d   :  { %69 = dma.general %s3614_s3, 16384, %s48_s16, %s2335_s19, %s2336_s20, [#allocation11], %s2152_s18, 0  }
  0x1e   :  { %v2396_v0 = vld [vmem:[%s3615_s4] sm:$0xff]  ;;  %v2401_v1 = vld [vmem:[%s3615_s4 + $0x8] sm:$0xff]  ;;  %v2406_v2 = vld [vmem:[%s3615_s4 + $0x10] sm:$0xff] }
  0x1f   :  { %3720 = vst [vmem:[#allocation17_spill] sm:$0xff] %v2396_v0  ;;  %3721 = vst [vmem:[#allocation18_spill] sm:$0xff] %v2401_v1  ;;  %v2411_v3 = vld [vmem:[%s3615_s4 + $0x18] sm:$0xff]  ;;  %v2416_v4 = vld [vmem:[%s3615_s4 + $0x20] sm:$0xff] }
  0x20   :  { %3722 = vst [vmem:[#allocation19_spill] sm:$0xff] %v2406_v2  ;;  %3723 = vst [vmem:[#allocation20_spill] sm:$0xff] %v2411_v3  ;;  %v2421_v5 = vld [vmem:[%s3615_s4 + $0x28] sm:$0xff]  ;;  %v2426_v6 = vld [vmem:[%s3615_s4 + $0x30] sm:$0xff] }
  0x21   :  { %3724 = vst [vmem:[#allocation21_spill] sm:$0xff] %v2416_v4  ;;  %3725 = vst [vmem:[#allocation22_spill] sm:$0xff] %v2421_v5  ;;  %v2431_v7 = vld [vmem:[%s3615_s4 + $0x38] sm:$0xff]  ;;  %v2436_v8 = vld [vmem:[%s3615_s4 + $0x40] sm:$0xff] }
  0x22   :  { %3726 = vst [vmem:[#allocation23_spill] sm:$0xff] %v2426_v6  ;;  %3727 = vst [vmem:[#allocation24_spill] sm:$0xff] %v2431_v7  ;;  %v2441_v9 = vld [vmem:[%s3615_s4 + $0x48] sm:$0xff]  ;;  %v2446_v10 = vld [vmem:[%s3615_s4 + $0x50] sm:$0xff] }
  0x23   :  { %3728 = vst [vmem:[#allocation25_spill] sm:$0xff] %v2436_v8  ;;  %3729 = vst [vmem:[#allocation26_spill] sm:$0xff] %v2441_v9  ;;  %v2451_v11 = vld [vmem:[%s3615_s4 + $0x58] sm:$0xff]  ;;  %v2456_v12 = vld [vmem:[%s3615_s4 + $0x60] sm:$0xff] }
  0x24   :  { %3730 = vst [vmem:[#allocation27_spill] sm:$0xff] %v2446_v10  ;;  %3731 = vst [vmem:[#allocation28_spill] sm:$0xff] %v2451_v11  ;;  %v2461_v13 = vld [vmem:[%s3615_s4 + $0x68] sm:$0xff]  ;;  %v2466_v14 = vld [vmem:[%s3615_s4 + $0x70] sm:$0xff] }
  0x25   :  { %3732 = vst [vmem:[#allocation29_spill] sm:$0xff] %v2456_v12  ;;  %3733 = vst [vmem:[#allocation30_spill] sm:$0xff] %v2461_v13  ;;  %v2471_v15 = vld [vmem:[%s3615_s4 + $0x78] sm:$0xff]  ;;  %v2153_v17 = vld [vmem:[%s3611_s0] ss:$0 sm:$0xff] }
  0x26   :  { %3734 = vst [vmem:[#allocation31_spill] sm:$0xff] %v2466_v14  ;;  %3735 = vst [vmem:[#allocation32_spill] sm:$0xff] %v2471_v15  ;;  %v2479_v18 = vld [vmem:[%s3611_s0 + $0x1] ss:$0 sm:$0xff]  ;;  %v2484_v19 = vld [vmem:[%s3611_s0 + $0x2] ss:$0 sm:$0xff] }
  0x27   :  { %v2489_v20 = vld [vmem:[%s3611_s0 + $0x3] ss:$0 sm:$0xff]  ;;  %v2494_v21 = vld [vmem:[%s3611_s0 + $0x4] ss:$0 sm:$0xff]  ;;  %v2499_v22 = vld [vmem:[%s3611_s0 + $0x5] ss:$0 sm:$0xff] }
  0x28   :  { %v2504_v23 = vld [vmem:[%s3611_s0 + $0x6] ss:$0 sm:$0xff]  ;;  %v2509_v24 = vld [vmem:[%s3611_s0 + $0x7] ss:$0 sm:$0xff]  ;;  %v2514_v25 = vld [vmem:[%s3611_s0 + $0x9] ss:$0 sm:$0xff] }
  0x29   :  { %v218_v26 = vld [vmem:[#allocation6] sm:$0xff]  ;;  %v239_v32 = vld [vmem:[#allocation6 + $0x8] sm:$0xff]  ;;  %v2523_v33 = vld [vmem:[%s3611_s0 + $0x8] ss:$0 sm:$0xff] }
  0x2a   :  { %v219_v28 = vmul.f32 0.0, %v218_v26  ;;  %v220_v29 = vmul.f32 %v2153_v17, %v218_v26  ;;  %v221_v30 = vmul.f32 %v2479_v18, %v218_v26  ;;  %v222_v31 = vmul.f32 %v2484_v19, %v218_v26  ;;  %v2532_v38 = vld [vmem:[%s3611_s0 + $0xa] ss:$0 sm:$0xff]  ;;  %v277_v55 = vld [vmem:[#allocation6 + $0x10] sm:$0xff]  ;;  %v2550_v16 = vld [vmem:[%s3611_s0 + $0xb] ss:$0 sm:$0xff] }
  0x2b   :  { %v223_v34 = vmul.f32 %v2489_v20, %v218_v26  ;;  %v224_v35 = vmul.f32 %v2494_v21, %v218_v26  ;;  %v225_v36 = vmul.f32 %v2499_v22, %v218_v26  ;;  %v226_v37 = vmul.f32 %v2504_v23, %v218_v26 }
  0x2c   :  { %v227_v39 = vmul.f32 %v2509_v24, %v218_v26  ;;  %v228_v40 = vmul.f32 %v2523_v33, %v218_v26  ;;  %v229_v41 = vmul.f32 %v2514_v25, %v218_v26  ;;  %v240_v42 = vmul.f32 0.0, %v239_v32 }
  0x2d   :  { %v241_v43 = vmul.f32 %v2153_v17, %v239_v32  ;;  %v242_v44 = vmul.f32 %v2479_v18, %v239_v32  ;;  %v243_v45 = vmul.f32 %v2484_v19, %v239_v32  ;;  %v244_v46 = vmul.f32 %v2489_v20, %v239_v32 }
  0x2e   :  { %v245_v47 = vmul.f32 %v2494_v21, %v239_v32  ;;  %v246_v48 = vmul.f32 %v2499_v22, %v239_v32  ;;  %v247_v49 = vmul.f32 %v2504_v23, %v239_v32  ;;  %v248_v50 = vmul.f32 %v2509_v24, %v239_v32 }
  0x2f   :  { %v249_v51 = vmul.f32 %v2523_v33, %v239_v32  ;;  %v250_v52 = vmul.f32 %v2514_v25, %v239_v32  ;;  %v251_v53 = vmul.f32 %v2532_v38, %v239_v32  ;;  %v256_v54 = vadd.f32 %v240_v42, %v219_v28 }
  0x30   :  { %v257_v56 = vadd.f32 %v241_v43, %v219_v28  ;;  %v258_v57 = vadd.f32 %v242_v44, %v220_v29  ;;  %v259_v58 = vadd.f32 %v243_v45, %v221_v30  ;;  %v260_v59 = vadd.f32 %v244_v46, %v222_v31 }
  0x31   :  { %v261_v60 = vadd.f32 %v245_v47, %v223_v34  ;;  %v262_v61 = vadd.f32 %v246_v48, %v224_v35  ;;  %v263_v62 = vadd.f32 %v247_v49, %v225_v36  ;;  %v264_v63 = vadd.f32 %v248_v50, %v226_v37 }
  0x32   :  { %v265_v26 = vadd.f32 %v249_v51, %v227_v39  ;;  %v266_v7 = vadd.f32 %v250_v52, %v228_v40  ;;  %v267_v15 = vadd.f32 %v251_v53, %v229_v41  ;;  %v278_v6 = vmul.f32 %v2153_v17, %v277_v55  ;;  %v311_v41 = vld [vmem:[#allocation6 + $0x18] sm:$0xff] }
  0x33   :  { %v279_v32 = vmul.f32 %v2479_v18, %v277_v55  ;;  %v280_v28 = vmul.f32 %v2484_v19, %v277_v55  ;;  %v281_v29 = vmul.f32 %v2489_v20, %v277_v55  ;;  %v282_v30 = vmul.f32 %v2494_v21, %v277_v55 }
  0x34   :  { %v283_v31 = vmul.f32 %v2499_v22, %v277_v55  ;;  %v284_v34 = vmul.f32 %v2504_v23, %v277_v55  ;;  %v285_v35 = vmul.f32 %v2509_v24, %v277_v55  ;;  %v286_v36 = vmul.f32 %v2523_v33, %v277_v55 }
  0x35   :  { %v287_v37 = vmul.f32 %v2514_v25, %v277_v55  ;;  %v288_v17 = vmul.f32 %v2532_v38, %v277_v55  ;;  %v289_v39 = vmul.f32 %v2550_v16, %v277_v55  ;;  %v294_v40 = vadd.f32 %v278_v6, %v256_v54  ;;  %v2571_v55 = vld [vmem:[%s3611_s0 + $0xc] ss:$0 sm:$0xff] }
  0x36   :  { %v295_v42 = vadd.f32 %v279_v32, %v257_v56  ;;  %v296_v43 = vadd.f32 %v280_v28, %v258_v57  ;;  %v297_v44 = vadd.f32 %v281_v29, %v259_v58  ;;  %v298_v45 = vadd.f32 %v282_v30, %v260_v59 }
  0x37   :  { %v299_v46 = vadd.f32 %v283_v31, %v261_v60  ;;  %v300_v47 = vadd.f32 %v284_v34, %v262_v61  ;;  %v301_v48 = vadd.f32 %v285_v35, %v263_v62  ;;  %v302_v49 = vadd.f32 %v286_v36, %v264_v63 }
  0x38   :  { %v303_v50 = vadd.f32 %v287_v37, %v265_v26  ;;  %v304_v51 = vadd.f32 %v288_v17, %v266_v7  ;;  %v305_v52 = vadd.f32 %v289_v39, %v267_v15  ;;  %v312_v53 = vmul.f32 %v2479_v18, %v311_v41 }
  0x39   :  { %v313_v14 = vmul.f32 %v2484_v19, %v311_v41  ;;  %v314_v5 = vmul.f32 %v2489_v20, %v311_v41  ;;  %v315_v6 = vmul.f32 %v2494_v21, %v311_v41  ;;  %v316_v54 = vmul.f32 %v2499_v22, %v311_v41 }
  0x3a   :  { %v317_v56 = vmul.f32 %v2504_v23, %v311_v41  ;;  %v318_v7 = vmul.f32 %v2509_v24, %v311_v41  ;;  %v319_v15 = vmul.f32 %v2523_v33, %v311_v41  ;;  %v320_v18 = vmul.f32 %v2514_v25, %v311_v41 }
  0x3b   :  { %142 = vsyncadd [#allocation5 + $0x1], 2048  ;;  %v321_v57 = vmul.f32 %v2532_v38, %v311_v41  ;;  %v322_v58 = vmul.f32 %v2550_v16, %v311_v41  ;;  %v323_v59 = vmul.f32 %v2571_v55, %v311_v41  ;;  %v328_v60 = vadd.f32 %v312_v53, %v294_v40  ;;  %v345_v61 = vld [vmem:[#allocation6 + $0x20] sm:$0xff] }
  0x3c   :  { %v329_v62 = vadd.f32 %v313_v14, %v295_v42  ;;  %v330_v63 = vadd.f32 %v314_v5, %v296_v43  ;;  %v331_v26 = vadd.f32 %v315_v6, %v297_v44  ;;  %v332_v32 = vadd.f32 %v316_v54, %v298_v45  ;;  %v2588_v5 = vld [vmem:[%s3611_s0 + $0xd] ss:$0 sm:$0xff]  ;;  %v2597_v44 = vld [vmem:[#allocation6 + $0x28] sm:$0xff]  ;;  %v2791_v1 = vld [vmem:[#allocation6 + $0x140] sm:$0xff] }
  0x3d   :  { %v333_v28 = vadd.f32 %v317_v56, %v299_v46  ;;  %v334_v29 = vadd.f32 %v318_v7, %v300_v47  ;;  %v335_v30 = vadd.f32 %v319_v15, %v301_v48  ;;  %v336_v31 = vadd.f32 %v320_v18, %v302_v49  ;;  %3743 = vst [vmem:[#allocation40_spill] sm:$0xff] %v2791_v1 }
  0x3e   :  { %v337_v34 = vadd.f32 %v321_v57, %v303_v50  ;;  %v338_v35 = vadd.f32 %v322_v58, %v304_v51  ;;  %v339_v36 = vadd.f32 %v323_v59, %v305_v52  ;;  %v346_v37 = vmul.f32 %v2484_v19, %v345_v61 }
  0x3f   :  { %v347_v17 = vmul.f32 %v2489_v20, %v345_v61  ;;  %v348_v39 = vmul.f32 %v2494_v21, %v345_v61  ;;  %v349_v40 = vmul.f32 %v2499_v22, %v345_v61  ;;  %v350_v14 = vmul.f32 %v2504_v23, %v345_v61 }
  0x40   :  { %v351_v41 = vmul.f32 %v2509_v24, %v345_v61  ;;  %v352_v42 = vmul.f32 %v2523_v33, %v345_v61  ;;  %v353_v43 = vmul.f32 %v2514_v25, %v345_v61  ;;  %v354_v19 = vmul.f32 %v2532_v38, %v345_v61 }
  0x41   :  { %v355_v20 = vmul.f32 %v2550_v16, %v345_v61  ;;  %v356_v21 = vmul.f32 %v2571_v55, %v345_v61  ;;  %v357_v22 = vmul.f32 %v2588_v5, %v345_v61  ;;  %v361_v23 = vadd.f32 %v346_v37, %v328_v60 }
  0x42   :  { %v362_v45 = vadd.f32 %v347_v17, %v329_v62  ;;  %v363_v46 = vadd.f32 %v348_v39, %v330_v63  ;;  %v364_v47 = vadd.f32 %v349_v40, %v331_v26  ;;  %v365_v48 = vadd.f32 %v350_v14, %v332_v32 }
  0x43   :  { %v366_v24 = vadd.f32 %v351_v41, %v333_v28  ;;  %v367_v49 = vadd.f32 %v352_v42, %v334_v29  ;;  %v368_v33 = vadd.f32 %v353_v43, %v335_v30  ;;  %v369_v50 = vadd.f32 %v354_v19, %v336_v31  ;;  %v2611_v31 = vld [vmem:[#allocation6 + $0x30] sm:$0xff] }
  0x44   :  { %v370_v25 = vadd.f32 %v355_v20, %v337_v34  ;;  %v371_v51 = vadd.f32 %v356_v21, %v338_v35  ;;  %v372_v38 = vadd.f32 %v357_v22, %v339_v36  ;;  %v379_v16 = vadd.f32 %v2597_v44, %v361_v23  ;;  %v2613_v34 = vld [vmem:[#allocation6 + $0x70] sm:$0xff] }
  0x45   :  { %v380_v52 = vadd.f32 %v2597_v44, %v362_v45  ;;  %v381_v53 = vadd.f32 %v2597_v44, %v363_v46  ;;  %v382_v6 = vadd.f32 %v2597_v44, %v364_v47  ;;  %v383_v54 = vadd.f32 %v2597_v44, %v365_v48  ;;  %v2644_v46 = vld [vmem:[#allocation6 + $0xb0] sm:$0xff] }
  0x46   :  { %v384_v56 = vadd.f32 %v2597_v44, %v366_v24  ;;  %v385_v7 = vadd.f32 %v2597_v44, %v367_v49  ;;  %v386_v15 = vadd.f32 %v2597_v44, %v368_v33  ;;  %v387_v18 = vadd.f32 %v2597_v44, %v369_v50  ;;  %v2654_v49 = vld [vmem:[#allocation6 + $0xf0] sm:$0xff] }
  0x47   :  { %v388_v57 = vadd.f32 %v2597_v44, %v370_v25  ;;  %v389_v58 = vadd.f32 %v2597_v44, %v371_v51  ;;  %v390_v59 = vadd.f32 %v2597_v44, %v372_v38  ;;  %v395_v60 = vmax.f32 %v379_v16, 0.0 }
  0x48   :  { %v396_v61 = vmax.f32 %v380_v52, 0.0  ;;  %v397_v62 = vmax.f32 %v381_v53, 0.0  ;;  %v398_v63 = vmax.f32 %v382_v6, 0.0  ;;  %v399_v26 = vmax.f32 %v383_v54, 0.0  ;;  %v2669_v54 = vld [vmem:[#allocation6 + $0x130] sm:$0xff] }
  0x49   :  { %v400_v32 = vmax.f32 %v384_v56, 0.0  ;;  %v401_v28 = vmax.f32 %v385_v7, 0.0  ;;  %v402_v29 = vmax.f32 %v386_v15, 0.0  ;;  %v403_v30 = vmax.f32 %v387_v18, 0.0 }
  0x4a   :  { %v404_v35 = vmax.f32 %v388_v57, 0.0  ;;  %v405_v36 = vmax.f32 %v389_v58, 0.0  ;;  %v406_v37 = vmax.f32 %v390_v59, 0.0  ;;  %v2615_v17 = vmax.f32 %v395_v60, %v396_v61 }
  0x4b   :  { %v2617_v39 = vmax.f32 %v397_v62, %v398_v63  ;;  %v2619_v40 = vmax.f32 %v399_v26, %v400_v32  ;;  %v2621_v14 = vmax.f32 %v401_v28, %v402_v29  ;;  %v2624_v41 = vsub.s32 0, %v2516_v27 }
  0x4c   :  { %v2626_v42 = vmax.f32 %v403_v30, %v404_v35  ;;  %v2628_v43 = vmax.f32 %v405_v36, %v406_v37  ;;  %v445_v19 = vmul.f32 0.0, %v2611_v31  ;;  %v458_v20 = vmul.f32 0.0, %v2613_v34 }
  0x4d   :  { %v422_v21 = vrot.slane %v2615_v17, %v2624_v41  ;;  %v426_v22 = vrot.slane %v2617_v39, %v2624_v41  ;;  %v2638_v23 = vrot.slane %v2619_v40, %v2624_v41  ;;  %v2642_v45 = vrot.slane %v2621_v14, %v2624_v41 }
  0x4e   :  { %v2648_v47 = vrot.slane %v2626_v42, %v2624_v41  ;;  %v2652_v48 = vrot.slane %v2628_v43, %v2624_v41  ;;  %v466_v24 = vadd.f32 %v458_v20, %v445_v19  ;;  %v2657_v33 = vsub.s32 1, %v2516_v27  ;;  %v2690_v20 = vld [vmem:[#allocation6 + $0x38] sm:$0xff] }
  0x4f   :  { %v446_v50 = vmul.f32 %v2611_v31, %v422_v21  ;;  %v447_v25 = vmul.f32 %v2611_v31, %v426_v22  ;;  %v459_v51 = vmul.f32 %v2613_v34, %v422_v21  ;;  %v460_v38 = vmul.f32 %v2613_v34, %v426_v22 }
  0x50   :  { %v461_v16 = vmul.f32 %v2613_v34, %v2638_v23  ;;  %v480_v52 = vmul.f32 %v2644_v46, %v422_v21  ;;  %v481_v53 = vmul.f32 %v2644_v46, %v426_v22  ;;  %v482_v6 = vmul.f32 %v2644_v46, %v2638_v23 }
  0x51   :  { %v467_v56 = vadd.f32 %v459_v51, %v445_v19  ;;  %v468_v7 = vadd.f32 %v460_v38, %v446_v50  ;;  %v483_v15 = vmul.f32 %v2644_v46, %v2642_v45  ;;  %v498_v18 = vmul.f32 %v2654_v49, %v426_v22 }
  0x52   :  { %v469_v57 = vadd.f32 %v461_v16, %v447_v25  ;;  %v488_v58 = vadd.f32 %v480_v52, %v466_v24  ;;  %v499_v59 = vmul.f32 %v2654_v49, %v2638_v23  ;;  %v500_v60 = vmul.f32 %v2654_v49, %v2642_v45  ;;  %v2698_v25 = vld [vmem:[#allocation6 + $0x78] sm:$0xff] }
  0x53   :  { %v489_v61 = vadd.f32 %v481_v53, %v467_v56  ;;  %v490_v62 = vadd.f32 %v482_v6, %v468_v7  ;;  %v501_v63 = vmul.f32 %v2654_v49, %v2648_v47  ;;  %v516_v26 = vmul.f32 %v2669_v54, %v2638_v23 }
  0x54   :  { %v491_v32 = vadd.f32 %v483_v15, %v469_v57  ;;  %v506_v28 = vadd.f32 %v498_v18, %v488_v58  ;;  %v517_v29 = vmul.f32 %v2669_v54, %v2642_v45  ;;  %v518_v30 = vmul.f32 %v2669_v54, %v2648_v47  ;;  %v2714_v15 = vld [vmem:[#allocation6 + $0xb8] sm:$0xff] }
  0x55   :  { %v507_v35 = vadd.f32 %v499_v59, %v489_v61  ;;  %v508_v36 = vadd.f32 %v500_v60, %v490_v62  ;;  %v519_v37 = vmul.f32 %v2669_v54, %v2652_v48  ;;  %v537_v19 = vrot.slane %v2615_v17, %v2657_v33 }
  0x56   :  { %v509_v21 = vadd.f32 %v501_v63, %v491_v32  ;;  %v523_v22 = vadd.f32 %v516_v26, %v506_v28  ;;  %v541_v24 = vrot.slane %v2617_v39, %v2657_v33  ;;  %v2696_v50 = vrot.slane %v2619_v40, %v2657_v33  ;;  %v2722_v26 = vld [vmem:[#allocation6 + $0xf8] sm:$0xff] }
  0x57   :  { %v524_v51 = vadd.f32 %v517_v29, %v507_v35  ;;  %v525_v38 = vadd.f32 %v518_v30, %v508_v36  ;;  %v2702_v16 = vrot.slane %v2621_v14, %v2657_v33  ;;  %v2706_v52 = vrot.slane %v2626_v42, %v2657_v33 }
  0x58   :  { %v526_v53 = vadd.f32 %v519_v37, %v509_v21  ;;  %v2710_v6 = vrot.slane %v2628_v43, %v2657_v33  ;;  %v560_v56 = vmul.f32 0.0, %v2690_v20  ;;  %v561_v7 = vmul.f32 %v2690_v20, %v537_v19 }
  0x59   :  { %v562_v18 = vmul.f32 %v2690_v20, %v541_v24  ;;  %v581_v57 = vmul.f32 0.0, %v2698_v25  ;;  %v582_v58 = vmul.f32 %v2698_v25, %v537_v19  ;;  %v583_v59 = vmul.f32 %v2698_v25, %v541_v24 }
  0x5a   :  { %v567_v60 = vadd.f32 %v560_v56, %v523_v22  ;;  %v568_v61 = vadd.f32 %v560_v56, %v524_v51  ;;  %v569_v62 = vadd.f32 %v561_v7, %v525_v38  ;;  %v584_v63 = vmul.f32 %v2698_v25, %v2696_v50  ;;  %v2730_v22 = vld [vmem:[#allocation6 + $0x138] sm:$0xff] }
  0x5b   :  { %v570_v32 = vadd.f32 %v562_v18, %v526_v53  ;;  %v603_v28 = vmul.f32 %v2714_v15, %v537_v19  ;;  %v604_v29 = vmul.f32 %v2714_v15, %v541_v24  ;;  %v605_v30 = vmul.f32 %v2714_v15, %v2696_v50 }
  0x5c   :  { %v589_v35 = vadd.f32 %v581_v57, %v567_v60  ;;  %v590_v36 = vadd.f32 %v582_v58, %v568_v61  ;;  %v591_v37 = vadd.f32 %v583_v59, %v569_v62  ;;  %v606_v21 = vmul.f32 %v2714_v15, %v2702_v16  ;;  %v2739_v58 = vld [vmem:[#allocation6 + $0x40] sm:$0xff] }
  0x5d   :  { %v592_v51 = vadd.f32 %v584_v63, %v570_v32  ;;  %v621_v38 = vmul.f32 %v2722_v26, %v541_v24  ;;  %v622_v53 = vmul.f32 %v2722_v26, %v2696_v50  ;;  %v623_v19 = vmul.f32 %v2722_v26, %v2702_v16  ;;  %v2741_v59 = vld [vmem:[#allocation6 + $0x80] sm:$0xff] }
  0x5e   :  { %v611_v56 = vadd.f32 %v603_v28, %v589_v35  ;;  %v612_v7 = vadd.f32 %v604_v29, %v590_v36  ;;  %v613_v18 = vadd.f32 %v605_v30, %v591_v37  ;;  %v624_v57 = vmul.f32 %v2722_v26, %v2706_v52  ;;  %3736 = vst [vmem:[#allocation33_spill] sm:$0xff] %v2741_v59 }
  0x5f   :  { %v614_v60 = vadd.f32 %v606_v21, %v592_v51  ;;  %v639_v24 = vmul.f32 %v2730_v22, %v2696_v50  ;;  %v640_v61 = vmul.f32 %v2730_v22, %v2702_v16  ;;  %v641_v62 = vmul.f32 %v2730_v22, %v2706_v52 }
  0x60   :  { %v629_v63 = vadd.f32 %v621_v38, %v611_v56  ;;  %v630_v32 = vadd.f32 %v622_v53, %v612_v7  ;;  %v631_v28 = vadd.f32 %v623_v19, %v613_v18  ;;  %v642_v29 = vmul.f32 %v2730_v22, %v2710_v6  ;;  %v2767_v7 = vld [vmem:[#allocation6 + $0xc0] sm:$0xff] }
  0x61   :  { %v632_v30 = vadd.f32 %v624_v57, %v614_v60  ;;  %v2752_v35 = vsub.s32 2, %v2516_v27  ;;  %v683_v36 = vmul.f32 0.0, %v2739_v58  ;;  %v704_v37 = vmul.f32 0.0, %v2741_v59  ;;  %3739 = vst [vmem:[#allocation36_spill] sm:$0xff] %v2767_v7 }
  0x62   :  { %v646_v21 = vadd.f32 %v639_v24, %v629_v63  ;;  %v647_v51 = vadd.f32 %v640_v61, %v630_v32  ;;  %v648_v13 = vadd.f32 %v641_v62, %v631_v28  ;;  %v2757_v4 = vsub.s32 3, %v2516_v27  ;;  %v2784_v28 = vld [vmem:[#allocation6 + $0x100] sm:$0xff] }
  0x63   :  { %3737 = vst [vmem:[#allocation34_spill] sm:$0xff] %v2752_v35  ;;  %v649_v38 = vadd.f32 %v642_v29, %v632_v30  ;;  %v660_v53 = vrot.slane %v2615_v17, %v2752_v35  ;;  %v664_v19 = vrot.slane %v2617_v39, %v2752_v35  ;;  %v2765_v56 = vrot.slane %v2619_v40, %v2752_v35 }
  0x64   :  { %3738 = vst [vmem:[#allocation35_spill] sm:$0xff] %v2757_v4  ;;  %v2771_v18 = vrot.slane %v2621_v14, %v2752_v35  ;;  %v2775_v57 = vrot.slane %v2626_v42, %v2752_v35  ;;  %v2779_v60 = vrot.slane %v2628_v43, %v2752_v35  ;;  %v690_v24 = vadd.f32 %v683_v36, %v646_v21 }
  0x65   :  { %v684_v61 = vmul.f32 %v2739_v58, %v660_v53  ;;  %v685_v62 = vmul.f32 %v2739_v58, %v664_v19  ;;  %v691_v63 = vadd.f32 %v683_v36, %v647_v51  ;;  %v705_v32 = vmul.f32 %v2741_v59, %v660_v53  ;;  %3742 = vst [vmem:[#allocation39_spill] sm:$0xff] %v2784_v28 }
  0x66   :  { %3740 = vst [vmem:[#allocation37_spill] sm:$0xff] %v2775_v57  ;;  %3741 = vst [vmem:[#allocation38_spill] sm:$0xff] %v2779_v60  ;;  %v706_v29 = vmul.f32 %v2741_v59, %v664_v19  ;;  %v707_v30 = vmul.f32 %v2741_v59, %v2765_v56  ;;  %v712_v12 = vadd.f32 %v704_v37, %v690_v24  ;;  %vm1419_vm0 = vcmask 516096  }
  0x67   :  { %v726_v3 = vmul.f32 %v2767_v7, %v660_v53  ;;  %v692_v11 = vadd.f32 %v684_v61, %v648_v13  ;;  %v693_v2 = vadd.f32 %v685_v62, %v649_v38  ;;  %v713_v21 = vadd.f32 %v705_v32, %v691_v63 }
  0x68   :  { %v727_v10 = vmul.f32 %v2767_v7, %v664_v19  ;;  %v728_v36 = vmul.f32 %v2767_v7, %v2765_v56  ;;  %v729_v51 = vmul.f32 %v2767_v7, %v2771_v18  ;;  %v744_v0 = vmul.f32 %v2784_v28, %v664_v19 }
  0x69   :  { %v734_v9 = vadd.f32 %v726_v3, %v712_v12  ;;  %v714_v8 = vadd.f32 %v706_v29, %v692_v11  ;;  %v715_v37 = vadd.f32 %v707_v30, %v693_v2  ;;  %v745_v13 = vmul.f32 %v2784_v28, %v2765_v56 }
  0x6a   :  { %v735_v24 = vadd.f32 %v727_v10, %v713_v21  ;;  %v746_v38 = vmul.f32 %v2784_v28, %v2771_v18  ;;  %v747_v53 = vmul.f32 %v2784_v28, %v2775_v57  ;;  %v762_v62 = vmul.f32 %v2791_v1, %v2765_v56  ;;  %v2818_v21 = vld [vmem:[#allocation6 + $0x88] sm:$0xff] }
  0x6b   :  { %v752_v61 = vadd.f32 %v744_v0, %v734_v9  ;;  %v736_v63 = vadd.f32 %v728_v36, %v714_v8  ;;  %v737_v3 = vadd.f32 %v729_v51, %v715_v37  ;;  %v763_v2 = vmul.f32 %v2791_v1, %v2771_v18  ;;  %v2814_v0 = vld [vmem:[#allocation6 + $0x48] sm:$0xff]  ;;  %3745 = vst [vmem:[#allocation42_spill] sm:$0xff] %v2818_v21 }
  0x6c   :  { %v753_v12 = vadd.f32 %v745_v13, %v735_v24  ;;  %v764_v10 = vmul.f32 %v2791_v1, %v2775_v57  ;;  %v765_v11 = vmul.f32 %v2791_v1, %v2779_v60  ;;  %v783_v32 = vrot.slane %v2615_v17, %v2757_v4  ;;  %3744 = vst [vmem:[#allocation41_spill] sm:$0xff] %v2814_v0 }
  0x6d   :  { %v769_v19 = vadd.f32 %v762_v62, %v752_v61  ;;  %v754_v9 = vadd.f32 %v746_v38, %v736_v63  ;;  %v755_v29 = vadd.f32 %v747_v53, %v737_v3  ;;  %v787_v30 = vrot.slane %v2617_v39, %v2757_v4  ;;  %v2838_v62 = vld [vmem:[#allocation6 + $0xc8] sm:$0xff] }
  0x6e   :  { %v770_v8 = vadd.f32 %v763_v2, %v753_v12  ;;  %v2822_v36 = vrot.slane %v2619_v40, %v2757_v4  ;;  %v2826_v51 = vrot.slane %v2621_v14, %v2757_v4  ;;  %v2830_v37 = vrot.slane %v2626_v42, %v2757_v4  ;;  %3750 = vst [vmem:[#allocation47_spill] sm:$0xff] %v2838_v62 }
  0x6f   :  { %v2834_v24 = vrot.slane %v2628_v43, %v2757_v4  ;;  %v771_v13 = vadd.f32 %v764_v10, %v754_v9  ;;  %v772_v38 = vadd.f32 %v765_v11, %v755_v29  ;;  %v806_v53 = vmul.f32 0.0, %v2814_v0  ;;  %v2846_v11 = vld [vmem:[#allocation6 + $0x108] sm:$0xff] }
  0x70   :  { %3746 = vst [vmem:[#allocation43_spill] sm:$0xff] %v2822_v36  ;;  %3747 = vst [vmem:[#allocation44_spill] sm:$0xff] %v2826_v51  ;;  %v807_v61 = vmul.f32 %v2814_v0, %v783_v32  ;;  %v808_v63 = vmul.f32 %v2814_v0, %v787_v30  ;;  %v827_v3 = vmul.f32 0.0, %v2818_v21  ;;  %v828_v12 = vmul.f32 %v2818_v21, %v783_v32 }
  0x71   :  { %3748 = vst [vmem:[#allocation45_spill] sm:$0xff] %v2830_v37  ;;  %3749 = vst [vmem:[#allocation46_spill] sm:$0xff] %v2834_v24  ;;  %v829_v2 = vmul.f32 %v2818_v21, %v787_v30  ;;  %v813_v1 = vadd.f32 %v806_v53, %v769_v19  ;;  %v814_v28 = vadd.f32 %v806_v53, %v770_v8  ;;  %v2854_v8 = vld [vmem:[#allocation6 + $0x148] sm:$0xff]  ;;  %vm1438_vm1 = vcmask 1040896  }
  0x72   :  { %v815_v4 = vadd.f32 %v807_v61, %v771_v13  ;;  %v830_v10 = vmul.f32 %v2818_v21, %v2822_v36  ;;  %3751 = vst [vmem:[#allocation48_spill] sm:$0xff] %v2846_v11  ;;  %v816_v9 = vadd.f32 %v808_v63, %v772_v38  ;;  %v849_v29 = vmul.f32 %v2838_v62, %v783_v32 }
  0x73   :  { %v850_v7 = vmul.f32 %v2838_v62, %v787_v30  ;;  %v851_v0 = vmul.f32 %v2838_v62, %v2822_v36  ;;  %v835_v59 = vadd.f32 %v827_v3, %v813_v1  ;;  %v836_v35 = vadd.f32 %v828_v12, %v814_v28  ;;  %3752 = vst [vmem:[#allocation49_spill] sm:$0xff] %v2854_v8  ;;  %v2865_v28 = vld [vmem:[#allocation6 + $0x90] sm:$0xff] }
  0x74   :  { %v837_v60 = vadd.f32 %v829_v2, %v815_v4  ;;  %v852_v19 = vmul.f32 %v2838_v62, %v2826_v51  ;;  %v838_v13 = vadd.f32 %v830_v10, %v816_v9  ;;  %v867_v53 = vmul.f32 %v2846_v11, %v787_v30  ;;  %v2863_v4 = vld [vmem:[#allocation6 + $0x50] sm:$0xff]  ;;  %3754 = vst [vmem:[#allocation51_spill] sm:$0xff] %v2865_v28 }
  0x75   :  { %v868_v38 = vmul.f32 %v2846_v11, %v2822_v36  ;;  %v869_v32 = vmul.f32 %v2846_v11, %v2826_v51  ;;  %v857_v61 = vadd.f32 %v849_v29, %v835_v59  ;;  %v858_v63 = vadd.f32 %v850_v7, %v836_v35  ;;  %3753 = vst [vmem:[#allocation50_spill] sm:$0xff] %v2863_v4 }
  0x76   :  { %v859_v21 = vadd.f32 %v851_v0, %v837_v60  ;;  %v870_v1 = vmul.f32 %v2846_v11, %v2830_v37  ;;  %v860_v3 = vadd.f32 %v852_v19, %v838_v13  ;;  %v885_v30 = vmul.f32 %v2854_v8, %v2822_v36  ;;  %v2915_v36 = vld [vmem:[#allocation6 + $0x150] sm:$0xff] }
  0x77   :  { %v886_v12 = vmul.f32 %v2854_v8, %v2826_v51  ;;  %v887_v2 = vmul.f32 %v2854_v8, %v2830_v37  ;;  %v875_v59 = vadd.f32 %v867_v53, %v857_v61  ;;  %v876_v35 = vadd.f32 %v868_v38, %v858_v63  ;;  %v2891_v61 = vld [vmem:[#allocation6 + $0xd0] sm:$0xff]  ;;  %3763 = vst [vmem:[#allocation60_spill] sm:$0xff] %v2915_v36 }
  0x78   :  { %v877_v7 = vadd.f32 %v869_v32, %v859_v21  ;;  %v888_v60 = vmul.f32 %v2854_v8, %v2834_v24  ;;  %v878_v0 = vadd.f32 %v870_v1, %v860_v3  ;;  %v2876_v10 = vsub.s32 4, %v2516_v27  ;;  %3758 = vst [vmem:[#allocation55_spill] sm:$0xff] %v2891_v61 }
  0x79   :  { %v929_v9 = vmul.f32 0.0, %v2863_v4  ;;  %v950_v29 = vmul.f32 0.0, %v2865_v28  ;;  %v892_v19 = vadd.f32 %v885_v30, %v875_v59  ;;  %v893_v13 = vadd.f32 %v886_v12, %v876_v35 }
  0x7a   :  { %3755 = vst [vmem:[#allocation52_spill] sm:$0xff] %v2876_v10  ;;  %v894_v11 = vadd.f32 %v887_v2, %v877_v7  ;;  %v2881_v62 = vsub.s32 5, %v2516_v27  ;;  %v895_v53 = vadd.f32 %v888_v60, %v878_v0  ;;  %v906_v21 = vrot.slane %v2615_v17, %v2876_v10  ;;  %v2908_v7 = vld [vmem:[#allocation6 + $0x110] sm:$0xff] }
  0x7b   :  { %v910_v38 = vrot.slane %v2617_v39, %v2876_v10  ;;  %v2889_v32 = vrot.slane %v2619_v40, %v2876_v10  ;;  %v2895_v63 = vrot.slane %v2621_v14, %v2876_v10  ;;  %v2899_v1 = vrot.slane %v2626_v42, %v2876_v10  ;;  %3762 = vst [vmem:[#allocation59_spill] sm:$0xff] %v2908_v7 }
  0x7c   :  { %3756 = vst [vmem:[#allocation53_spill] sm:$0xff] %v2881_v62  ;;  %v2903_v3 = vrot.slane %v2628_v43, %v2876_v10  ;;  %v936_v30 = vadd.f32 %v929_v9, %v892_v19  ;;  %v930_v12 = vmul.f32 %v2863_v4, %v906_v21  ;;  %v937_v59 = vadd.f32 %v929_v9, %v893_v13 }
  0x7d   :  { %3757 = vst [vmem:[#allocation54_spill] sm:$0xff] %v2889_v32  ;;  %3759 = vst [vmem:[#allocation56_spill] sm:$0xff] %v2895_v63  ;;  %v931_v2 = vmul.f32 %v2863_v4, %v910_v38  ;;  %v951_v35 = vmul.f32 %v2865_v28, %v906_v21  ;;  %v952_v60 = vmul.f32 %v2865_v28, %v910_v38 }
  0x7e   :  { %3760 = vst [vmem:[#allocation57_spill] sm:$0xff] %v2899_v1  ;;  %3761 = vst [vmem:[#allocation58_spill] sm:$0xff] %v2903_v3  ;;  %v953_v0 = vmul.f32 %v2865_v28, %v2889_v32  ;;  %v958_v8 = vadd.f32 %v950_v29, %v936_v30  ;;  %v972_v24 = vmul.f32 %v2891_v61, %v906_v21 }
  0x7f   :  { %v938_v10 = vadd.f32 %v930_v12, %v894_v11  ;;  %v939_v37 = vadd.f32 %v931_v2, %v895_v53  ;;  %v959_v19 = vadd.f32 %v951_v35, %v937_v59  ;;  %v973_v51 = vmul.f32 %v2891_v61, %v910_v38 }
  0x80   :  { %v974_v9 = vmul.f32 %v2891_v61, %v2889_v32  ;;  %v975_v13 = vmul.f32 %v2891_v61, %v2895_v63  ;;  %v980_v4 = vadd.f32 %v972_v24, %v958_v8  ;;  %v990_v57 = vmul.f32 %v2908_v7, %v910_v38 }
  0x81   :  { %v960_v28 = vadd.f32 %v952_v60, %v938_v10  ;;  %v961_v29 = vadd.f32 %v953_v0, %v939_v37  ;;  %v981_v30 = vadd.f32 %v973_v51, %v959_v19  ;;  %v991_v11 = vmul.f32 %v2908_v7, %v2889_v32  ;;  %v2942_v19 = vld [vmem:[#allocation6 + $0x98] sm:$0xff] }
  0x82   :  { %v992_v53 = vmul.f32 %v2908_v7, %v2895_v63  ;;  %v993_v21 = vmul.f32 %v2908_v7, %v2899_v1  ;;  %v998_v12 = vadd.f32 %v990_v57, %v980_v4  ;;  %v1008_v2 = vmul.f32 %v2915_v36, %v2889_v32  ;;  %v2938_v57 = vld [vmem:[#allocation6 + $0x58] sm:$0xff]  ;;  %3765 = vst [vmem:[#allocation62_spill] sm:$0xff] %v2942_v19 }
  0x83   :  { %v982_v59 = vadd.f32 %v974_v9, %v960_v28  ;;  %v983_v24 = vadd.f32 %v975_v13, %v961_v29  ;;  %v999_v8 = vadd.f32 %v991_v11, %v981_v30  ;;  %v1009_v37 = vmul.f32 %v2915_v36, %v2895_v63  ;;  %3764 = vst [vmem:[#allocation61_spill] sm:$0xff] %v2938_v57 }
  0x84   :  { %v1010_v51 = vmul.f32 %v2915_v36, %v2899_v1  ;;  %v1011_v10 = vmul.f32 %v2915_v36, %v2903_v3  ;;  %v1015_v38 = vadd.f32 %v1008_v2, %v998_v12  ;;  %v1029_v35 = vrot.slane %v2615_v17, %v2881_v62  ;;  %v2962_v2 = vld [vmem:[#allocation6 + $0xd8] sm:$0xff] }
  0x85   :  { %v1000_v4 = vadd.f32 %v992_v53, %v982_v59  ;;  %v1001_v60 = vadd.f32 %v993_v21, %v983_v24  ;;  %v1016_v28 = vadd.f32 %v1009_v37, %v999_v8  ;;  %v1033_v0 = vrot.slane %v2617_v39, %v2881_v62  ;;  %3770 = vst [vmem:[#allocation67_spill] sm:$0xff] %v2962_v2 }
  0x86   :  { %v2946_v9 = vrot.slane %v2619_v40, %v2881_v62  ;;  %v2950_v13 = vrot.slane %v2621_v14, %v2881_v62  ;;  %v2954_v29 = vrot.slane %v2626_v42, %v2881_v62  ;;  %v2958_v30 = vrot.slane %v2628_v43, %v2881_v62 }
  0x87   :  { %v1017_v11 = vadd.f32 %v1010_v51, %v1000_v4  ;;  %v1018_v53 = vadd.f32 %v1011_v10, %v1001_v60  ;;  %v1052_v21 = vmul.f32 0.0, %v2938_v57  ;;  %v1053_v12 = vmul.f32 %v2938_v57, %v1029_v35  ;;  %v2970_v10 = vld [vmem:[#allocation6 + $0x118] sm:$0xff] }
  0x88   :  { %3766 = vst [vmem:[#allocation63_spill] sm:$0xff] %v2946_v9  ;;  %3767 = vst [vmem:[#allocation64_spill] sm:$0xff] %v2950_v13  ;;  %v1054_v59 = vmul.f32 %v2938_v57, %v1033_v0  ;;  %v1073_v24 = vmul.f32 0.0, %v2942_v19  ;;  %v1074_v8 = vmul.f32 %v2942_v19, %v1029_v35  ;;  %v1075_v37 = vmul.f32 %v2942_v19, %v1033_v0 }
  0x89   :  { %3768 = vst [vmem:[#allocation65_spill] sm:$0xff] %v2954_v29  ;;  %3769 = vst [vmem:[#allocation66_spill] sm:$0xff] %v2958_v30  ;;  %v1059_v36 = vadd.f32 %v1052_v21, %v1015_v38  ;;  %v1060_v7 = vadd.f32 %v1052_v21, %v1016_v28  ;;  %v1061_v62 = vadd.f32 %v1053_v12, %v1017_v11  ;;  %v2978_v28 = vld [vmem:[#allocation6 + $0x158] sm:$0xff] }
  0x8a   :  { %v1076_v51 = vmul.f32 %v2942_v19, %v2946_v9  ;;  %3771 = vst [vmem:[#allocation68_spill] sm:$0xff] %v2970_v10  ;;  %v1062_v4 = vadd.f32 %v1054_v59, %v1018_v53  ;;  %v1095_v60 = vmul.f32 %v2962_v2, %v1029_v35  ;;  %v1096_v61 = vmul.f32 %v2962_v2, %v1033_v0 }
  0x8b   :  { %v1097_v57 = vmul.f32 %v2962_v2, %v2946_v9  ;;  %v1081_v3 = vadd.f32 %v1073_v24, %v1059_v36  ;;  %v1082_v1 = vadd.f32 %v1074_v8, %v1060_v7  ;;  %v1083_v63 = vadd.f32 %v1075_v37, %v1061_v62  ;;  %3772 = vst [vmem:[#allocation69_spill] sm:$0xff] %v2978_v28  ;;  %v2987_v62 = vld [vmem:[#allocation6 + $0x60] sm:$0xff] }
  0x8c   :  { %v1098_v38 = vmul.f32 %v2962_v2, %v2950_v13  ;;  %v1084_v11 = vadd.f32 %v1076_v51, %v1062_v4  ;;  %v1113_v21 = vmul.f32 %v2970_v10, %v1033_v0  ;;  %v1114_v53 = vmul.f32 %v2970_v10, %v2946_v9  ;;  %3773 = vst [vmem:[#allocation70_spill] sm:$0xff] %v2987_v62  ;;  %v2989_v7 = vld [vmem:[#allocation6 + $0xa0] sm:$0xff] }
  0x8d   :  { %v1115_v35 = vmul.f32 %v2970_v10, %v2950_v13  ;;  %v1103_v12 = vadd.f32 %v1095_v60, %v1081_v3  ;;  %v1104_v59 = vadd.f32 %v1096_v61, %v1082_v1  ;;  %v1105_v19 = vadd.f32 %v1097_v57, %v1083_v63  ;;  %3774 = vst [vmem:[#allocation71_spill] sm:$0xff] %v2989_v7 }
  0x8e   :  { %v1116_v36 = vmul.f32 %v2970_v10, %v2954_v29  ;;  %v1106_v24 = vadd.f32 %v1098_v38, %v1084_v11  ;;  %v1131_v0 = vmul.f32 %v2978_v28, %v2946_v9  ;;  %v1132_v8 = vmul.f32 %v2978_v28, %v2950_v13  ;;  %v3039_v9 = vld [vmem:[#allocation6 + $0x160] sm:$0xff] }
  0x8f   :  { %v1133_v37 = vmul.f32 %v2978_v28, %v2954_v29  ;;  %v1121_v3 = vadd.f32 %v1113_v21, %v1103_v12  ;;  %v1122_v61 = vadd.f32 %v1114_v53, %v1104_v59  ;;  %v1123_v63 = vadd.f32 %v1115_v35, %v1105_v19  ;;  %v3015_v12 = vld [vmem:[#allocation6 + $0xe0] sm:$0xff]  ;;  %3778 = vst [vmem:[#allocation75_spill] sm:$0xff] %v3039_v9 }
  0x90   :  { %v1134_v1 = vmul.f32 %v2978_v28, %v2958_v30  ;;  %v1124_v57 = vadd.f32 %v1116_v36, %v1106_v24  ;;  %v3000_v51 = vsub.s32 6, %v2516_v27  ;;  %v1175_v4 = vmul.f32 0.0, %v2987_v62 }
  0x91   :  { %v1196_v60 = vmul.f32 0.0, %v2989_v7  ;;  %v1138_v38 = vadd.f32 %v1131_v0, %v1121_v3  ;;  %v1139_v11 = vadd.f32 %v1132_v8, %v1122_v61  ;;  %v1140_v10 = vadd.f32 %v1133_v37, %v1123_v63  ;;  %v3032_v63 = vld [vmem:[#allocation6 + $0x120] sm:$0xff] }
  0x92   :  { %3775 = vst [vmem:[#allocation72_spill] sm:$0xff] %v3000_v51  ;;  %v3005_v2 = vsub.s32 7, %v2516_v27  ;;  %v1141_v21 = vadd.f32 %v1134_v1, %v1124_v57  ;;  %v1152_v19 = vrot.slane %v2615_v17, %v3000_v51  ;;  %v1156_v53 = vrot.slane %v2617_v39, %v3000_v51  ;;  %3777 = vst [vmem:[#allocation74_spill] sm:$0xff] %v3032_v63 }
  0x93   :  { %v3013_v35 = vrot.slane %v2619_v40, %v3000_v51  ;;  %v3019_v59 = vrot.slane %v2621_v14, %v3000_v51  ;;  %v3023_v36 = vrot.slane %v2626_v42, %v3000_v51  ;;  %v3027_v24 = vrot.slane %v2628_v43, %v3000_v51 }
  0x94   :  { %3776 = vst [vmem:[#allocation73_spill] sm:$0xff] %v3005_v2  ;;  %v1182_v0 = vadd.f32 %v1175_v4, %v1138_v38  ;;  %v1176_v8 = vmul.f32 %v2987_v62, %v1152_v19  ;;  %v1177_v37 = vmul.f32 %v2987_v62, %v1156_v53  ;;  %v1183_v3 = vadd.f32 %v1175_v4, %v1139_v11 }
  0x95   :  { %v1197_v61 = vmul.f32 %v2989_v7, %v1152_v19  ;;  %v1198_v1 = vmul.f32 %v2989_v7, %v1156_v53  ;;  %v1199_v57 = vmul.f32 %v2989_v7, %v3013_v35  ;;  %v1218_v30 = vmul.f32 %v3015_v12, %v1152_v19 }
  0x96   :  { %v1204_v28 = vadd.f32 %v1196_v60, %v1182_v0  ;;  %v1184_v51 = vadd.f32 %v1176_v8, %v1140_v10  ;;  %v1185_v29 = vadd.f32 %v1177_v37, %v1141_v21  ;;  %v1219_v13 = vmul.f32 %v3015_v12, %v1156_v53 }
  0x97   :  { %v1205_v38 = vadd.f32 %v1197_v61, %v1183_v3  ;;  %v1220_v4 = vmul.f32 %v3015_v12, %v3013_v35  ;;  %v1221_v11 = vmul.f32 %v3015_v12, %v3019_v59  ;;  %v1236_v32 = vmul.f32 %v3032_v63, %v1156_v53 }
  0x98   :  { %v1226_v62 = vadd.f32 %v1218_v30, %v1204_v28  ;;  %v1206_v7 = vadd.f32 %v1198_v1, %v1184_v51  ;;  %v1207_v60 = vadd.f32 %v1199_v57, %v1185_v29  ;;  %v1237_v10 = vmul.f32 %v3032_v63, %v3013_v35 }
  0x99   :  { %v1227_v0 = vadd.f32 %v1219_v13, %v1205_v38  ;;  %v1238_v21 = vmul.f32 %v3032_v63, %v3019_v59  ;;  %v1239_v19 = vmul.f32 %v3032_v63, %v3023_v36  ;;  %v1254_v37 = vmul.f32 %v3039_v9, %v3013_v35  ;;  %v3066_v38 = vld [vmem:[#allocation6 + $0xa8] sm:$0xff] }
  0x9a   :  { %v1244_v8 = vadd.f32 %v1236_v32, %v1226_v62  ;;  %v1228_v3 = vadd.f32 %v1220_v4, %v1206_v7  ;;  %v1229_v30 = vadd.f32 %v1221_v11, %v1207_v60  ;;  %v1255_v29 = vmul.f32 %v3039_v9, %v3019_v59  ;;  %v3062_v32 = vld [vmem:[#allocation6 + $0x68] sm:$0xff]  ;;  %3780 = vst [vmem:[#allocation77_spill] sm:$0xff] %v3066_v38 }
  0x9b   :  { %v1245_v28 = vadd.f32 %v1237_v10, %v1227_v0  ;;  %v1256_v13 = vmul.f32 %v3039_v9, %v3023_v36  ;;  %v1257_v51 = vmul.f32 %v3039_v9, %v3027_v24  ;;  %v1275_v61 = vrot.slane %v2615_v17, %v3005_v2  ;;  %3779 = vst [vmem:[#allocation76_spill] sm:$0xff] %v3062_v32 }
  0x9c   :  { %v1261_v53 = vadd.f32 %v1254_v37, %v1244_v8  ;;  %v1246_v62 = vadd.f32 %v1238_v21, %v1228_v3  ;;  %v1247_v1 = vadd.f32 %v1239_v19, %v1229_v30  ;;  %v1279_v57 = vrot.slane %v2617_v39, %v3005_v2 }
  0x9d   :  { %v1262_v7 = vadd.f32 %v1255_v29, %v1245_v28  ;;  %v3070_v4 = vrot.slane %v2619_v40, %v3005_v2  ;;  %v3074_v11 = vrot.slane %v2621_v14, %v3005_v2  ;;  %v3078_v17 = vrot.slane %v2626_v42, %v3005_v2  ;;  %v3086_v40 = vld [vmem:[#allocation6 + $0xe8] sm:$0xff] }
  0x9e   :  { %v3082_v60 = vrot.slane %v2628_v43, %v3005_v2  ;;  %v1263_v0 = vadd.f32 %v1256_v13, %v1246_v62  ;;  %v1264_v39 = vadd.f32 %v1257_v51, %v1247_v1  ;;  %v1298_v10 = vmul.f32 0.0, %v3062_v32  ;;  %3785 = vst [vmem:[#allocation82_spill] sm:$0xff] %v3086_v40  ;;  %v3094_v28 = vld [vmem:[#allocation6 + $0x128] sm:$0xff] }
  0x9f   :  { %3781 = vst [vmem:[#allocation78_spill] sm:$0xff] %v3070_v4  ;;  %3782 = vst [vmem:[#allocation79_spill] sm:$0xff] %v3074_v11  ;;  %v1299_v21 = vmul.f32 %v3062_v32, %v1275_v61  ;;  %v1300_v19 = vmul.f32 %v3062_v32, %v1279_v57  ;;  %v1319_v14 = vmul.f32 0.0, %v3066_v38  ;;  %v1320_v8 = vmul.f32 %v3066_v38, %v1275_v61 }
  0xa0   :  { %3783 = vst [vmem:[#allocation80_spill] sm:$0xff] %v3078_v17  ;;  %3784 = vst [vmem:[#allocation81_spill] sm:$0xff] %v3082_v60  ;;  %v1321_v42 = vmul.f32 %v3066_v38, %v1279_v57  ;;  %v1305_v37 = vadd.f32 %v1298_v10, %v1261_v53  ;;  %v1306_v3 = vadd.f32 %v1298_v10, %v1262_v7  ;;  %v3102_v7 = vld [vmem:[#allocation6 + $0x168] sm:$0xff] }
  0xa1   :  { %v1307_v43 = vadd.f32 %v1299_v21, %v1263_v0  ;;  %v1322_v30 = vmul.f32 %v3066_v38, %v3070_v4  ;;  %3786 = vst [vmem:[#allocation83_spill] sm:$0xff] %v3094_v28  ;;  %v1308_v29 = vadd.f32 %v1300_v19, %v1264_v39  ;;  %v1341_v13 = vmul.f32 %v3086_v40, %v1275_v61 }
  0xa2   :  { %v1342_v51 = vmul.f32 %v3086_v40, %v1279_v57  ;;  %v1343_v62 = vmul.f32 %v3086_v40, %v3070_v4  ;;  %v1327_v1 = vadd.f32 %v1319_v14, %v1305_v37  ;;  %v1328_v2 = vadd.f32 %v1320_v8, %v1306_v3  ;;  %3787 = vst [vmem:[#allocation84_spill] sm:$0xff] %v3102_v7 }
  0xa3   :  { %v1329_v32 = vadd.f32 %v1321_v42, %v1307_v43  ;;  %v1344_v53 = vmul.f32 %v3086_v40, %v3074_v11  ;;  %v1330_v0 = vadd.f32 %v1322_v30, %v1308_v29  ;;  %v1359_v10 = vmul.f32 %v3094_v28, %v1279_v57  ;;  %v3119_v29 = vld [vmem:[#allocation6 + $0x170] sm:$0xff] }
  0xa4   :  { %v1360_v39 = vmul.f32 %v3094_v28, %v3070_v4  ;;  %v1361_v61 = vmul.f32 %v3094_v28, %v3074_v11  ;;  %v1349_v21 = vadd.f32 %v1341_v13, %v1327_v1  ;;  %v1350_v19 = vadd.f32 %v1342_v51, %v1328_v2  ;;  %3788 = vst [vmem:[#allocation85_spill] sm:$0xff] %v3119_v29  ;;  %v2260_v13 = vld [vmem:[#allocation6] sm:$0xff]  ;;  %v2261_v51 = vld [vmem:[%s3611_s0 + $0xa] ss:$0 sm:$0xff]  ;;  %v2262_v1 = vld [vmem:[%s3611_s0 + $0xb] ss:$0 sm:$0xff] }
  0xa5   :  { %v1351_v38 = vadd.f32 %v1343_v62, %v1329_v32  ;;  %v1362_v14 = vmul.f32 %v3094_v28, %v3078_v17  ;;  %v1352_v8 = vadd.f32 %v1344_v53, %v1330_v0  ;;  %v1377_v42 = vmul.f32 %v3102_v7, %v3070_v4 }
  0xa6   :  { %v1378_v37 = vmul.f32 %v3102_v7, %v3074_v11  ;;  %v1379_v57 = vmul.f32 %v3102_v7, %v3078_v17  ;;  %v1367_v3 = vadd.f32 %v1359_v10, %v1349_v21  ;;  %v1368_v43 = vadd.f32 %v1360_v39, %v1350_v19  ;;  %v2167_v21 = vld [vmem:[%s3611_s0 + $0xe] ss:$0 sm:$0xff] }
  0xa7   :  { %v1369_v30 = vadd.f32 %v1361_v61, %v1351_v38  ;;  %v1380_v2 = vmul.f32 %v3102_v7, %v3082_v60  ;;  %v1370_v32 = vadd.f32 %v1362_v14, %v1352_v8  ;;  %v230_v62 = vmul.f32 %v2261_v51, %v2260_v13  ;;  %v2263_v51 = vld [vmem:[#allocation6 + $0x8] sm:$0xff]  ;;  %v2264_v60 = vld [vmem:[#allocation6 + $0x10] sm:$0xff] }
  0xa8   :  { %v231_v53 = vmul.f32 %v2262_v1, %v2260_v13  ;;  %v1384_v0 = vadd.f32 %v1377_v42, %v1367_v3  ;;  %v1385_v10 = vadd.f32 %v1378_v37, %v1368_v43  ;;  %v2337_v39 = vmov 1983009808  }
  0xa9   :  { %v1386_v38 = vadd.f32 %v1379_v57, %v1369_v30  ;;  %v1423_v61 = vunpack.c.l.s4 %v2337_v39  ;;  %v1387_v19 = vadd.f32 %v1380_v2, %v1370_v32  ;;  %v232_v14 = vmul.f32 %v2260_v13, %v2571_v55 }
  0xaa   :  { %v233_v8 = vmul.f32 %v2260_v13, %v2588_v5  ;;  %v252_v7 = vmul.f32 %v2263_v51, %v2262_v1  ;;  %v1394_v28 = vadd.f32 %v3119_v29, %v1384_v0  ;;  %v1395_v40 = vadd.f32 %v3119_v29, %v1385_v10  ;;  %v2168_v1 = vld [vmem:[%s3611_s0 + $0xf] ss:$0 sm:$0xff] }
  0xab   :  { %v1396_v42 = vadd.f32 %v3119_v29, %v1386_v38  ;;  %v1424_v37 = vunpack.c.0.s8 %v1423_v61  ;;  %v1397_v57 = vadd.f32 %v3119_v29, %v1387_v19  ;;  %v253_v3 = vmul.f32 %v2263_v51, %v2571_v55 }
  0xac   :  { %v254_v43 = vmul.f32 %v2263_v51, %v2588_v5  ;;  %v255_v30 = vmul.f32 %v2263_v51, %v2167_v21  ;;  %v1402_v2 = vmax.f32 %v1394_v28, 0.0  ;;  %v1403_v32 = vmax.f32 %v1395_v40, 0.0 }
  0xad   :  { %v1404_v39 = vmax.f32 %v1396_v42, 0.0  ;;  %v3139_v13 = vsub.s32 %v1424_v37, %v2516_v27  ;;  %v1405_v0 = vmax.f32 %v1397_v57, 0.0  ;;  %v268_v10 = vadd.f32 %v252_v7, %v230_v62  ;;  %v2265_v42 = vld [vmem:[#allocation6 + $0x18] sm:$0xff] }
  0xae   :  { %v269_v38 = vadd.f32 %v253_v3, %v231_v53  ;;  %v270_v61 = vadd.f32 %v254_v43, %v232_v14  ;;  %v1410_v19 = vadd.f32 %v1403_v32, %v1402_v2  ;;  %v271_v29 = vadd.f32 %v255_v30, %v233_v8  ;;  %v2266_v14 = vld [vmem:[#allocation6 + $0x20] sm:$0xff] }
  0xaf   :  { %v290_v17 = vmul.f32 %v2264_v60, %v2571_v55  ;;  %v291_v28 = vmul.f32 %v2264_v60, %v2588_v5  ;;  %v292_v40 = vmul.f32 %v2264_v60, %v2167_v21  ;;  %v293_v51 = vmul.f32 %v2264_v60, %v2168_v1 }
  0xb0   :  { %v324_v27 = vmul.f32 %v2265_v42, %v2588_v5  ;;  %v325_v37 = vmul.f32 %v2265_v42, %v2167_v21  ;;  %v1411_v11 = vadd.f32 %v1410_v19, %v1404_v39  ;;  %v326_v57 = vmul.f32 %v2265_v42, %v2168_v1 }
  0xb1   :  { %v306_v4 = vadd.f32 %v290_v17, %v268_v10  ;;  %v307_v9 = vadd.f32 %v291_v28, %v269_v38  ;;  %v308_v7 = vadd.f32 %v292_v40, %v270_v61  ;;  %v309_v62 = vadd.f32 %v293_v51, %v271_v29 }
  0xb2   :  { %v327_v53 = vmul.f32 0.0, %v2265_v42  ;;  %v358_v8 = vmul.f32 %v2266_v14, %v2167_v21  ;;  %v1412_v3 = vadd.f32 %v1411_v11, %v1405_v0  ;;  %v359_v30 = vmul.f32 %v2266_v14, %v2168_v1 }
  0xb3   :  { %v340_v43 = vadd.f32 %v324_v27, %v306_v4  ;;  %v341_v55 = vadd.f32 %v325_v37, %v307_v9  ;;  %v342_v2 = vadd.f32 %v326_v57, %v308_v7  ;;  %v360_v60 = vmul.f32 0.0, %v2266_v14 }
  0xb4   :  { %v343_v32 = vadd.f32 %v327_v53, %v309_v62  ;;  %v448_v5 = vmul.f32 %v2611_v31, %v2638_v23  ;;  %v3149_v63 = vmul.f32 0.25, %v1412_v3  ;;  %v449_v29 = vmul.f32 %v2611_v31, %v2642_v45 }
  0xb5   :  { %v373_v17 = vadd.f32 %v358_v8, %v340_v43  ;;  %v374_v39 = vadd.f32 %v359_v30, %v341_v55  ;;  %v375_v10 = vadd.f32 %v360_v60, %v342_v2  ;;  %v450_v4 = vmul.f32 %v2611_v31, %v2648_v47 }
  0xb6   :  { %v376_v38 = vadd.f32 %v360_v60, %v343_v32  ;;  %v451_v9 = vmul.f32 %v2611_v31, %v2652_v48  ;;  %v1457_v11 = vcombine.high %v3149_v63, %v3149_v63  ;;  %v3161_v23 = vrot.slane %v3149_v63, %v3139_v13  ;;  %1420 = vst.msk [vmem:[#allocation2] sm:$0x1] %vm1419_vm0, %v3149_v63 }
  0xb7   :  { %v391_v21 = vadd.f32 %v2597_v44, %v373_v17  ;;  %v392_v1 = vadd.f32 %v2597_v44, %v374_v39  ;;  %v393_v0 = vadd.f32 %v2597_v44, %v375_v10  ;;  %v462_v19 = vmul.f32 %v2613_v34, %v2642_v45 }
  0xb8   :  { %v394_v61 = vadd.f32 %v2597_v44, %v376_v38  ;;  %v463_v31 = vmul.f32 %v2613_v34, %v2648_v47  ;;  %v3172_v28 = vrot.slane %v1457_v11, %v3139_v13  ;;  %1429 = vrot.lane.b32.xlu0 %v3161_v23, %s2332_s14  ;;  %v464_v42 = vmul.f32 %v2613_v34, %v2652_v48 }
  0xb9   :  { %v407_v40 = vmax.f32 %v391_v21, 0.0  ;;  %v408_v51 = vmax.f32 %v392_v1, 0.0  ;;  %v409_v27 = vmax.f32 %v393_v0, 0.0  ;;  %v470_v44 = vadd.f32 %v462_v19, %v448_v5 }
  0xba   :  { %v410_v37 = vmax.f32 %v394_v61, 0.0  ;;  %v471_v57 = vadd.f32 %v463_v31, %v449_v29  ;;  %1467 = vrot.lane.b32.xlu1 %v3172_v28, %s2332_s14  ;;  %v472_v7 = vadd.f32 %v464_v42, %v450_v4  ;;  %v484_v62 = vmul.f32 %v2644_v46, %v2648_v47  ;;  %1466 = vst.msk [vmem:[#allocation2 + $0x4] sm:$0x1] %vm1419_vm0, %v3172_v28 }
  0xbb   :  { %v3180_v45 = vmax.f32 %v407_v40, %v408_v51  ;;  %v485_v53 = vmul.f32 %v2644_v46, %v2652_v48  ;;  %v502_v8 = vmul.f32 %v2654_v49, %v2652_v48  ;;  %v505_v3 = vmul.f32 0.0, %v2654_v49 }
  0xbc   :  { %v3186_v14 = vmax.f32 %v409_v27, %v410_v37  ;;  %v522_v43 = vmul.f32 0.0, %v2669_v54  ;;  %v492_v30 = vadd.f32 %v484_v62, %v470_v44  ;;  %v563_v47 = vmul.f32 %v2690_v20, %v2696_v50 }
  0xbd   :  { %v455_v55 = vrot.slane %v3180_v45, %v2624_v41  ;;  %v493_v2 = vadd.f32 %v485_v53, %v471_v57  ;;  %v564_v60 = vmul.f32 %v2690_v20, %v2702_v16  ;;  %v565_v48 = vmul.f32 %v2690_v20, %v2706_v52 }
  0xbe   :  { %v477_v32 = vrot.slane %v3186_v14, %v2624_v41  ;;  %v566_v5 = vmul.f32 %v2690_v20, %v2710_v6  ;;  %v510_v10 = vadd.f32 %v502_v8, %v492_v30  ;;  %v578_v20 = vrot.slane %v3180_v45, %v2657_v33 }
  0xbf   :  { %v465_v17 = vmul.f32 %v2613_v34, %v455_v55  ;;  %v486_v39 = vmul.f32 %v2644_v46, %v455_v55  ;;  %v503_v29 = vmul.f32 %v2654_v49, %v455_v55  ;;  %v520_v4 = vmul.f32 %v2669_v54, %v455_v55 }
  0xc0   :  { %v487_v50 = vmul.f32 %v2644_v46, %v477_v32  ;;  %v504_v38 = vmul.f32 %v2654_v49, %v477_v32  ;;  %v521_v11 = vmul.f32 %v2669_v54, %v477_v32  ;;  %v585_v61 = vmul.f32 %v2698_v25, %v2702_v16 }
  0xc1   :  { %v473_v21 = vadd.f32 %v465_v17, %v451_v9  ;;  %v494_v1 = vadd.f32 %v486_v39, %v472_v7  ;;  %v511_v0 = vadd.f32 %v503_v29, %v493_v2  ;;  %v527_v34 = vadd.f32 %v520_v4, %v510_v10  ;;  %v3789_v29 = vld [vmem:[#allocation37_spill] sm:$0xff]  ;;  %v3790_v4 = vld [vmem:[#allocation38_spill] sm:$0xff] }
  0xc2   :  { %v586_v19 = vmul.f32 %v2698_v25, %v2706_v52  ;;  %v587_v46 = vmul.f32 %v2698_v25, %v2710_v6  ;;  %v588_v54 = vmul.f32 %v2698_v25, %v578_v20  ;;  %v600_v51 = vrot.slane %v3186_v14, %v2657_v33 }
  0xc3   :  { %v495_v49 = vadd.f32 %v487_v50, %v473_v21  ;;  %v512_v31 = vadd.f32 %v504_v38, %v494_v1  ;;  %v528_v40 = vadd.f32 %v521_v11, %v511_v0  ;;  %v571_v9 = vadd.f32 %v563_v47, %v527_v34  ;;  %v3791_v21 = vld [vmem:[#allocation34_spill] sm:$0xff]  ;;  %v3792_v1 = vld [vmem:[#allocation33_spill] sm:$0xff] }
  0xc4   :  { %v607_v42 = vmul.f32 %v2714_v15, %v2706_v52  ;;  %v608_v16 = vmul.f32 %v2714_v15, %v2710_v6  ;;  %v609_v57 = vmul.f32 %v2714_v15, %v578_v20  ;;  %v610_v62 = vmul.f32 %v2714_v15, %v600_v51 }
  0xc5   :  { %v513_v27 = vadd.f32 %v505_v3, %v495_v49  ;;  %v529_v37 = vadd.f32 %v522_v43, %v512_v31  ;;  %v572_v44 = vadd.f32 %v564_v60, %v528_v40  ;;  %v593_v7 = vadd.f32 %v585_v61, %v571_v9  ;;  %v3793_v31 = vld [vmem:[#allocation36_spill] sm:$0xff] }
  0xc6   :  { %v625_v25 = vmul.f32 %v2722_v26, %v2710_v6  ;;  %v626_v53 = vmul.f32 %v2722_v26, %v578_v20  ;;  %v627_v52 = vmul.f32 %v2722_v26, %v600_v51  ;;  %v628_v3 = vmul.f32 0.0, %v2722_v26 }
  0xc7   :  { %v530_v8 = vadd.f32 %v522_v43, %v513_v27  ;;  %v573_v55 = vadd.f32 %v565_v48, %v529_v37  ;;  %v594_v30 = vadd.f32 %v586_v19, %v572_v44  ;;  %v615_v2 = vadd.f32 %v607_v42, %v593_v7  ;;  %v3794_v37 = vld [vmem:[#allocation39_spill] sm:$0xff] }
  0xc8   :  { %v643_v47 = vmul.f32 %v2730_v22, %v578_v20  ;;  %v644_v32 = vmul.f32 %v2730_v22, %v600_v51  ;;  %v645_v39 = vmul.f32 0.0, %v2730_v22  ;;  %v686_v43 = vmul.f32 %v2739_v58, %v2765_v56 }
  0xc9   :  { %v574_v60 = vadd.f32 %v566_v5, %v530_v8  ;;  %v595_v17 = vadd.f32 %v587_v46, %v573_v55  ;;  %v616_v15 = vadd.f32 %v608_v16, %v594_v30  ;;  %v633_v6 = vadd.f32 %v625_v25, %v615_v2  ;;  %v3795_v30 = vld [vmem:[#allocation40_spill] sm:$0xff] }
  0xca   :  { %v687_v48 = vmul.f32 %v2739_v58, %v2771_v18  ;;  %v688_v10 = vmul.f32 %v2739_v58, %v3789_v29  ;;  %v689_v5 = vmul.f32 %v2739_v58, %v3790_v4  ;;  %v701_v22 = vrot.slane %v3180_v45, %v3791_v21 }
  0xcb   :  { %v596_v26 = vadd.f32 %v588_v54, %v574_v60  ;;  %v617_v50 = vadd.f32 %v609_v57, %v595_v17  ;;  %v634_v38 = vadd.f32 %v626_v53, %v616_v15  ;;  %v650_v11 = vadd.f32 %v643_v47, %v633_v6  ;;  %v3796_v15 = vld [vmem:[#allocation43_spill] sm:$0xff] }
  0xcc   :  { %v708_v0 = vmul.f32 %v3792_v1, %v2771_v18  ;;  %v709_v56 = vmul.f32 %v3792_v1, %v3789_v29  ;;  %v710_v19 = vmul.f32 %v3792_v1, %v3790_v4  ;;  %v711_v49 = vmul.f32 %v3792_v1, %v701_v22  ;;  %v3802_v1 = vld [vmem:[#allocation42_spill] sm:$0xff] }
  0xcd   :  { %v618_v20 = vadd.f32 %v610_v62, %v596_v26  ;;  %v635_v34 = vadd.f32 %v627_v52, %v617_v50  ;;  %v651_v61 = vadd.f32 %v644_v32, %v634_v38  ;;  %v694_v46 = vadd.f32 %v686_v43, %v650_v11  ;;  %v3798_v43 = vld [vmem:[#allocation44_spill] sm:$0xff]  ;;  %v3799_v50 = vld [vmem:[#allocation45_spill] sm:$0xff] }
  0xce   :  { %v723_v58 = vrot.slane %v3186_v14, %v3791_v21  ;;  %v730_v40 = vmul.f32 %v3793_v31, %v3789_v29  ;;  %v731_v51 = vmul.f32 %v3793_v31, %v3790_v4  ;;  %v732_v16 = vmul.f32 %v3793_v31, %v701_v22  ;;  %v3801_v21 = vld [vmem:[#allocation35_spill] sm:$0xff] }
  0xcf   :  { %v636_v54 = vadd.f32 %v628_v3, %v618_v20  ;;  %v652_v18 = vadd.f32 %v645_v39, %v635_v34  ;;  %v695_v9 = vadd.f32 %v687_v48, %v651_v61  ;;  %v716_v42 = vadd.f32 %v708_v0, %v694_v46 }
  0xd0   :  { %v733_v27 = vmul.f32 %v3793_v31, %v723_v58  ;;  %v748_v44 = vmul.f32 %v3794_v37, %v3790_v4  ;;  %v749_v25 = vmul.f32 %v3794_v37, %v701_v22  ;;  %v750_v8 = vmul.f32 %v3794_v37, %v723_v58 }
  0xd1   :  { %v653_v57 = vadd.f32 %v645_v39, %v636_v54  ;;  %v696_v7 = vadd.f32 %v688_v10, %v652_v18  ;;  %v717_v62 = vadd.f32 %v709_v56, %v695_v9  ;;  %v738_v53 = vadd.f32 %v730_v40, %v716_v42  ;;  %v3797_v39 = vld [vmem:[#allocation41_spill] sm:$0xff]  ;;  %v3803_v18 = vld [vmem:[#allocation47_spill] sm:$0xff] }
  0xd2   :  { %v751_v55 = vmul.f32 0.0, %v3794_v37  ;;  %v766_v52 = vmul.f32 %v3795_v30, %v701_v22  ;;  %v767_v32 = vmul.f32 %v3795_v30, %v723_v58  ;;  %v768_v17 = vmul.f32 0.0, %v3795_v30 }
  0xd3   :  { %v697_v2 = vadd.f32 %v689_v5, %v653_v57  ;;  %v718_v3 = vadd.f32 %v710_v19, %v696_v7  ;;  %v739_v47 = vadd.f32 %v731_v51, %v717_v62  ;;  %v756_v60 = vadd.f32 %v748_v44, %v738_v53  ;;  %v3800_v5 = vld [vmem:[#allocation46_spill] sm:$0xff]  ;;  %v3804_v7 = vld [vmem:[#allocation48_spill] sm:$0xff] }
  0xd4   :  { %v809_v6 = vmul.f32 %v3797_v39, %v3796_v15  ;;  %v810_v48 = vmul.f32 %v3797_v39, %v3798_v43  ;;  %v811_v38 = vmul.f32 %v3797_v39, %v3799_v50  ;;  %v812_v11 = vmul.f32 %v3797_v39, %v3800_v5  ;;  %v3806_v15 = vld [vmem:[#allocation54_spill] sm:$0xff] }
  0xd5   :  { %v719_v29 = vadd.f32 %v711_v49, %v697_v2  ;;  %v740_v10 = vadd.f32 %v732_v16, %v718_v3  ;;  %v757_v26 = vadd.f32 %v749_v25, %v739_v47  ;;  %v773_v4 = vadd.f32 %v766_v52, %v756_v60  ;;  %v3805_v3 = vld [vmem:[#allocation49_spill] sm:$0xff]  ;;  %v3807_v39 = vld [vmem:[#allocation50_spill] sm:$0xff] }
  0xd6   :  { %v824_v22 = vrot.slane %v3180_v45, %v3801_v21  ;;  %v831_v0 = vmul.f32 %v3802_v1, %v3798_v43  ;;  %v832_v61 = vmul.f32 %v3802_v1, %v3799_v50  ;;  %v833_v46 = vmul.f32 %v3802_v1, %v3800_v5 }
  0xd7   :  { %v741_v56 = vadd.f32 %v733_v27, %v719_v29  ;;  %v758_v20 = vadd.f32 %v750_v8, %v740_v10  ;;  %v774_v34 = vadd.f32 %v767_v32, %v757_v26  ;;  %v817_v19 = vadd.f32 %v809_v6, %v773_v4  ;;  %v3808_v10 = vld [vmem:[#allocation56_spill] sm:$0xff] }
  0xd8   :  { %v834_v49 = vmul.f32 %v3802_v1, %v824_v22  ;;  %v846_v58 = vrot.slane %v3186_v14, %v3801_v21  ;;  %v853_v9 = vmul.f32 %v3803_v18, %v3799_v50  ;;  %v854_v42 = vmul.f32 %v3803_v18, %v3800_v5  ;;  %v3811_v21 = vld [vmem:[#allocation52_spill] sm:$0xff] }
  0xd9   :  { %v759_v31 = vadd.f32 %v751_v55, %v741_v56  ;;  %v775_v40 = vadd.f32 %v768_v17, %v758_v20  ;;  %v818_v54 = vadd.f32 %v810_v48, %v774_v34  ;;  %v839_v51 = vadd.f32 %v831_v0, %v817_v19  ;;  %v3812_v20 = vld [vmem:[#allocation51_spill] sm:$0xff] }
  0xda   :  { %v855_v16 = vmul.f32 %v3803_v18, %v824_v22  ;;  %v856_v27 = vmul.f32 %v3803_v18, %v846_v58  ;;  %v871_v62 = vmul.f32 %v3804_v7, %v3800_v5  ;;  %v872_v53 = vmul.f32 %v3804_v7, %v824_v22  ;;  %v3810_v5 = vld [vmem:[#allocation58_spill] sm:$0xff] }
  0xdb   :  { %v776_v37 = vadd.f32 %v768_v17, %v759_v31  ;;  %v819_v44 = vadd.f32 %v811_v38, %v775_v40  ;;  %v840_v57 = vadd.f32 %v832_v61, %v818_v54  ;;  %v861_v25 = vadd.f32 %v853_v9, %v839_v51  ;;  %v3809_v38 = vld [vmem:[#allocation57_spill] sm:$0xff]  ;;  %v3813_v9 = vld [vmem:[#allocation55_spill] sm:$0xff] }
  0xdc   :  { %v873_v8 = vmul.f32 %v3804_v7, %v846_v58  ;;  %v874_v55 = vmul.f32 0.0, %v3804_v7  ;;  %v889_v47 = vmul.f32 %v3805_v3, %v824_v22  ;;  %v890_v60 = vmul.f32 %v3805_v3, %v846_v58 }
  0xdd   :  { %v820_v30 = vadd.f32 %v812_v11, %v776_v37  ;;  %v841_v52 = vadd.f32 %v833_v46, %v819_v44  ;;  %v862_v2 = vadd.f32 %v854_v42, %v840_v57  ;;  %v879_v32 = vadd.f32 %v871_v62, %v861_v25  ;;  %v3814_v62 = vld [vmem:[#allocation59_spill] sm:$0xff] }
  0xde   :  { %v891_v17 = vmul.f32 0.0, %v3805_v3  ;;  %v932_v6 = vmul.f32 %v3807_v39, %v3806_v15  ;;  %v933_v26 = vmul.f32 %v3807_v39, %v3808_v10  ;;  %v934_v4 = vmul.f32 %v3807_v39, %v3809_v38 }
  0xdf   :  { %v842_v43 = vadd.f32 %v834_v49, %v820_v30  ;;  %v863_v48 = vadd.f32 %v855_v16, %v841_v52  ;;  %v880_v29 = vadd.f32 %v872_v53, %v862_v2  ;;  %v896_v50 = vadd.f32 %v889_v47, %v879_v32  ;;  %v3815_v47 = vld [vmem:[#allocation60_spill] sm:$0xff] }
  0xe0   :  { %v935_v11 = vmul.f32 %v3807_v39, %v3810_v5  ;;  %v947_v22 = vrot.slane %v3180_v45, %v3811_v21  ;;  %v954_v34 = vmul.f32 %v3812_v20, %v3808_v10  ;;  %v955_v19 = vmul.f32 %v3812_v20, %v3809_v38 }
  0xe1   :  { %v864_v1 = vadd.f32 %v856_v27, %v842_v43  ;;  %v881_v0 = vadd.f32 %v873_v8, %v863_v48  ;;  %v897_v56 = vadd.f32 %v890_v60, %v880_v29  ;;  %v940_v61 = vadd.f32 %v932_v6, %v896_v50  ;;  %v3816_v43 = vld [vmem:[#allocation63_spill] sm:$0xff]  ;;  %v3817_v48 = vld [vmem:[#allocation61_spill] sm:$0xff] }
  0xe2   :  { %v956_v46 = vmul.f32 %v3812_v20, %v3810_v5  ;;  %v957_v49 = vmul.f32 %v3812_v20, %v947_v22  ;;  %v969_v54 = vrot.slane %v3186_v14, %v3811_v21  ;;  %v976_v51 = vmul.f32 %v3813_v9, %v3809_v38  ;;  %v3819_v38 = vld [vmem:[#allocation65_spill] sm:$0xff] }
  0xe3   :  { %v882_v58 = vadd.f32 %v874_v55, %v864_v1  ;;  %v898_v31 = vadd.f32 %v891_v17, %v881_v0  ;;  %v941_v40 = vadd.f32 %v933_v26, %v897_v56  ;;  %v962_v18 = vadd.f32 %v954_v34, %v940_v61  ;;  %v3818_v26 = vld [vmem:[#allocation64_spill] sm:$0xff]  ;;  %v3821_v0 = vld [vmem:[#allocation53_spill] sm:$0xff]  ;;  %v3822_v34 = vld [vmem:[#allocation62_spill] sm:$0xff] }
  0xe4   :  { %v977_v42 = vmul.f32 %v3813_v9, %v3810_v5  ;;  %v978_v16 = vmul.f32 %v3813_v9, %v947_v22  ;;  %v979_v57 = vmul.f32 %v3813_v9, %v969_v54  ;;  %v994_v25 = vmul.f32 %v3814_v62, %v3810_v5  ;;  %v3820_v5 = vld [vmem:[#allocation66_spill] sm:$0xff]  ;;  %v3823_v9 = vld [vmem:[#allocation67_spill] sm:$0xff] }
  0xe5   :  { %v899_v27 = vadd.f32 %v891_v17, %v882_v58  ;;  %v942_v37 = vadd.f32 %v934_v4, %v898_v31  ;;  %v963_v44 = vadd.f32 %v955_v19, %v941_v40  ;;  %v984_v7 = vadd.f32 %v976_v51, %v962_v18 }
  0xe6   :  { %v995_v53 = vmul.f32 %v3814_v62, %v947_v22  ;;  %v996_v8 = vmul.f32 %v3814_v62, %v969_v54  ;;  %v997_v2 = vmul.f32 0.0, %v3814_v62  ;;  %v1012_v32 = vmul.f32 %v3815_v47, %v947_v22  ;;  %v3824_v62 = vld [vmem:[#allocation68_spill] sm:$0xff] }
  0xe7   :  { %v943_v55 = vadd.f32 %v935_v11, %v899_v27  ;;  %v964_v30 = vadd.f32 %v956_v46, %v942_v37  ;;  %v985_v52 = vadd.f32 %v977_v42, %v963_v44  ;;  %v1002_v3 = vadd.f32 %v994_v25, %v984_v7 }
  0xe8   :  { %v1013_v60 = vmul.f32 %v3815_v47, %v969_v54  ;;  %v1014_v17 = vmul.f32 0.0, %v3815_v47  ;;  %v1055_v29 = vmul.f32 %v3817_v48, %v3816_v43  ;;  %v1056_v50 = vmul.f32 %v3817_v48, %v3818_v26  ;;  %v3825_v47 = vld [vmem:[#allocation69_spill] sm:$0xff] }
  0xe9   :  { %v965_v15 = vadd.f32 %v957_v49, %v943_v55  ;;  %v986_v39 = vadd.f32 %v978_v16, %v964_v30  ;;  %v1003_v6 = vadd.f32 %v995_v53, %v985_v52  ;;  %v1019_v10 = vadd.f32 %v1012_v32, %v1002_v3 }
  0xea   :  { %v1057_v4 = vmul.f32 %v3817_v48, %v3819_v38  ;;  %v1058_v11 = vmul.f32 %v3817_v48, %v3820_v5  ;;  %v1070_v56 = vrot.slane %v3180_v45, %v3821_v0  ;;  %v1077_v61 = vmul.f32 %v3822_v34, %v3818_v26  ;;  %v3826_v48 = vld [vmem:[#allocation70_spill] sm:$0xff] }
  0xeb   :  { %v987_v21 = vadd.f32 %v979_v57, %v965_v15  ;;  %v1004_v22 = vadd.f32 %v996_v8, %v986_v39  ;;  %v1020_v1 = vadd.f32 %v1013_v60, %v1003_v6  ;;  %v1063_v20 = vadd.f32 %v1055_v29, %v1019_v10 }
  0xec   :  { %v1078_v19 = vmul.f32 %v3822_v34, %v3819_v38  ;;  %v1079_v46 = vmul.f32 %v3822_v34, %v3820_v5  ;;  %v1080_v40 = vmul.f32 %v3822_v34, %v1070_v56  ;;  %v1092_v18 = vrot.slane %v3186_v14, %v3821_v0 }
  0xed   :  { %v1005_v49 = vadd.f32 %v997_v2, %v987_v21  ;;  %v1021_v58 = vadd.f32 %v1014_v17, %v1004_v22  ;;  %v1064_v31 = vadd.f32 %v1056_v50, %v1020_v1  ;;  %v1085_v54 = vadd.f32 %v1077_v61, %v1063_v20  ;;  %v3827_v21 = vld [vmem:[#allocation72_spill] sm:$0xff]  ;;  %v3828_v1 = vld [vmem:[#allocation71_spill] sm:$0xff] }
  0xee   :  { %v1099_v51 = vmul.f32 %v3823_v9, %v3819_v38  ;;  %v1100_v42 = vmul.f32 %v3823_v9, %v3820_v5  ;;  %v1101_v44 = vmul.f32 %v3823_v9, %v1070_v56  ;;  %v1102_v57 = vmul.f32 %v3823_v9, %v1092_v18 }
  0xef   :  { %v1022_v16 = vadd.f32 %v1014_v17, %v1005_v49  ;;  %v1065_v27 = vadd.f32 %v1057_v4, %v1021_v58  ;;  %v1086_v37 = vadd.f32 %v1078_v19, %v1064_v31  ;;  %v1117_v25 = vmul.f32 %v3824_v62, %v3820_v5 }
  0xf0   :  { %v1107_v7 = vadd.f32 %v1099_v51, %v1085_v54  ;;  %v1118_v53 = vmul.f32 %v3824_v62, %v1070_v56  ;;  %v1119_v52 = vmul.f32 %v3824_v62, %v1092_v18  ;;  %v1120_v2 = vmul.f32 0.0, %v3824_v62 }
  0xf1   :  { %v1066_v8 = vadd.f32 %v1058_v11, %v1022_v16  ;;  %v1087_v55 = vadd.f32 %v1079_v46, %v1065_v27  ;;  %v1108_v30 = vadd.f32 %v1100_v42, %v1086_v37  ;;  %v1135_v32 = vmul.f32 %v3825_v47, %v1070_v56  ;;  %v3829_v42 = vld [vmem:[#allocation74_spill] sm:$0xff] }
  0xf2   :  { %v1125_v3 = vadd.f32 %v1117_v25, %v1107_v7  ;;  %v1136_v60 = vmul.f32 %v3825_v47, %v1092_v18  ;;  %v1137_v6 = vmul.f32 0.0, %v3825_v47  ;;  %v1178_v29 = vmul.f32 %v3826_v48, %v3013_v35  ;;  %v3830_v25 = vld [vmem:[#allocation75_spill] sm:$0xff] }
  0xf3   :  { %v1088_v17 = vadd.f32 %v1080_v40, %v1066_v8  ;;  %v1109_v15 = vadd.f32 %v1101_v44, %v1087_v55  ;;  %v1126_v39 = vadd.f32 %v1118_v53, %v1108_v30  ;;  %v1179_v10 = vmul.f32 %v3826_v48, %v3019_v59 }
  0xf4   :  { %v1142_v43 = vadd.f32 %v1135_v32, %v1125_v3  ;;  %v1180_v26 = vmul.f32 %v3826_v48, %v3023_v36  ;;  %v1181_v5 = vmul.f32 %v3826_v48, %v3027_v24  ;;  %v1193_v22 = vrot.slane %v3180_v45, %v3827_v21  ;;  %v3832_v3 = vld [vmem:[#allocation76_spill] sm:$0xff]  ;;  %v3833_v32 = vld [vmem:[#allocation79_spill] sm:$0xff]  ;;  %v3835_v48 = vld [vmem:[#allocation81_spill] sm:$0xff] }
  0xf5   :  { %v1110_v50 = vadd.f32 %v1102_v57, %v1088_v17  ;;  %v1127_v38 = vadd.f32 %v1119_v52, %v1109_v15  ;;  %v1143_v4 = vadd.f32 %v1136_v60, %v1126_v39  ;;  %v1200_v0 = vmul.f32 %v3828_v1, %v3019_v59 }
  0xf6   :  { %v1186_v11 = vadd.f32 %v1178_v29, %v1142_v43  ;;  %v1201_v35 = vmul.f32 %v3828_v1, %v3023_v36  ;;  %v1202_v61 = vmul.f32 %v3828_v1, %v3027_v24  ;;  %v1203_v19 = vmul.f32 %v3828_v1, %v1193_v22 }
  0xf7   :  { %v1128_v56 = vadd.f32 %v1120_v2, %v1110_v50  ;;  %v1144_v20 = vadd.f32 %v1137_v6, %v1127_v38  ;;  %v1187_v34 = vadd.f32 %v1179_v10, %v1143_v4  ;;  %v1215_v49 = vrot.slane %v3186_v14, %v3827_v21  ;;  %v3831_v2 = vld [vmem:[#allocation78_spill] sm:$0xff]  ;;  %v3837_v38 = vld [vmem:[#allocation77_spill] sm:$0xff] }
  0xf8   :  { %v1208_v46 = vadd.f32 %v1200_v0, %v1186_v11  ;;  %v1222_v58 = vmul.f32 %v3015_v12, %v3023_v36  ;;  %v1223_v54 = vmul.f32 %v3015_v12, %v3027_v24  ;;  %v1224_v18 = vmul.f32 %v3015_v12, %v1193_v22 }
  0xf9   :  { %v1145_v31 = vadd.f32 %v1137_v6, %v1128_v56  ;;  %v1188_v59 = vadd.f32 %v1180_v26, %v1144_v20  ;;  %v1209_v40 = vadd.f32 %v1201_v35, %v1187_v34  ;;  %v1225_v9 = vmul.f32 %v3015_v12, %v1215_v49  ;;  %v3834_v6 = vld [vmem:[#allocation80_spill] sm:$0xff]  ;;  %v3836_v26 = vld [vmem:[#allocation73_spill] sm:$0xff] }
  0xfa   :  { %v1230_v51 = vadd.f32 %v1222_v58, %v1208_v46  ;;  %v1240_v16 = vmul.f32 %v3829_v42, %v3027_v24  ;;  %v1241_v57 = vmul.f32 %v3829_v42, %v1193_v22  ;;  %v1242_v36 = vmul.f32 %v3829_v42, %v1215_v49 }
  0xfb   :  { %v1189_v27 = vadd.f32 %v1181_v5, %v1145_v31  ;;  %v1210_v37 = vadd.f32 %v1202_v61, %v1188_v59  ;;  %v1231_v44 = vadd.f32 %v1223_v54, %v1209_v40  ;;  %v1243_v7 = vmul.f32 0.0, %v3829_v42  ;;  %v3838_v61 = vld [vmem:[#allocation82_spill] sm:$0xff]  ;;  %v3839_v31 = vld [vmem:[#allocation83_spill] sm:$0xff] }
  0xfc   :  { %v1248_v62 = vadd.f32 %v1240_v16, %v1230_v51  ;;  %v1258_v53 = vmul.f32 %v3830_v25, %v1193_v22  ;;  %v1259_v12 = vmul.f32 %v3830_v25, %v1215_v49  ;;  %v1260_v52 = vmul.f32 0.0, %v3830_v25  ;;  %v3840_v16 = vld [vmem:[#allocation84_spill] sm:$0xff] }
  0xfd   :  { %v1211_v8 = vadd.f32 %v1203_v19, %v1189_v27  ;;  %v1232_v55 = vadd.f32 %v1224_v18, %v1210_v37  ;;  %v1249_v30 = vadd.f32 %v1241_v57, %v1231_v44  ;;  %v1301_v47 = vmul.f32 %v3832_v3, %v3831_v2 }
  0xfe   :  { %v1265_v24 = vadd.f32 %v1258_v53, %v1248_v62  ;;  %v1302_v60 = vmul.f32 %v3832_v3, %v3833_v32  ;;  %v1303_v43 = vmul.f32 %v3832_v3, %v3834_v6  ;;  %v1304_v29 = vmul.f32 %v3832_v3, %v3835_v48 }
  0xff   :  { %v1233_v17 = vadd.f32 %v1225_v9, %v1211_v8  ;;  %v1250_v15 = vadd.f32 %v1242_v36, %v1232_v55  ;;  %v1266_v39 = vadd.f32 %v1259_v12, %v1249_v30  ;;  %v1316_v50 = vrot.slane %v3180_v45, %v3836_v26 }
 0x100   :  { %v1309_v10 = vadd.f32 %v1301_v47, %v1265_v24  ;;  %v1323_v4 = vmul.f32 %v3837_v38, %v3833_v32  ;;  %v1324_v22 = vmul.f32 %v3837_v38, %v3834_v6  ;;  %v1325_v1 = vmul.f32 %v3837_v38, %v3835_v48 }
 0x101   :  { %v1251_v5 = vadd.f32 %v1243_v7, %v1233_v17  ;;  %v1267_v11 = vadd.f32 %v1260_v52, %v1250_v15  ;;  %v1310_v21 = vadd.f32 %v1302_v60, %v1266_v39  ;;  %v1326_v0 = vmul.f32 %v3837_v38, %v1316_v50 }
 0x102   :  { %v1331_v35 = vadd.f32 %v1323_v4, %v1309_v10  ;;  %v1338_v56 = vrot.slane %v3186_v14, %v3836_v26  ;;  %v1345_v19 = vmul.f32 %v3838_v61, %v3834_v6  ;;  %v1346_v46 = vmul.f32 %v3838_v61, %v3835_v48 }
 0x103   :  { %v1268_v20 = vadd.f32 %v1260_v52, %v1251_v5  ;;  %v1311_v45 = vadd.f32 %v1303_v43, %v1267_v11  ;;  %v1332_v34 = vadd.f32 %v1324_v22, %v1310_v21  ;;  %v1347_v49 = vmul.f32 %v3838_v61, %v1316_v50  ;;  %v3841_v52 = vld [vmem:[#allocation85_spill] sm:$0xff] }
 0x104   :  { %v1348_v58 = vmul.f32 %v3838_v61, %v1338_v56  ;;  %v1363_v59 = vmul.f32 %v3839_v31, %v3835_v48  ;;  %v1353_v18 = vadd.f32 %v1345_v19, %v1331_v35  ;;  %v1364_v14 = vmul.f32 %v3839_v31, %v1316_v50 }
 0x105   :  { %v1312_v40 = vadd.f32 %v1304_v29, %v1268_v20  ;;  %v1333_v54 = vadd.f32 %v1325_v1, %v1311_v45  ;;  %v1354_v9 = vadd.f32 %v1346_v46, %v1332_v34  ;;  %v1365_v51 = vmul.f32 %v3839_v31, %v1338_v56 }
 0x106   :  { %v1366_v42 = vmul.f32 0.0, %v3839_v31  ;;  %v1381_v27 = vmul.f32 %v3840_v16, %v1316_v50  ;;  %v1371_v57 = vadd.f32 %v1363_v59, %v1353_v18  ;;  %v1382_v36 = vmul.f32 %v3840_v16, %v1338_v56 }
 0x107   :  { %v1334_v37 = vadd.f32 %v1326_v0, %v1312_v40  ;;  %v1355_v44 = vadd.f32 %v1347_v49, %v1333_v54  ;;  %v1372_v7 = vadd.f32 %v1364_v14, %v1354_v9  ;;  %v1383_v62 = vmul.f32 0.0, %v3840_v16 }
 0x108   :  { %v1388_v8 = vadd.f32 %v1381_v27, %v1371_v57  ;;  %v1479_v3 = vcombine.high %v3172_v28, %v3172_v28  ;;  %v1442_v47 = vcombine.high %v3161_v23, %v3161_v23  ;;  %v1433_v11 = vrot.slane %v3161_v23, 7 }
 0x109   :  { %v1356_v25 = vadd.f32 %v1348_v58, %v1334_v37  ;;  %v1373_v53 = vadd.f32 %v1365_v51, %v1355_v44  ;;  %v1389_v55 = vadd.f32 %v1382_v36, %v1372_v7  ;;  %v1471_v20 = vrot.slane %v3172_v28, 7 }
 0x10a   :  { %v1398_v24 = vadd.f32 %v3841_v52, %v1388_v8  ;;  %1444 = vst.msk [vmem:[#allocation2 + $0x2] sm:$0x1] %vm1419_vm0, %v1442_v47  ;;  %1481 = vst.msk [vmem:[#allocation2 + $0x6] sm:$0x1] %vm1419_vm0, %v1479_v3  ;;  %v1449_v21 = vrot.slane %v1442_v47, 7  ;;  %v1434_v22 = vrot.slane %v1433_v11, 2 }
 0x10b   :  { %v1374_v30 = vadd.f32 %v1366_v42, %v1356_v25  ;;  %v1390_v12 = vadd.f32 %v1383_v62, %v1373_v53  ;;  %v1399_v2 = vadd.f32 %v3841_v52, %v1389_v55  ;;  %v1486_v45 = vrot.slane %v1479_v3, 7 }
 0x10c   :  { %v1406_v17 = vmax.f32 %v1398_v24, 0.0  ;;  %v1450_v0 = vrot.slane %v1449_v21, 2  ;;  %v1472_v34 = vrot.slane %v1471_v20, 2 }
 0x10d   :  { %v1391_v32 = vadd.f32 %v1383_v62, %v1374_v30  ;;  %v1400_v60 = vadd.f32 %v3841_v52, %v1390_v12  ;;  %v1407_v15 = vmax.f32 %v1399_v2, 0.0  ;;  %v1487_v46 = vrot.slane %v1486_v45, 2 }
 0x10f   :  { %v1401_v39 = vadd.f32 %v3841_v52, %v1391_v32  ;;  %v1408_v6 = vmax.f32 %v1400_v60, 0.0  ;;  %v1413_v43 = vadd.f32 %v1407_v15, %v1406_v17 }
 0x111   :  { %v1409_v48 = vmax.f32 %v1401_v39, 0.0  ;;  %v1414_v29 = vadd.f32 %v1413_v43, %v1408_v6 }
 0x113   :  { %v1415_v10 = vadd.f32 %v1414_v29, %v1409_v48 }
 0x115   :  { %v1418_v26 = vmul.f32 0.25, %v1415_v10 }
 0x117   :  { %v1502_v50 = vrot.slane %v1418_v26, %v3139_v13  ;;  %v1530_v38 = vcombine.high %v1418_v26, %v1418_v26  ;;  %1494 = vst.msk [vmem:[#allocation2 + $0x8] sm:$0x1] %vm1419_vm0, %v1418_v26 }
 0x119   :  { %v1515_v63 = vcombine.high %v1502_v50, %v1502_v50  ;;  %1503 = vrot.lane.b32.xlu0 %v1502_v50, %s2332_s14  ;;  %v1537_v4 = vrot.slane %v1530_v38, %v3139_v13  ;;  %v1507_v1 = vrot.slane %v1502_v50, 7 }
 0x11b   :  { %1518 = vrot.lane.b32.xlu1 %v1515_v63, %s2332_s14  ;;  %v1552_v5 = vcombine.high %v1537_v4, %v1537_v4  ;;  %1517 = vst.msk [vmem:[#allocation2 + $0xa] sm:$0x1] %vm1419_vm0, %v1515_v63  ;;  %1539 = vst.msk [vmem:[#allocation2 + $0xc] sm:$0x1] %vm1419_vm0, %v1537_v4  ;;  %v1522_v35 = vrot.slane %v1515_v63, 7  ;;  %v1508_v56 = vrot.slane %v1507_v1, 2 }
 0x11c   :  { %v1544_v61 = vrot.slane %v1537_v4, 7 }
 0x11d   :  { %1445 = vrot.lane.b32.xlu0 %v1442_v47, %s2332_s14  ;;  %1554 = vst.msk [vmem:[#allocation2 + $0xe] sm:$0x1] %vm1419_vm0, %v1552_v5  ;;  %v1523_v23 = vrot.slane %v1522_v35, 2  ;;  %v1559_v49 = vrot.slane %v1552_v5, 7 }
 0x11e   :  { %v1545_v28 = vrot.slane %v1544_v61, 2 }
 0x11f   :  { %1482 = vrot.lane.b32.xlu1 %v1479_v3, %s2332_s14  ;;  %v1560_v31 = vrot.slane %v1559_v49, 2 }
 0x121   :  { %1540 = vrot.lane.b32.xlu0 %v1537_v4, %s2332_s14 }
 0x123   :  { %1555 = vrot.lane.b32.xlu1 %v1552_v5, %s2332_s14 }
 0x125   :  { %1435 = vrot.lane.b32.xlu0 %v1434_v22, %s2332_s14 }
 0x127   :  { %1451 = vrot.lane.b32.xlu1 %v1450_v0, %s2332_s14 }
 0x129   :  { %1509 = vrot.lane.b32.xlu0 %v1508_v56, %s2332_s14 }
 0x12a   :  { %v1430_v19 = vpop.permute.xlu0 %1429 }
 0x12b   :  { %1524 = vrot.lane.b32.xlu1 %v1523_v23, %s2332_s14  ;;  %1432 = vst.msk [vmem:[#allocation2 + $0x1] sm:$0x1] %vm1419_vm0, %v1430_v19 }
 0x12c   :  { %v1468_v58 = vpop.permute.xlu1 %1467  ;;  %1441 = vst.msk [vmem:[#allocation2 + $0x1] sm:$0x1] %vm1438_vm1, %v1434_v22 }
 0x12d   :  { %1473 = vrot.lane.b32.xlu0 %v1472_v34, %s2332_s14  ;;  %1470 = vst.msk [vmem:[#allocation2 + $0x5] sm:$0x1] %vm1419_vm0, %v1468_v58 }
 0x12e   :  { %1478 = vst.msk [vmem:[#allocation2 + $0x5] sm:$0x1] %vm1438_vm1, %v1472_v34 }
 0x12f   :  { %1488 = vrot.lane.b32.xlu1 %v1487_v46, %s2332_s14 }
 0x131   :  { %1546 = vrot.lane.b32.xlu0 %v1545_v28, %s2332_s14 }
 0x133   :  { %1561 = vrot.lane.b32.xlu1 %v1560_v31, %s2332_s14 }
 0x18b   :  { %v1504_v59 = vpop.permute.xlu0 %1503 }
 0x18c   :  { %1506 = vst.msk [vmem:[#allocation2 + $0x9] sm:$0x1] %vm1419_vm0, %v1504_v59 }
 0x18d   :  { %v1519_v40 = vpop.permute.xlu1 %1518  ;;  %1514 = vst.msk [vmem:[#allocation2 + $0x9] sm:$0x1] %vm1438_vm1, %v1508_v56 }
 0x18e   :  { %1521 = vst.msk [vmem:[#allocation2 + $0xb] sm:$0x1] %vm1419_vm0, %v1519_v40 }
 0x18f   :  { %1529 = vst.msk [vmem:[#allocation2 + $0xb] sm:$0x1] %vm1438_vm1, %v1523_v23  ;;  %v1446_v54 = vpop.permute.xlu0 %1445 }
 0x190   :  { %1448 = vst.msk [vmem:[#allocation2 + $0x3] sm:$0x1] %vm1419_vm0, %v1446_v54 }
 0x191   :  { %v1483_v18 = vpop.permute.xlu1 %1482  ;;  %1456 = vst.msk [vmem:[#allocation2 + $0x3] sm:$0x1] %vm1438_vm1, %v1450_v0 }
 0x192   :  { %1485 = vst.msk [vmem:[#allocation2 + $0x7] sm:$0x1] %vm1419_vm0, %v1483_v18 }
 0x193   :  { %1493 = vst.msk [vmem:[#allocation2 + $0x7] sm:$0x1] %vm1438_vm1, %v1487_v46  ;;  %v1541_v14 = vpop.permute.xlu0 %1540 }
 0x194   :  { %1543 = vst.msk [vmem:[#allocation2 + $0xd] sm:$0x1] %vm1419_vm0, %v1541_v14 }
 0x195   :  { %v1556_v9 = vpop.permute.xlu1 %1555  ;;  %1551 = vst.msk [vmem:[#allocation2 + $0xd] sm:$0x1] %vm1438_vm1, %v1545_v28 }
 0x196   :  { %1558 = vst.msk [vmem:[#allocation2 + $0xf] sm:$0x1] %vm1419_vm0, %v1556_v9 }
 0x197   :  { %1566 = vst.msk [vmem:[#allocation2 + $0xf] sm:$0x1] %vm1438_vm1, %v1560_v31  ;;  %v1436_v51 = vpop.permute.xlu0 %1435 }
 0x198   :  { %1439 = vst.msk [vmem:[#allocation2] sm:$0x1] %vm1438_vm1, %v1436_v51 }
 0x199   :  { %v1452_v42 = vpop.permute.xlu1 %1451 }
 0x19a   :  { %1454 = vst.msk [vmem:[#allocation2 + $0x2] sm:$0x1] %vm1438_vm1, %v1452_v42 }
 0x19b   :  { %v1510_v16 = vpop.permute.xlu0 %1509 }
 0x19c   :  { %1512 = vst.msk [vmem:[#allocation2 + $0x8] sm:$0x1] %vm1438_vm1, %v1510_v16 }
 0x19d   :  { %v1525_v27 = vpop.permute.xlu1 %1524 }
 0x19e   :  { %1527 = vst.msk [vmem:[#allocation2 + $0xa] sm:$0x1] %vm1438_vm1, %v1525_v27 }
 0x19f   :  { %v1474_v37 = vpop.permute.xlu0 %1473 }
 0x1a0   :  { %1476 = vst.msk [vmem:[#allocation2 + $0x4] sm:$0x1] %vm1438_vm1, %v1474_v37 }
 0x1a1   :  { %v1489_v44 = vpop.permute.xlu1 %1488 }
 0x1a2   :  { %1491 = vst.msk [vmem:[#allocation2 + $0x6] sm:$0x1] %vm1438_vm1, %v1489_v44 }
 0x1a3   :  { %v1547_v57 = vpop.permute.xlu0 %1546 }
 0x1a4   :  { %1549 = vst.msk [vmem:[#allocation2 + $0xc] sm:$0x1] %vm1438_vm1, %v1547_v57 }
 0x1a5   :  { %v1562_v36 = vpop.permute.xlu1 %1561 }
 0x1a6   :  { %1564 = vst.msk [vmem:[#allocation2 + $0xe] sm:$0x1] %vm1438_vm1, %v1562_v36 }
 0x1a9   :  { %v1567_v7 = vld [vmem:[#allocation2] sm:$0xff] }
 0x1aa   :  { %v1571_v62 = vcombine.high %v1567_v7, %v1567_v7  ;;  %v3495_v25 = vrot.slane %v1567_v7, %v3139_v13 }
 0x1ac   :  { %v3498_v53 = vrot.slane %v1571_v62, %v3139_v13  ;;  %v1586_v8 = vcombine.high %v3495_v25, %v3495_v25  ;;  %v1613_v55 = vpack.c.bf16 %v3495_v25, %v3495_v25 }
 0x1ad   :  { %v1568_v30 = vld [vmem:[#allocation2 + $0x8] sm:$0xff] }
 0x1ae   :  { %v1587_v12 = vcombine.high %v3498_v53, %v3498_v53  ;;  %v1614_v52 = vpack.c.bf16 %v1586_v8, %v1586_v8  ;;  %v1615_v24 = vpack.c.bf16 %v3498_v53, %v3498_v53  ;;  %v1588_v2 = vcombine.high %v1568_v30, %v1568_v30 }
 0x1af   :  { %v3509_v3 = vrot.slane %v1568_v30, %v3139_v13 }
 0x1b0   :  { %v1616_v47 = vpack.c.bf16 %v1587_v12, %v1587_v12  ;;  %v3512_v32 = vrot.slane %v1588_v2, %v3139_v13 }
 0x1b1   :  { %v3516_v60 = vcombine.high %v3509_v3, %v3509_v3  ;;  %v1617_v17 = vpack.c.bf16 %v3509_v3, %v3509_v3 }
 0x1b2   :  { %v3522_v15 = vcombine.high %v3512_v32, %v3512_v32  ;;  %v1619_v39 = vpack.c.bf16 %v3512_v32, %v3512_v32 }
 0x1b3   :  { %v1618_v6 = vpack.c.bf16 %v3516_v60, %v3516_v60 }
 0x1b4   :  { %v1620_v13 = vpack.c.bf16 %v3522_v15, %v3522_v15 }
 0x1b5   :  { %2321 = dma.done.wait [#allocation5], 16384 }
 0x1b6   :  { %2322 = vsyncadd [#allocation5], 4294950912  ;;  %1838 = vmatprep.mubr.bf16.mxu0 %v1616_v47  ;;  %1797 = vmatprep.mubr.bf16.mxu1 %v1614_v52  ;;  %v1658_v43 = vld [vmem:[#allocation3 + $0x108] sm:$0xff]  ;;  %v1657_v48 = vld [vmem:[#allocation3 + $0x100] sm:$0xff] }
 0x1b7   :  { %v1660_v29 = vld [vmem:[#allocation3 + $0x118] sm:$0xff]  ;;  %1806 = vmatprep.subr.bf16.mxu0 %v1658_v43  ;;  %v1659_v10 = vld [vmem:[#allocation3 + $0x110] sm:$0xff]  ;;  %v1662_v26 = vld [vmem:[#allocation3 + $0x128] sm:$0xff] }
 0x1b8   :  { %1807 = vmatpush1.bf16.msra.mxu0 %v1657_v48  ;;  %v1661_v50 = vld [vmem:[#allocation3 + $0x120] sm:$0xff]  ;;  %v1664_v38 = vld [vmem:[#allocation3 + $0x138] sm:$0xff]  ;;  %v1663_v63 = vld [vmem:[#allocation3 + $0x130] sm:$0xff] }
 0x1b9   :  { %1808 = vmatprep.subr.bf16.mxu0 %v1660_v29  ;;  %v1666_v4 = vld [vmem:[#allocation3 + $0x148] sm:$0xff]  ;;  %v1665_v5 = vld [vmem:[#allocation3 + $0x140] sm:$0xff]  ;;  %v1668_v11 = vld [vmem:[#allocation3 + $0x158] sm:$0xff] }
 0x1ba   :  { %v1667_v21 = vld [vmem:[#allocation3 + $0x150] sm:$0xff]  ;;  %v1670_v22 = vld [vmem:[#allocation3 + $0x168] sm:$0xff]  ;;  %v1625_v0 = vld [vmem:[#allocation3] sm:$0xff] }
 0x1bb   :  { %v1626_v1 = vld [vmem:[#allocation3 + $0x8] sm:$0xff]  ;;  %v1628_v35 = vld [vmem:[#allocation3 + $0x18] sm:$0xff]  ;;  %v1669_v56 = vld [vmem:[#allocation3 + $0x160] sm:$0xff] }
 0x1bc   :  { %1809 = vmatpush1.bf16.msra.mxu0 %v1659_v10  ;;  %1765 = vmatprep.subr.bf16.mxu1 %v1626_v1  ;;  %v1627_v20 = vld [vmem:[#allocation3 + $0x10] sm:$0xff]  ;;  %v1672_v23 = vld [vmem:[#allocation3 + $0x178] sm:$0xff]  ;;  %v1630_v45 = vld [vmem:[#allocation3 + $0x28] sm:$0xff] }
 0x1bd   :  { %1810 = vmatprep.subr.bf16.mxu0 %v1662_v26  ;;  %1766 = vmatpush1.bf16.msra.mxu1 %v1625_v0  ;;  %v1671_v34 = vld [vmem:[#allocation3 + $0x170] sm:$0xff]  ;;  %v1629_v61 = vld [vmem:[#allocation3 + $0x20] sm:$0xff]  ;;  %v1674_v19 = vld [vmem:[#allocation3 + $0x188] sm:$0xff] }
 0x1be   :  { %1767 = vmatprep.subr.bf16.mxu1 %v1628_v35  ;;  %v1632_v46 = vld [vmem:[#allocation3 + $0x38] sm:$0xff]  ;;  %v1673_v49 = vld [vmem:[#allocation3 + $0x180] sm:$0xff]  ;;  %v1631_v58 = vld [vmem:[#allocation3 + $0x30] sm:$0xff] }
 0x1bf   :  { %v1676_v28 = vld [vmem:[#allocation3 + $0x198] sm:$0xff]  ;;  %v1634_v31 = vld [vmem:[#allocation3 + $0x48] sm:$0xff]  ;;  %v1675_v59 = vld [vmem:[#allocation3 + $0x190] sm:$0xff] }
 0x1c0   :  { %1811 = vmatpush1.bf16.msra.mxu0 %v1661_v50  ;;  %v1633_v40 = vld [vmem:[#allocation3 + $0x40] sm:$0xff]  ;;  %v1678_v54 = vld [vmem:[#allocation3 + $0x1a8] sm:$0xff]  ;;  %v1636_v18 = vld [vmem:[#allocation3 + $0x58] sm:$0xff] }
 0x1c1   :  { %1812 = vmatprep.subr.bf16.mxu0 %v1664_v38  ;;  %1768 = vmatpush1.bf16.msra.mxu1 %v1627_v20  ;;  %v1677_v14 = vld [vmem:[#allocation3 + $0x1a0] sm:$0xff]  ;;  %v1635_v9 = vld [vmem:[#allocation3 + $0x50] sm:$0xff]  ;;  %v1680_v51 = vld [vmem:[#allocation3 + $0x1b8] sm:$0xff] }
 0x1c2   :  { %1769 = vmatprep.subr.bf16.mxu1 %v1630_v45  ;;  %v1638_v42 = vld [vmem:[#allocation3 + $0x68] sm:$0xff]  ;;  %v1679_v16 = vld [vmem:[#allocation3 + $0x1b0] sm:$0xff]  ;;  %v1637_v27 = vld [vmem:[#allocation3 + $0x60] sm:$0xff] }
 0x1c3   :  { %v1682_v37 = vld [vmem:[#allocation3 + $0x1c8] sm:$0xff]  ;;  %v1640_v44 = vld [vmem:[#allocation3 + $0x78] sm:$0xff]  ;;  %v1681_v57 = vld [vmem:[#allocation3 + $0x1c0] sm:$0xff] }
 0x1c4   :  { %1813 = vmatpush1.bf16.msra.mxu0 %v1663_v63  ;;  %v1639_v36 = vld [vmem:[#allocation3 + $0x70] sm:$0xff]  ;;  %v1684_v7 = vld [vmem:[#allocation3 + $0x1d8] sm:$0xff]  ;;  %v1642_v62 = vld [vmem:[#allocation3 + $0x88] sm:$0xff] }
 0x1c5   :  { %1814 = vmatprep.subr.bf16.mxu0 %v1666_v4  ;;  %1770 = vmatpush1.bf16.msra.mxu1 %v1629_v61  ;;  %v1683_v8 = vld [vmem:[#allocation3 + $0x1d0] sm:$0xff]  ;;  %v1641_v30 = vld [vmem:[#allocation3 + $0x80] sm:$0xff]  ;;  %v1686_v12 = vld [vmem:[#allocation3 + $0x1e8] sm:$0xff] }
 0x1c6   :  { %1771 = vmatprep.subr.bf16.mxu1 %v1632_v46  ;;  %v1644_v52 = vld [vmem:[#allocation3 + $0x98] sm:$0xff]  ;;  %v1685_v2 = vld [vmem:[#allocation3 + $0x1e0] sm:$0xff]  ;;  %v1643_v47 = vld [vmem:[#allocation3 + $0x90] sm:$0xff] }
 0x1c7   :  { %v1688_v43 = vld [vmem:[#allocation3 + $0x1f8] sm:$0xff]  ;;  %v1646_v48 = vld [vmem:[#allocation3 + $0xa8] sm:$0xff]  ;;  %v1687_v29 = vld [vmem:[#allocation3 + $0x1f0] sm:$0xff] }
 0x1c8   :  { %1815 = vmatpush1.bf16.msra.mxu0 %v1665_v5  ;;  %v1645_v10 = vld [vmem:[#allocation3 + $0xa0] sm:$0xff]  ;;  %v1690_v26 = vld [vmem:[#allocation3 + $0x208] sm:$0xff]  ;;  %v1648_v50 = vld [vmem:[#allocation3 + $0xb8] sm:$0xff] }
 0x1c9   :  { %1816 = vmatprep.subr.bf16.mxu0 %v1668_v11  ;;  %1772 = vmatpush1.bf16.msra.mxu1 %v1631_v58  ;;  %v1689_v38 = vld [vmem:[#allocation3 + $0x200] sm:$0xff]  ;;  %v1692_v63 = vld [vmem:[#allocation3 + $0x218] sm:$0xff]  ;;  %v1647_v4 = vld [vmem:[#allocation3 + $0xb0] sm:$0xff] }
 0x1ca   :  { %1773 = vmatprep.subr.bf16.mxu1 %v1634_v31  ;;  %v1650_v5 = vld [vmem:[#allocation3 + $0xc8] sm:$0xff]  ;;  %v1691_v11 = vld [vmem:[#allocation3 + $0x210] sm:$0xff]  ;;  %v1652_v1 = vld [vmem:[#allocation3 + $0xd8] sm:$0xff] }
 0x1cb   :  { %v1693_v0 = vld [vmem:[#allocation3 + $0x220] sm:$0xff]  ;;  %v1696_v35 = vld [vmem:[#allocation3 + $0x238] sm:$0xff]  ;;  %v1651_v53 = vld [vmem:[#allocation3 + $0xd0] sm:$0xff] }
 0x1cc   :  { %1817 = vmatpush1.bf16.msra.mxu0 %v1667_v21  ;;  %v1694_v21 = vld [vmem:[#allocation3 + $0x228] sm:$0xff]  ;;  %v1656_v20 = vld [vmem:[#allocation3 + $0xf8] sm:$0xff]  ;;  %v1699_v61 = vld [vmem:[#allocation3 + $0x250] sm:$0xff] }
 0x1cd   :  { %1818 = vmatprep.subr.bf16.mxu0 %v1670_v22  ;;  %1774 = vmatpush1.bf16.msra.mxu1 %v1633_v40  ;;  %v1649_v22 = vld [vmem:[#allocation3 + $0xc0] sm:$0xff]  ;;  %v1698_v60 = vld [vmem:[#allocation3 + $0x248] sm:$0xff]  ;;  %v1700_v45 = vld [vmem:[#allocation3 + $0x258] sm:$0xff] }
 0x1ce   :  { %1775 = vmatprep.subr.bf16.mxu1 %v1636_v18  ;;  %v1701_v46 = vld [vmem:[#allocation3 + $0x260] sm:$0xff]  ;;  %v1703_v58 = vld [vmem:[#allocation3 + $0x270] sm:$0xff]  ;;  %v1712_v25 = vld [vmem:[#allocation3 + $0x2b8] sm:$0xff] }
 0x1cf   :  { %v1705_v31 = vld [vmem:[#allocation3 + $0x280] sm:$0xff]  ;;  %v1707_v40 = vld [vmem:[#allocation3 + $0x290] sm:$0xff]  ;;  %v1734_v15 = vld [vmem:[#allocation3 + $0x368] sm:$0xff] }
 0x1d0   :  { %1819 = vmatpush1.bf16.msra.mxu0 %v1669_v56  ;;  %v1695_v56 = vld [vmem:[#allocation3 + $0x230] sm:$0xff]  ;;  %v1709_v18 = vld [vmem:[#allocation3 + $0x2a0] sm:$0xff] }
 0x1d1   :  { %1820 = vmatprep.subr.bf16.mxu0 %v1672_v23  ;;  %1776 = vmatpush1.bf16.msra.mxu1 %v1635_v9  ;;  %v1697_v23 = vld [vmem:[#allocation3 + $0x240] sm:$0xff] }
 0x1d2   :  { %1777 = vmatprep.subr.bf16.mxu1 %v1638_v42  ;;  %v1713_v9 = vld [vmem:[#allocation3 + $0x2c0] sm:$0xff]  ;;  %v1715_v42 = vld [vmem:[#allocation3 + $0x2d0] sm:$0xff] }
 0x1d3   :  { %v1729_v3 = vld [vmem:[#allocation3 + $0x340] sm:$0xff] }
 0x1d4   :  { %1821 = vmatpush1.bf16.msra.mxu0 %v1671_v34  ;;  %v1655_v34 = vld [vmem:[#allocation3 + $0xf0] sm:$0xff] }
 0x1d5   :  { %1822 = vmatprep.subr.bf16.mxu0 %v1674_v19  ;;  %1778 = vmatpush1.bf16.msra.mxu1 %v1637_v27  ;;  %v1702_v19 = vld [vmem:[#allocation3 + $0x268] sm:$0xff]  ;;  %v1717_v27 = vld [vmem:[#allocation3 + $0x2e0] sm:$0xff] }
 0x1d6   :  { %1779 = vmatprep.subr.bf16.mxu1 %v1640_v44  ;;  %v1719_v44 = vld [vmem:[#allocation3 + $0x2f0] sm:$0xff] }
 0x1d8   :  { %1823 = vmatpush1.bf16.msra.mxu0 %v1673_v49  ;;  %v1704_v49 = vld [vmem:[#allocation3 + $0x278] sm:$0xff] }
 0x1d9   :  { %1824 = vmatprep.subr.bf16.mxu0 %v1676_v28  ;;  %1780 = vmatpush1.bf16.msra.mxu1 %v1639_v36  ;;  %v1706_v28 = vld [vmem:[#allocation3 + $0x288] sm:$0xff]  ;;  %v1721_v36 = vld [vmem:[#allocation3 + $0x300] sm:$0xff] }
 0x1da   :  { %1781 = vmatprep.subr.bf16.mxu1 %v1642_v62  ;;  %v1723_v62 = vld [vmem:[#allocation3 + $0x310] sm:$0xff] }
 0x1dc   :  { %1825 = vmatpush1.bf16.msra.mxu0 %v1675_v59  ;;  %v1708_v59 = vld [vmem:[#allocation3 + $0x298] sm:$0xff] }
 0x1dd   :  { %1826 = vmatprep.subr.bf16.mxu0 %v1678_v54  ;;  %1782 = vmatpush1.bf16.msra.mxu1 %v1641_v30  ;;  %v1710_v54 = vld [vmem:[#allocation3 + $0x2a8] sm:$0xff]  ;;  %v1725_v30 = vld [vmem:[#allocation3 + $0x320] sm:$0xff] }
 0x1de   :  { %1783 = vmatprep.subr.bf16.mxu1 %v1644_v52  ;;  %v1727_v52 = vld [vmem:[#allocation3 + $0x330] sm:$0xff] }
 0x1e0   :  { %1827 = vmatpush1.bf16.msra.mxu0 %v1677_v14  ;;  %v1714_v14 = vld [vmem:[#allocation3 + $0x2c8] sm:$0xff] }
 0x1e1   :  { %1828 = vmatprep.subr.bf16.mxu0 %v1680_v51  ;;  %1784 = vmatpush1.bf16.msra.mxu1 %v1643_v47  ;;  %v1716_v51 = vld [vmem:[#allocation3 + $0x2d8] sm:$0xff]  ;;  %v1731_v47 = vld [vmem:[#allocation3 + $0x350] sm:$0xff] }
 0x1e2   :  { %1785 = vmatprep.subr.bf16.mxu1 %v1646_v48  ;;  %v1735_v48 = vld [vmem:[#allocation3 + $0x370] sm:$0xff] }
 0x1e4   :  { %1829 = vmatpush1.bf16.msra.mxu0 %v1679_v16  ;;  %v1718_v16 = vld [vmem:[#allocation3 + $0x2e8] sm:$0xff] }
 0x1e5   :  { %1830 = vmatprep.subr.bf16.mxu0 %v1682_v37  ;;  %1786 = vmatpush1.bf16.msra.mxu1 %v1645_v10  ;;  %v1720_v37 = vld [vmem:[#allocation3 + $0x2f8] sm:$0xff]  ;;  %v1737_v10 = vld [vmem:[#allocation3 + $0x380] sm:$0xff] }
 0x1e6   :  { %1787 = vmatprep.subr.bf16.mxu1 %v1648_v50  ;;  %v1739_v50 = vld [vmem:[#allocation3 + $0x390] sm:$0xff] }
 0x1e8   :  { %1831 = vmatpush1.bf16.msra.mxu0 %v1681_v57  ;;  %v1722_v57 = vld [vmem:[#allocation3 + $0x308] sm:$0xff] }
 0x1e9   :  { %1832 = vmatprep.subr.bf16.mxu0 %v1684_v7  ;;  %1788 = vmatpush1.bf16.msra.mxu1 %v1647_v4  ;;  %v1724_v7 = vld [vmem:[#allocation3 + $0x318] sm:$0xff] }
 0x1ea   :  { %1789 = vmatprep.subr.bf16.mxu1 %v1650_v5  ;;  %v1744_v4 = vld [vmem:[#allocation3 + $0x3b8] sm:$0xff]  ;;  %v1743_v5 = vld [vmem:[#allocation3 + $0x3b0] sm:$0xff] }
 0x1ec   :  { %1833 = vmatpush1.bf16.msra.mxu0 %v1683_v8  ;;  %v1726_v8 = vld [vmem:[#allocation3 + $0x328] sm:$0xff] }
 0x1ed   :  { %1834 = vmatprep.subr.bf16.mxu0 %v1686_v12  ;;  %1790 = vmatpush1.bf16.msra.mxu1 %v1649_v22  ;;  %v1728_v12 = vld [vmem:[#allocation3 + $0x338] sm:$0xff] }
 0x1ee   :  { %1791 = vmatprep.subr.bf16.mxu1 %v1652_v1  ;;  %v1748_v22 = vld [vmem:[#allocation3 + $0x3d8] sm:$0xff]  ;;  %v1747_v1 = vld [vmem:[#allocation3 + $0x3d0] sm:$0xff] }
 0x1f0   :  { %1835 = vmatpush1.bf16.msra.mxu0 %v1685_v2  ;;  %v1730_v2 = vld [vmem:[#allocation3 + $0x348] sm:$0xff] }
 0x1f1   :  { %1836 = vmatprep.subr.bf16.mxu0 %v1688_v43  ;;  %1792 = vmatpush1.bf16.msra.mxu1 %v1651_v53  ;;  %v1736_v43 = vld [vmem:[#allocation3 + $0x378] sm:$0xff] }
 0x1f2   :  { %v1752_v53 = vld [vmem:[#allocation3 + $0x3f8] sm:$0xff] }
 0x1f4   :  { %1837 = vmatpush1.bf16.msra.mxu0 %v1687_v29  ;;  %v1738_v29 = vld [vmem:[#allocation3 + $0x388] sm:$0xff] }
 0x1f5   :  { %1847 = vmatprep.subr.bf16.mxu0 %v1690_v26  ;;  %v1740_v26 = vld [vmem:[#allocation3 + $0x398] sm:$0xff] }
 0x1f7   :  { %1839 = vmatmul.mubr.bf16.vlgmr.msra.gmra.mrb[0].mxu0 %v1615_v24  ;;  %v1654_v24 = vld [vmem:[#allocation3 + $0xe8] sm:$0xff] }
 0x1f8   :  { %1848 = vmatpush1.bf16.msra.mxu0 %v1689_v38  ;;  %1879 = vmatprep.mubr.bf16.mxu0 %v1618_v6  ;;  %v1653_v6 = vld [vmem:[#allocation3 + $0xe0] sm:$0xff]  ;;  %v1742_v38 = vld [vmem:[#allocation3 + $0x3a8] sm:$0xff] }
 0x1f9   :  { %1849 = vmatprep.subr.bf16.mxu0 %v1692_v63  ;;  %1793 = vmatprep.subr.bf16.mxu1 %v1654_v24  ;;  %v1741_v63 = vld [vmem:[#allocation3 + $0x3a0] sm:$0xff]  ;;  %v1751_v24 = vld [vmem:[#allocation3 + $0x3f0] sm:$0xff] }
 0x1fa   :  { %1794 = vmatpush1.bf16.msra.mxu1 %v1653_v6 }
 0x1fb   :  { %1795 = vmatprep.subr.bf16.mxu1 %v1656_v20 }
 0x1fc   :  { %1850 = vmatpush1.bf16.msra.mxu0 %v1691_v11  ;;  %v1746_v11 = vld [vmem:[#allocation3 + $0x3c8] sm:$0xff] }
 0x1fd   :  { %1851 = vmatprep.subr.bf16.mxu0 %v1694_v21  ;;  %v1745_v21 = vld [vmem:[#allocation3 + $0x3c0] sm:$0xff] }
 0x1fe   :  { %1796 = vmatpush1.bf16.msra.mxu1 %v1655_v34 }
 0x200   :  { %1852 = vmatpush1.bf16.msra.mxu0 %v1693_v0  ;;  %v1750_v0 = vld [vmem:[#allocation3 + $0x3e8] sm:$0xff] }
 0x201   :  { %1853 = vmatprep.subr.bf16.mxu0 %v1696_v35  ;;  %1798 = vmatmul.mubr.bf16.vlgmr.msra.gmra.mrb[0].mxu1 %v1613_v55  ;;  %v1711_v55 = vld [vmem:[#allocation3 + $0x2b0] sm:$0xff]  ;;  %v1749_v35 = vld [vmem:[#allocation3 + $0x3e0] sm:$0xff] }
 0x204   :  { %1854 = vmatpush1.bf16.msra.mxu0 %v1695_v56 }
 0x205   :  { %1855 = vmatprep.subr.bf16.mxu0 %v1698_v60 }
 0x208   :  { %1856 = vmatpush1.bf16.msra.mxu0 %v1697_v23  ;;  %v1753_v23 = vld [vmem:[%s3613_s2] sm:$0x3] }
 0x209   :  { %1857 = vmatprep.subr.bf16.mxu0 %v1700_v45  ;;  %v1758_v45 = vrot.slane %v1753_v23, %v2624_v41  ;;  %v1762_v34 = vrot.slane %v1753_v23, %v2657_v33 }
 0x20c   :  { %1858 = vmatpush1.bf16.msra.mxu0 %v1699_v61 }
 0x20d   :  { %1859 = vmatprep.subr.bf16.mxu0 %v1702_v19 }
 0x210   :  { %1860 = vmatpush1.bf16.msra.mxu0 %v1701_v46 }
 0x211   :  { %1861 = vmatprep.subr.bf16.mxu0 %v1704_v49 }
 0x214   :  { %1862 = vmatpush1.bf16.msra.mxu0 %v1703_v58 }
 0x215   :  { %1863 = vmatprep.subr.bf16.mxu0 %v1706_v28 }
 0x218   :  { %1864 = vmatpush1.bf16.msra.mxu0 %v1705_v31 }
 0x219   :  { %1865 = vmatprep.subr.bf16.mxu0 %v1708_v59 }
 0x21c   :  { %1866 = vmatpush1.bf16.msra.mxu0 %v1707_v40  ;;  %v3842_v40 = vld [vmem:[#allocation25_spill] sm:$0xff] }
 0x21d   :  { %1867 = vmatprep.subr.bf16.mxu0 %v1710_v54  ;;  %2181 = vmatprep.subr.bf16.mxu1 %v3842_v40 }
 0x220   :  { %1868 = vmatpush1.bf16.msra.mxu0 %v1709_v18 }
 0x221   :  { %1869 = vmatprep.subr.bf16.mxu0 %v1712_v25 }
 0x224   :  { %1870 = vmatpush1.bf16.msra.mxu0 %v1711_v55 }
 0x225   :  { %1871 = vmatprep.subr.bf16.mxu0 %v1714_v14 }
 0x228   :  { %1872 = vmatpush1.bf16.msra.mxu0 %v1713_v9 }
 0x229   :  { %1873 = vmatprep.subr.bf16.mxu0 %v1716_v51 }
 0x22c   :  { %1874 = vmatpush1.bf16.msra.mxu0 %v1715_v42 }
 0x22d   :  { %1875 = vmatprep.subr.bf16.mxu0 %v1718_v16 }
 0x230   :  { %1876 = vmatpush1.bf16.msra.mxu0 %v1717_v27 }
 0x231   :  { %1877 = vmatprep.subr.bf16.mxu0 %v1720_v37 }
 0x234   :  { %1878 = vmatpush1.bf16.msra.mxu0 %v1719_v44 }
 0x235   :  { %1888 = vmatprep.subr.bf16.mxu0 %v1722_v57 }
 0x237   :  { %1880 = vmatmul.mubr.bf16.vlgmr.msra.gmra.mrb[0].mxu0 %v1617_v17  ;;  %v1732_v17 = vld [vmem:[#allocation3 + $0x358] sm:$0xff] }
 0x238   :  { %1889 = vmatpush1.bf16.msra.mxu0 %v1721_v36  ;;  %1920 = vmatprep.mubr.bf16.mxu0 %v1620_v13  ;;  %v1733_v13 = vld [vmem:[#allocation3 + $0x360] sm:$0xff] }
 0x239   :  { %1890 = vmatprep.subr.bf16.mxu0 %v1724_v7 }
 0x23c   :  { %1891 = vmatpush1.bf16.msra.mxu0 %v1723_v62 }
 0x23d   :  { %1892 = vmatprep.subr.bf16.mxu0 %v1726_v8 }
 0x240   :  { %1893 = vmatpush1.bf16.msra.mxu0 %v1725_v30 }
 0x241   :  { %1894 = vmatprep.subr.bf16.mxu0 %v1728_v12 }
 0x244   :  { %1895 = vmatpush1.bf16.msra.mxu0 %v1727_v52 }
 0x245   :  { %1896 = vmatprep.subr.bf16.mxu0 %v1730_v2 }
 0x248   :  { %1897 = vmatpush1.bf16.msra.mxu0 %v1729_v3 }
 0x249   :  { %1898 = vmatprep.subr.bf16.mxu0 %v1732_v17 }
 0x24c   :  { %1899 = vmatpush1.bf16.msra.mxu0 %v1731_v47 }
 0x24d   :  { %1900 = vmatprep.subr.bf16.mxu0 %v1734_v15 }
 0x250   :  { %1901 = vmatpush1.bf16.msra.mxu0 %v1733_v13 }
 0x251   :  { %1902 = vmatprep.subr.bf16.mxu0 %v1736_v43 }
 0x254   :  { %1903 = vmatpush1.bf16.msra.mxu0 %v1735_v48 }
 0x255   :  { %1904 = vmatprep.subr.bf16.mxu0 %v1738_v29 }
 0x258   :  { %1905 = vmatpush1.bf16.msra.mxu0 %v1737_v10 }
 0x259   :  { %1906 = vmatprep.subr.bf16.mxu0 %v1740_v26 }
 0x25c   :  { %1907 = vmatpush1.bf16.msra.mxu0 %v1739_v50 }
 0x25d   :  { %1908 = vmatprep.subr.bf16.mxu0 %v1742_v38 }
 0x260   :  { %1909 = vmatpush1.bf16.msra.mxu0 %v1741_v63 }
 0x261   :  { %1910 = vmatprep.subr.bf16.mxu0 %v1744_v4 }
 0x264   :  { %1911 = vmatpush1.bf16.msra.mxu0 %v1743_v5 }
 0x265   :  { %1912 = vmatprep.subr.bf16.mxu0 %v1746_v11 }
 0x268   :  { %1913 = vmatpush1.bf16.msra.mxu0 %v1745_v21 }
 0x269   :  { %1914 = vmatprep.subr.bf16.mxu0 %v1748_v22 }
 0x26c   :  { %1915 = vmatpush1.bf16.msra.mxu0 %v1747_v1 }
 0x26d   :  { %1916 = vmatprep.subr.bf16.mxu0 %v1750_v0 }
 0x270   :  { %1917 = vmatpush1.bf16.msra.mxu0 %v1749_v35 }
 0x271   :  { %1918 = vmatprep.subr.bf16.mxu0 %v1752_v53 }
 0x274   :  { %1919 = vmatpush1.bf16.msra.mxu0 %v1751_v24 }
 0x277   :  { %1921 = vmatmul.mubr.bf16.vlgmr.msra.gmra.mrb[0].mxu0 %v1619_v39 }
 0x2d4   :  { %v1799_v56 = vpop.f32.mrb[0].mxu1 }
 0x2d5   :  { %v1801_v60 = vpop.f32.mrb[1].mxu1  ;;  %v1800_v61 = vadd.f32 %v1799_v56, %v1758_v45 }
 0x2d6   :  { %v1803_v6 = vpop.f32.mrb[2].mxu1  ;;  %v1802_v19 = vadd.f32 %v1801_v60, %v1762_v34 }
 0x2d7   :  { %v1804_v20 = vpop.f32.mrb[3].mxu1 }
 0x34a   :  { %v1922_v46 = vpop.f32.mrb[0].mxu0 }
 0x34b   :  { %v2233_v49 = vadd.f32 %v1922_v46, %v1800_v61  ;;  %v1924_v58 = vpop.f32.mrb[1].mxu0 }
 0x34c   :  { %v2235_v28 = vadd.f32 %v1924_v58, %v1802_v19  ;;  %v1926_v32 = vpop.f32.mrb[2].mxu0 }
 0x34d   :  { %v1929_v39 = vmax.f32 %v2233_v49, 0.0  ;;  %v1927_v31 = vpop.f32.mrb[3].mxu0 }
 0x34e   :  { %v1930_v59 = vmax.f32 %v2235_v28, 0.0 }
 0x350   :  { %v1936_v54 = vpack.c.bf16 %v1930_v59, %v1930_v59 }
 0x351   :  { %2323 = dma.done.wait [#allocation5 + $0x1], 2048 }
 0x352   :  { %2324 = vsyncadd [#allocation5 + $0x1], 4294965248  ;;  %v3843_v18 = vld [vmem:[#allocation17_spill] sm:$0xff]  ;;  %v3844_v41 = vld [vmem:[#allocation26_spill] sm:$0xff]  ;;  %1992 = vmatprep.mubr.bf16.mxu1 %v1936_v54  ;;  %v1935_v36 = vpack.c.bf16 %v1929_v39, %v1929_v39  ;;  %v2338_v8 = vmov 0.0   ;;  %vm2339_vm2 = vmmov 0  }
 0x353   :  { %2182 = vmatpush3.bf16.msra.mxu1 %v3843_v18  ;;  %v3845_v33 = vld [vmem:[#allocation18_spill] sm:$0xff]  ;;  %v3846_v25 = vld [vmem:[#allocation27_spill] sm:$0xff]  ;;  %v3848_v14 = vld [vmem:[#allocation28_spill] sm:$0xff]  ;;  %vm2113_vm3 = vcmask 33792  }
 0x354   :  { %2183 = vmatprep.subr.bf16.mxu1 %v3844_v41  ;;  %v3847_v55 = vld [vmem:[#allocation19_spill] sm:$0xff]  ;;  %v3849_v9 = vld [vmem:[#allocation20_spill] sm:$0xff]  ;;  %v3850_v51 = vld [vmem:[#allocation29_spill] sm:$0xff] }
 0x355   :  { %v3851_v42 = vld [vmem:[#allocation21_spill] sm:$0xff]  ;;  %v3852_v16 = vld [vmem:[#allocation30_spill] sm:$0xff]  ;;  %v3854_v37 = vld [vmem:[#allocation31_spill] sm:$0xff] }
 0x356   :  { %v3853_v27 = vld [vmem:[#allocation22_spill] sm:$0xff]  ;;  %v3855_v44 = vld [vmem:[#allocation23_spill] sm:$0xff]  ;;  %v3856_v57 = vld [vmem:[#allocation32_spill] sm:$0xff] }
 0x357   :  { %2184 = vmatpush3.bf16.msra.mxu1 %v3845_v33  ;;  %v3857_v7 = vld [vmem:[#allocation24_spill] sm:$0xff]  ;;  %v2269_v12 = vld [vmem:[%s3616_s5 + $0x10] sm:$0xff]   ;;  %v2270_v52 = vld [vmem:[%s3616_s5 + $0x18] sm:$0xff]  }
 0x358   :  { %2185 = vmatprep.subr.bf16.mxu1 %v3846_v25  ;;  %v2267_v62 = vld [vmem:[%s3616_s5] sm:$0xff]   ;;  %v2268_v30 = vld [vmem:[%s3616_s5 + $0x8] sm:$0xff]   ;;  %v2273_v17 = vld [vmem:[%s3616_s5 + $0x30] sm:$0xff]  }
 0x359   :  { %v2271_v2 = vld [vmem:[%s3616_s5 + $0x20] sm:$0xff]   ;;  %v2272_v3 = vld [vmem:[%s3616_s5 + $0x28] sm:$0xff]   ;;  %v2274_v47 = vld [vmem:[%s3616_s5 + $0x38] sm:$0xff]   ;;  %s2340_s5 = smov [#allocation9]  }
 0x35a   :  { %v2169_v13 = vld [vmem:[%s3613_s2 + $0x2] ss:$0 sm:$0xff]  ;;  %v2170_v63 = vld [vmem:[%s3613_s2 + $0x3] ss:$0 sm:$0xff]  ;;  %s2121_s9 = sshll.u32 %s2340_s5, 4  ;;  %s2122_s9 = int_to_ptr.vmem [resolvable:$true] %s2121_s9 }
 0x35b   :  { %2186 = vmatpush3.bf16.msra.mxu1 %v3847_v55  ;;  %s2297_s10 = scalar_lea.vmem %s2122_s9, 32  ;;  %p2302_p9 = scmp.lt.s32.totalorder %s2122_s9, %s2122_s9 }
 0x35c   :  { %2187 = vmatprep.subr.bf16.mxu1 %v3848_v14  ;;  %p2298_p8 = scmp.ne.s32.totalorder %s2122_s9, %s2297_s10  ;;  %p2303_p10 = scmp.lt.s32.totalorder %s2297_s10, %s2297_s10 }
 0x35e   :  { %p2304_p11 = por %p2303_p10, %p2302_p9 }
 0x35f   :  { %2188 = vmatpush3.bf16.msra.mxu1 %v3849_v9 }
 0x360   :  { %2189 = vmatprep.subr.bf16.mxu1 %v3850_v51  ;;  %p2305_p12 = pnand %p2304_p11, %p2298_p8 }
 0x363   :  { %2190 = vmatpush3.bf16.msra.mxu1 %v3851_v42 }
 0x364   :  { %2191 = vmatprep.subr.bf16.mxu1 %v3852_v16 }
 0x367   :  { %2192 = vmatpush3.bf16.msra.mxu1 %v3853_v27 }
 0x368   :  { %2193 = vmatprep.subr.bf16.mxu1 %v3854_v37 }
 0x36b   :  { %2194 = vmatpush3.bf16.msra.mxu1 %v3855_v44 }
 0x36c   :  { %2195 = vmatprep.subr.bf16.mxu1 %v3856_v57 }
 0x36f   :  { %2196 = vmatpush3.bf16.msra.mxu1 %v3857_v7 }
 0x370   :  { %2212 = vmatprep.subr.bf16.mxu1 %v2338_v8 }
 0x372   :  { %1993 = vmatmul.mubr.bf16.vlgmr.msra.gmra.mrb[4].mxu1 %v1935_v36 }
 0x373   :  { %2213 = vmatpush3.bf16.msra.mxu1 %v2267_v62  ;;  %2228 = vmatprep.mubr.msk.bf16.mxu1 %vm2339_vm2, %v2338_v8 }
 0x374   :  { %2214 = vmatprep.subr.bf16.mxu1 %v2338_v8 }
 0x377   :  { %2215 = vmatpush3.bf16.msra.mxu1 %v2268_v30 }
 0x378   :  { %2216 = vmatprep.subr.bf16.mxu1 %v2338_v8 }
 0x37b   :  { %2217 = vmatpush3.bf16.msra.mxu1 %v2269_v12 }
 0x37c   :  { %2218 = vmatprep.subr.bf16.mxu1 %v2338_v8 }
 0x37f   :  { %2219 = vmatpush3.bf16.msra.mxu1 %v2270_v52 }
 0x380   :  { %2220 = vmatprep.subr.bf16.mxu1 %v2338_v8 }
 0x383   :  { %2221 = vmatpush3.bf16.msra.mxu1 %v2271_v2 }
 0x384   :  { %2222 = vmatprep.subr.bf16.mxu1 %v2338_v8 }
 0x387   :  { %2223 = vmatpush3.bf16.msra.mxu1 %v2272_v3 }
 0x388   :  { %2224 = vmatprep.subr.bf16.mxu1 %v2338_v8 }
 0x38b   :  { %2225 = vmatpush3.bf16.msra.mxu1 %v2273_v17 }
 0x38c   :  { %2226 = vmatprep.subr.bf16.mxu1 %v2338_v8 }
 0x38f   :  { %2227 = vmatpush3.bf16.msra.mxu1 %v2274_v47 }
 0x445   :  { %v2197_v15 = vpop.f32.mrb[4].mxu1 }
 0x446   :  { %v2198_v43 = vpop.f32.mrb[5].mxu1 }
 0x447   :  { %v2199_v48 = vadd.f32 %v2198_v43, %v2197_v15  ;;  %v2200_v29 = vpop.f32.mrb[6].mxu1 }
 0x448   :  { %v2201_v10 = vpop.f32.mrb[7].mxu1 }
 0x449   :  { %v1995_v26 = vadd.f32 %v2199_v48, %v2169_v13 }
 0x44b   :  { %v2000_v50 = vmax.f32 %v1995_v26, 0.0 }
 0x44d   :  { %v2001_v38 = vpack.c.bf16 %v2000_v50, %v2000_v50 }
 0x44f   :  { %2229 = vmatmul.mubr.bf16.vlgmr.msra.gmra.mrb[8].mxu1 %v2001_v38 }
 0x522   :  { %v2107_v4 = vpop.f32.mrb[8].mxu1 }
 0x523   :  { %v2108_v5 = vadd.f32 %v2170_v63, %v2107_v4  ;;  %v2230_v11 = vpop.f32.mrb[9].mxu1 }
 0x524   :  { %v2110_v21 = vpop.f32.mrb[10].mxu1 }
 0x525   :  { %v2231_v22 = vpop.f32.mrb[11].mxu1  ;;  %2114 = vst.msk [vmem:[#allocation9] sm:$0x3] %vm2113_vm3, %v2108_v5 }
 0x526   :  { %2308 = shalt.err (!%p2305_p12)
}
 0x527   :  { %s2309_s2 = scalar_lea.hbm %s3617_s6, 32 }
 0x528   :  { %p2310_p13 = scmp.ne.s32.totalorder %s3617_s6, %s2309_s2  ;;  %p2313_p0 = scmp.lt.u32.totalorder %s2309_s2, %s3617_s6 }
 0x52a   :  { %p2315_p1 = pnand %p2313_p0, %p2310_p13 }
 0x52c   :  { %2318 = shalt.err (!%p2315_p1)
}
 0x52d   :  { %2124 = dma.vmem_to_hbm [thread:$0]  %s2122_s9, 32, %s3617_s6, [#allocation8]  }
 0x52e   :  { %2325 = dma.done.wait [#allocation8], 32  }
 0x52f   :  { %2326 = vsyncadd [#allocation8], 4294967264 }
 0x530   :  { %2128 = vsyncpa [#allocation7], 1 }
 0x531   :  { %2129 = vsyncpa [#allocation8], 1 }
 0x532   :  { %2130 = vsyncmov [#allocation5] }
 0x535   :  { %s2131_s17 = vpop.sfrf %2130 }
 0x536   :  { %p2179_p2 = scmp.ne.s32.totalorder %s2131_s17, 0 }
 0x538   :  { %2135 = shalt.err (%p2179_p2)  }
 0x539   :  { %2137 = vsyncmov [#allocation5 + $0x1] }
 0x53c   :  { %s2138_s18 = vpop.sfrf %2137 }
 0x53d   :  { %p2180_p3 = scmp.ne.s32.totalorder %s2138_s18, 0 }
 0x53f   :  { %2142 = shalt.err (%p2180_p3)  }

</bundles_post_ra>
